<compile_context>
chip_gen: v6e
topology: v6e:2x2x1
jax: 0.10.0
libtpu: 0.0.40
codegen_flags: <defaults>
</compile_context>

<pallas_src>
import math

import jax
import jax.numpy as jnp
import numpy as np
from jax import lax
from jax.experimental import pallas as pl
from jax.experimental.pallas import tpu as pltpu

# ----------------------------- small, shape-consistent config -----------------------------
B = 2               # batch (== transformer "seq" length due to batch_first=False)
C = 3               # in_chans
IMG = 12            # img_size
PATCH = 4           # patch_size -> 3x3 grid -> 9 patches
GRID = IMG // PATCH
NUM_PATCHES = GRID * GRID            # 9
EMBED = 10                           # embed_dim (== 1 + NUM_PATCHES, module requirement)
SEQ = 1 + NUM_PATCHES                # 10
DEPTH = 2
HEADS = 2
HEAD_DIM = EMBED // HEADS
DFF = 32                             # dim_feedforward (scaled down from 2048)
VIT_CLASSES = EMBED                  # must equal embed_dim for the outer fc
NUM_CLASSES = 3
LN_EPS = 1e-5

EP = 128                             # lane-dense padded feature width (all weights padded once)
PATCH_FEATS = C * PATCH * PATCH      # 48


# --------------------------------- fused Pallas kernel --------------------------------------
def _fused_forward_kernel(pe_ref, aadd_ref, pw_ref, hb_ref, lw_ref, lv_ref,
                          dw_ref, tv_ref, dkk_ref, wvit_ref, wfc_ref, out_ref):
    f32 = jnp.float32
    lane = lax.broadcasted_iota(jnp.int32, (1, EP), 1)
    e_mask = (lane < EMBED).astype(f32)            # zero out padding lanes in LN
    inv_e = 1.0 / EMBED

    def layer_norm(h, g, b):
        # padding lanes of h are zero, so a plain lane-sum / EMBED is the logical mean.
        mean = jnp.sum(h, axis=-1, keepdims=True) * inv_e
        c = (h - mean) * e_mask
        var = jnp.sum(c * c, axis=-1, keepdims=True) * inv_e
        return c * lax.rsqrt(var + LN_EPS) * g + b   # padded gamma/beta are zero -> stays zero

    a_add = aadd_ref[...]          # (SEQ, EP): row0 = cls+pos[0]; rows>0 = pos[s]+patch_bias
    pw = pw_ref[...]               # (EP, EP)   patch-embedding weight (48x10 logical)
    hb = hb_ref[...]               # (EP, EP)   per-head segment sum + broadcast matrix

    # ---- patch embedding + cls token + positional embedding (per image b) ----
    xs = [jnp.dot(pe_ref[b], pw, preferred_element_type=f32) + a_add for b in range(B)]

    # ---- transformer encoder layers (attention mixes over the image-batch axis) ----
    scale = 1.0 / math.sqrt(HEAD_DIM)
    for l in range(DEPTH):
        wq, wk, wv = lw_ref[6 * l + 0], lw_ref[6 * l + 1], lw_ref[6 * l + 2]
        wo, wf1, wf2 = lw_ref[6 * l + 3], lw_ref[6 * l + 4], lw_ref[6 * l + 5]
        bq, bk, bv, bo = (lv_ref[10 * l + 0], lv_ref[10 * l + 1],
                          lv_ref[10 * l + 2], lv_ref[10 * l + 3])
        bf1, bf2 = lv_ref[10 * l + 4], lv_ref[10 * l + 5]
        ln1g, ln1b = lv_ref[10 * l + 6], lv_ref[10 * l + 7]
        ln2g, ln2b = lv_ref[10 * l + 8], lv_ref[10 * l + 9]

        q = [jnp.dot(xs[b], wq, preferred_element_type=f32) + bq for b in range(B)]
        k = [jnp.dot(xs[b], wk, preferred_element_type=f32) + bk for b in range(B)]
        v = [jnp.dot(xs[b], wv, preferred_element_type=f32) + bv for b in range(B)]

        # merged-head scores: (q[a]*k[c]) @ HB sums each head's 5 lanes and broadcasts the
        # score back across that head's lanes -> (SEQ, EP), padding lanes stay zero.
        s = [[jnp.dot(q[a] * k[c], hb, preferred_element_type=f32) * scale
              for c in range(B)] for a in range(B)]

        new_xs = []
        for a in range(B):
            m = s[a][0]
            for c in range(1, B):
                m = jnp.maximum(m, s[a][c])
            es = [jnp.exp(s[a][c] - m) for c in range(B)]
            den = es[0]
            for c in range(1, B):
                den = den + es[c]
            o = es[0] * v[0]
            for c in range(1, B):
                o = o + es[c] * v[c]
            o = o * pl.reciprocal(den, approx=True)                 # EUP, softmax denominator
            o = jnp.dot(o, wo, preferred_element_type=f32) + bo
            h = layer_norm(xs[a] + o, ln1g, ln1b)                   # post-norm
            ff = jnp.maximum(jnp.dot(h, wf1, preferred_element_type=f32) + bf1, 0.0)
            ff = jnp.dot(ff, wf2, preferred_element_type=f32) + bf2
            new_xs.append(layer_norm(h + ff, ln2g, ln2b))
        xs = new_xs

    # ---- DiffusionKernelAttention (over the ViT sequence axis, per image b) + heads ----
    wdq, wdk, wdv = dw_ref[0], dw_ref[1], dw_ref[2]
    bdq, bdk, bdv, bvit, bfc = tv_ref[0], tv_ref[1], tv_ref[2], tv_ref[3], tv_ref[4]
    dkk = dkk_ref[...]             # (EMBED, EP) diffusion kernel
    wvit = wvit_ref[...]
    wfc = wfc_ref[...]
    dscale = 1.0 / math.sqrt(EMBED)
    for b in range(B):
        xb = xs[b]                                                  # (SEQ, EP)
        q = jnp.dot(xb, wdq, preferred_element_type=f32) + bdq
        k = jnp.dot(xb, wdk, preferred_element_type=f32) + bdk
        v = jnp.dot(xb, wdv, preferred_element_type=f32) + bdv
        sc = lax.dot_general(q, k, (((1,), (1,)), ((), ())),
                             preferred_element_type=f32) * dscale   # (SEQ, SEQ), all logical
        sc = sc - jnp.max(sc, axis=-1, keepdims=True)
        p = jnp.exp(sc)
        p = p * pl.reciprocal(jnp.sum(p, axis=-1, keepdims=True), approx=True)
        a = jnp.dot(p, dkk, preferred_element_type=f32)             # (SEQ, EP) (needs SEQ==EMBED)
        ov = jnp.dot(a[:, :EMBED], v, preferred_element_type=f32)   # (SEQ, EP)
        cls = ov[0:1, :]                                            # CLS token
        feat = jnp.dot(cls, wvit, preferred_element_type=f32) + bvit
        logits = jnp.dot(feat, wfc, preferred_element_type=f32) + bfc
        out_ref[b] = logits


def _full_spec(shape):
    nd = len(shape)
    return pl.BlockSpec(shape, lambda i: (0,) * nd)


def fused_forward(pe, packed):
    args = (pe, packed["a_add"], packed["patch_w"], packed["hb"], packed["lw"],
            packed["lv"], packed["dw"], packed["tv"], packed["dk"],
            packed["wvit"], packed["wfc"])
    out = pl.pallas_call(
        _fused_forward_kernel,
        out_shape=jax.ShapeDtypeStruct((B, 1, EP), jnp.float32),
        grid=(1,),
        in_specs=[_full_spec(a.shape) for a in args],
        out_specs=_full_spec((B, 1, EP)),
        compiler_params=pltpu.CompilerParams(dimension_semantics=("arbitrary",)),
    )(*args)
    return out[:, 0, :NUM_CLASSES]


def forward_pallas(x_nchw, packed):
    """Host glue: patch extraction (one transpose/scatter) + the single fused kernel."""
    Bz = x_nchw.shape[0]
    patches = x_nchw.reshape(Bz, C, GRID, PATCH, GRID, PATCH)
    patches = jnp.transpose(patches, (0, 2, 4, 1, 3, 5)).reshape(Bz, NUM_PATCHES, PATCH_FEATS)
    pe = jnp.zeros((Bz, SEQ, EP), jnp.float32)
    pe = pe.at[:, 1:, :PATCH_FEATS].set(patches)   # row s=0 (cls slot) stays zero
    return fused_forward(pe, packed)


# --------------------------------- parameter packing ----------------------------------------
def _pad_to(a, shape):
    a = jnp.asarray(a, jnp.float32)
    return jnp.pad(a, [(0, t - s) for s, t in zip(a.shape, shape)])


def pack_params(p):
    """Pad/stack all weights ONCE into the lane-dense layout used by the fused kernel."""
    lw, lv = [], []
    for lp in p["layers"]:
        for name in ("wq", "wk", "wv", "wo", "wf1", "wf2"):
            lw.append(_pad_to(lp[name], (EP, EP)))
        for name in ("bq", "bk", "bv", "bo", "bf1", "bf2",
                     "ln1_g", "ln1_b", "ln2_g", "ln2_b"):
            lv.append(_pad_to(lp[name].reshape(1, -1), (1, EP)))
    a_add = jnp.concatenate(
        [p["cls_token"].reshape(1, EMBED) + p["pos_embed"][0, 0:1],
         p["pos_embed"][0, 1:] + p["patch_b"].reshape(1, EMBED)], axis=0)
    hb = np.zeros((EP, EP), np.float32)
    for h in range(HEADS):
        hb[h * HEAD_DIM:(h + 1) * HEAD_DIM, h * HEAD_DIM:(h + 1) * HEAD_DIM] = 1.0
    return dict(
        a_add=_pad_to(a_add, (SEQ, EP)),
        patch_w=_pad_to(p["patch_w"], (EP, EP)),
        hb=jnp.asarray(hb),
        lw=jnp.stack(lw),                          # (DEPTH*6, EP, EP)
        lv=jnp.stack(lv),                          # (DEPTH*10, 1, EP)
        dw=jnp.stack([_pad_to(p["dq_w"], (EP, EP)),
                      _pad_to(p["dk_w"], (EP, EP)),
                      _pad_to(p["dv_w"], (EP, EP))]),
        tv=jnp.stack([_pad_to(p["dq_b"].reshape(1, -1), (1, EP)),
                      _pad_to(p["dk_b"].reshape(1, -1), (1, EP)),
                      _pad_to(p["dv_b"].reshape(1, -1), (1, EP)),
                      _pad_to(p["vit_fc_b"].reshape(1, -1), (1, EP)),
                      _pad_to(p["fc_b"].reshape(1, -1), (1, EP))]),
        dk=_pad_to(p["diffusion_kernel"], (EMBED, EP)),
        wvit=_pad_to(p["vit_fc_w"], (EP, EP)),
        wfc=_pad_to(p["fc_w"], (EP, EP)),
    )


# ------------------------------ pure-JAX reference forward ----------------------------------
def ref_layernorm(x, g, b):
    m = jnp.mean(x, axis=-1, keepdims=True)
    c = x - m
    v = jnp.mean(c * c, axis=-1, keepdims=True)
    return c * lax.rsqrt(v + LN_EPS) * g + b


def ref_transformer_layer(x, p):
    # x: (B, SEQ, E); batch_first=False => attention over axis 0.
    L, N, E = x.shape
    q = x @ p["wq"] + p["bq"]
    k = x @ p["wk"] + p["bk"]
    v = x @ p["wv"] + p["bv"]

    def split(t):
        return jnp.transpose(t.reshape(L, N, HEADS, HEAD_DIM), (1, 2, 0, 3))   # (N,nh,L,hd)

    qh, kh, vh = split(q), split(k), split(v)
    s = jnp.einsum("nhad,nhcd->nhac", qh, kh) / math.sqrt(HEAD_DIM)
    a = jax.nn.softmax(s, axis=-1)
    o = jnp.einsum("nhac,nhcd->nhad", a, vh)
    o = jnp.transpose(o, (2, 0, 1, 3)).reshape(L, N, E)
    o = o @ p["wo"] + p["bo"]
    h = ref_layernorm(x + o, p["ln1_g"], p["ln1_b"])
    f = jnp.maximum(h @ p["wf1"] + p["bf1"], 0.0) @ p["wf2"] + p["bf2"]
    return ref_layernorm(h + f, p["ln2_g"], p["ln2_b"])


def forward_reference(x_nchw, params):
    Bz = x_nchw.shape[0]
    patches = x_nchw.reshape(Bz, C, GRID, PATCH, GRID, PATCH)
    patches = jnp.transpose(patches, (0, 2, 4, 1, 3, 5)).reshape(Bz, NUM_PATCHES, PATCH_FEATS)
    tok = patches @ params["patch_w"] + params["patch_b"]
    cls = jnp.broadcast_to(params["cls_token"], (Bz, 1, EMBED))
    x = jnp.concatenate([cls, tok], axis=1) + params["pos_embed"]
    for lp in params["layers"]:
        x = ref_transformer_layer(x, lp)
    q = x @ params["dq_w"] + params["dq_b"]
    k = x @ params["dk_w"] + params["dk_b"]
    v = x @ params["dv_w"] + params["dv_b"]
    s = jnp.einsum("bse,bte->bst", q, k) / math.sqrt(EMBED)
    p = jax.nn.softmax(s, axis=-1)
    a = jnp.einsum("bst,te->bse", p, params["diffusion_kernel"])
    x = jnp.einsum("bsk,bke->bse", a, v)
    cls_feat = x[:, 0]
    feat = cls_feat @ params["vit_fc_w"] + params["vit_fc_b"]
    return feat @ params["fc_w"] + params["fc_b"]


# ----------------------------------- parameter init -----------------------------------------
def init_params(key):
    keys = iter(jax.random.split(key, 96))

    def w(shape, s=0.05):
        return jax.random.normal(next(keys), shape, jnp.float32) * s

    layers = []
    for _ in range(DEPTH):
        layers.append(dict(
            wq=w((EMBED, EMBED)), bq=w((EMBED,), 0.02),
            wk=w((EMBED, EMBED)), bk=w((EMBED,), 0.02),
            wv=w((EMBED, EMBED)), bv=w((EMBED,), 0.02),
            wo=w((EMBED, EMBED)), bo=w((EMBED,), 0.02),
            ln1_g=jnp.ones((EMBED,), jnp.float32), ln1_b=jnp.zeros((EMBED,), jnp.float32),
            ln2_g=jnp.ones((EMBED,), jnp.float32), ln2_b=jnp.zeros((EMBED,), jnp.float32),
            wf1=w((EMBED, DFF)), bf1=w((DFF,), 0.02),
            wf2=w((DFF, EMBED)), bf2=w((EMBED,), 0.02),
        ))
    return dict(
        patch_w=w((PATCH_FEATS, EMBED)), patch_b=w((EMBED,), 0.02),
        cls_token=w((1, 1, EMBED), 0.02), pos_embed=w((1, SEQ, EMBED), 0.02),
        layers=layers,
        dq_w=w((EMBED, EMBED)), dq_b=w((EMBED,), 0.02),
        dk_w=w((EMBED, EMBED)), dk_b=w((EMBED,), 0.02),
        dv_w=w((EMBED, EMBED)), dv_b=w((EMBED,), 0.02),
        diffusion_kernel=w((EMBED, EMBED), 0.1),
        vit_fc_w=w((EMBED, VIT_CLASSES)), vit_fc_b=w((VIT_CLASSES,), 0.02),
        fc_w=w((EMBED, NUM_CLASSES)), fc_b=w((NUM_CLASSES,), 0.02),
    )


# ---------------------------------------- main -----------------------------------------------
if __name__ == "__main__":
    key = jax.random.PRNGKey(0)
    pkey, xkey = jax.random.split(key)
    params = init_params(pkey)
    packed = pack_params(params)                       # one-time lane-dense padding
    x = jax.random.normal(xkey, (B, C, IMG, IMG), jnp.float32)   # NCHW, like the PyTorch input

    run_pallas = jax.jit(lambda xx: forward_pallas(xx, packed))
    out = jax.block_until_ready(run_pallas(x))
    assert out.shape == (B, NUM_CLASSES)

    ref = jax.block_until_ready(jax.jit(lambda xx: forward_reference(xx, params))(x))
    np.testing.assert_allclose(np.asarray(out), np.asarray(ref), rtol=2e-2, atol=2e-2)

    print("KERNEL_OK")
</pallas_src>

<mosaic_0001>
module attributes {stable_mosaic.version = 11 : i64} {
  func.func @_fused_forward_kernel(%arg0: i32, %arg1: memref<2x10x128xf32, #tpu.memory_space<vmem>>, %arg2: memref<10x128xf32, #tpu.memory_space<vmem>>, %arg3: memref<128x128xf32, #tpu.memory_space<vmem>>, %arg4: memref<128x128xf32, #tpu.memory_space<vmem>>, %arg5: memref<12x128x128xf32, #tpu.memory_space<vmem>>, %arg6: memref<20x1x128xf32, #tpu.memory_space<vmem>>, %arg7: memref<3x128x128xf32, #tpu.memory_space<vmem>>, %arg8: memref<5x1x128xf32, #tpu.memory_space<vmem>>, %arg9: memref<10x128xf32, #tpu.memory_space<vmem>>, %arg10: memref<128x128xf32, #tpu.memory_space<vmem>>, %arg11: memref<128x128xf32, #tpu.memory_space<vmem>>, %arg12: memref<2x1x128xf32, #tpu.memory_space<vmem>>) attributes {dimension_semantics = [#tpu.dimension_semantics<arbitrary>], iteration_bounds = array<i64: 1>, scalar_prefetch = 0 : i64, scratch_operands = 0 : i64, tpu.core_type = #tpu.core_type<tc>, window_params = [{pipeline_mode = #tpu.pipeline_mode<synchronous>, transform_indices = @transform_0, window_bounds = array<i64: 2, 10, 128>}, {pipeline_mode = #tpu.pipeline_mode<synchronous>, transform_indices = @transform_1, window_bounds = array<i64: 10, 128>}, {pipeline_mode = #tpu.pipeline_mode<synchronous>, transform_indices = @transform_2, window_bounds = array<i64: 128, 128>}, {pipeline_mode = #tpu.pipeline_mode<synchronous>, transform_indices = @transform_3, window_bounds = array<i64: 128, 128>}, {pipeline_mode = #tpu.pipeline_mode<synchronous>, transform_indices = @transform_4, window_bounds = array<i64: 12, 128, 128>}, {pipeline_mode = #tpu.pipeline_mode<synchronous>, transform_indices = @transform_5, window_bounds = array<i64: 20, 1, 128>}, {pipeline_mode = #tpu.pipeline_mode<synchronous>, transform_indices = @transform_6, window_bounds = array<i64: 3, 128, 128>}, {pipeline_mode = #tpu.pipeline_mode<synchronous>, transform_indices = @transform_7, window_bounds = array<i64: 5, 1, 128>}, {pipeline_mode = #tpu.pipeline_mode<synchronous>, transform_indices = @transform_8, window_bounds = array<i64: 10, 128>}, {pipeline_mode = #tpu.pipeline_mode<synchronous>, transform_indices = @transform_9, window_bounds = array<i64: 128, 128>}, {pipeline_mode = #tpu.pipeline_mode<synchronous>, transform_indices = @transform_10, window_bounds = array<i64: 128, 128>}, {pipeline_mode = #tpu.pipeline_mode<synchronous>, transform_indices = @transform_11, window_bounds = array<i64: 2, 1, 128>}]} {
    %0 = tpu.iota {dimensions = array<i32: 1>} : vector<1x128xi32>
    %c10_i32 = arith.constant 10 : i32
    %1 = vector.broadcast %c10_i32 : i32 to vector<1x128xi32>
    %2 = arith.cmpi slt, %0, %1 : vector<1x128xi32>
    %3 = arith.extui %2 : vector<1x128xi1> to vector<1x128xi32>
    %4 = arith.sitofp %3 : vector<1x128xi32> to vector<1x128xf32>
    %c0 = arith.constant 0 : index
    %c0_0 = arith.constant 0 : index
    %5 = vector.load %arg2[%c0, %c0_0] : memref<10x128xf32, #tpu.memory_space<vmem>>, vector<10x128xf32>
    %c0_1 = arith.constant 0 : index
    %c0_2 = arith.constant 0 : index
    %6 = vector.load %arg3[%c0_1, %c0_2] : memref<128x128xf32, #tpu.memory_space<vmem>>, vector<128x128xf32>
    %c0_3 = arith.constant 0 : index
    %c0_4 = arith.constant 0 : index
    %7 = vector.load %arg4[%c0_3, %c0_4] : memref<128x128xf32, #tpu.memory_space<vmem>>, vector<128x128xf32>
    %c0_5 = arith.constant 0 : index
    %c0_6 = arith.constant 0 : index
    %c0_7 = arith.constant 0 : index
    %8 = vector.load %arg1[%c0_5, %c0_6, %c0_7] : memref<2x10x128xf32, #tpu.memory_space<vmem>>, vector<1x10x128xf32>
    %9 = vector.shape_cast %8 : vector<1x10x128xf32> to vector<10x128xf32>
    %cst = arith.constant dense<0.000000e+00> : vector<10x128xf32>
    %10 = tpu.matmul %9, %6, %cst {dimension_numbers = #tpu.dot_dimension_numbers<[1], [0], [0], [1], [0, 0, 1, 1], [], []>} : vector<10x128xf32>, vector<128x128xf32>, vector<10x128xf32> -> vector<10x128xf32>
    %11 = arith.addf %10, %5 : vector<10x128xf32>
    %c1 = arith.constant 1 : index
    %c0_8 = arith.constant 0 : index
    %c0_9 = arith.constant 0 : index
    %12 = vector.load %arg1[%c1, %c0_8, %c0_9] : memref<2x10x128xf32, #tpu.memory_space<vmem>>, vector<1x10x128xf32>
    %13 = vector.shape_cast %12 : vector<1x10x128xf32> to vector<10x128xf32>
    %cst_10 = arith.constant dense<0.000000e+00> : vector<10x128xf32>
    %14 = tpu.matmul %13, %6, %cst_10 {dimension_numbers = #tpu.dot_dimension_numbers<[1], [0], [0], [1], [0, 0, 1, 1], [], []>} : vector<10x128xf32>, vector<128x128xf32>, vector<10x128xf32> -> vector<10x128xf32>
    %15 = arith.addf %14, %5 : vector<10x128xf32>
    %c0_11 = arith.constant 0 : index
    %c0_12 = arith.constant 0 : index
    %c0_13 = arith.constant 0 : index
    %16 = vector.load %arg5[%c0_11, %c0_12, %c0_13] : memref<12x128x128xf32, #tpu.memory_space<vmem>>, vector<1x128x128xf32>
    %17 = vector.shape_cast %16 : vector<1x128x128xf32> to vector<128x128xf32>
    %c1_14 = arith.constant 1 : index
    %c0_15 = arith.constant 0 : index
    %c0_16 = arith.constant 0 : index
    %18 = vector.load %arg5[%c1_14, %c0_15, %c0_16] : memref<12x128x128xf32, #tpu.memory_space<vmem>>, vector<1x128x128xf32>
    %19 = vector.shape_cast %18 : vector<1x128x128xf32> to vector<128x128xf32>
    %c2 = arith.constant 2 : index
    %c0_17 = arith.constant 0 : index
    %c0_18 = arith.constant 0 : index
    %20 = vector.load %arg5[%c2, %c0_17, %c0_18] : memref<12x128x128xf32, #tpu.memory_space<vmem>>, vector<1x128x128xf32>
    %21 = vector.shape_cast %20 : vector<1x128x128xf32> to vector<128x128xf32>
    %c3 = arith.constant 3 : index
    %c0_19 = arith.constant 0 : index
    %c0_20 = arith.constant 0 : index
    %22 = vector.load %arg5[%c3, %c0_19, %c0_20] : memref<12x128x128xf32, #tpu.memory_space<vmem>>, vector<1x128x128xf32>
    %23 = vector.shape_cast %22 : vector<1x128x128xf32> to vector<128x128xf32>
    %c4 = arith.constant 4 : index
    %c0_21 = arith.constant 0 : index
    %c0_22 = arith.constant 0 : index
    %24 = vector.load %arg5[%c4, %c0_21, %c0_22] : memref<12x128x128xf32, #tpu.memory_space<vmem>>, vector<1x128x128xf32>
    %25 = vector.shape_cast %24 : vector<1x128x128xf32> to vector<128x128xf32>
    %c5 = arith.constant 5 : index
    %c0_23 = arith.constant 0 : index
    %c0_24 = arith.constant 0 : index
    %26 = vector.load %arg5[%c5, %c0_23, %c0_24] : memref<12x128x128xf32, #tpu.memory_space<vmem>>, vector<1x128x128xf32>
    %27 = vector.shape_cast %26 : vector<1x128x128xf32> to vector<128x128xf32>
    %c0_25 = arith.constant 0 : index
    %c0_26 = arith.constant 0 : index
    %c0_27 = arith.constant 0 : index
    %28 = vector.load %arg6[%c0_25, %c0_26, %c0_27] : memref<20x1x128xf32, #tpu.memory_space<vmem>>, vector<1x1x128xf32>
    %29 = vector.shape_cast %28 : vector<1x1x128xf32> to vector<1x128xf32>
    %c1_28 = arith.constant 1 : index
    %c0_29 = arith.constant 0 : index
    %c0_30 = arith.constant 0 : index
    %30 = vector.load %arg6[%c1_28, %c0_29, %c0_30] : memref<20x1x128xf32, #tpu.memory_space<vmem>>, vector<1x1x128xf32>
    %31 = vector.shape_cast %30 : vector<1x1x128xf32> to vector<1x128xf32>
    %c2_31 = arith.constant 2 : index
    %c0_32 = arith.constant 0 : index
    %c0_33 = arith.constant 0 : index
    %32 = vector.load %arg6[%c2_31, %c0_32, %c0_33] : memref<20x1x128xf32, #tpu.memory_space<vmem>>, vector<1x1x128xf32>
    %33 = vector.shape_cast %32 : vector<1x1x128xf32> to vector<1x128xf32>
    %c3_34 = arith.constant 3 : index
    %c0_35 = arith.constant 0 : index
    %c0_36 = arith.constant 0 : index
    %34 = vector.load %arg6[%c3_34, %c0_35, %c0_36] : memref<20x1x128xf32, #tpu.memory_space<vmem>>, vector<1x1x128xf32>
    %35 = vector.shape_cast %34 : vector<1x1x128xf32> to vector<1x128xf32>
    %c4_37 = arith.constant 4 : index
    %c0_38 = arith.constant 0 : index
    %c0_39 = arith.constant 0 : index
    %36 = vector.load %arg6[%c4_37, %c0_38, %c0_39] : memref<20x1x128xf32, #tpu.memory_space<vmem>>, vector<1x1x128xf32>
    %37 = vector.shape_cast %36 : vector<1x1x128xf32> to vector<1x128xf32>
    %c5_40 = arith.constant 5 : index
    %c0_41 = arith.constant 0 : index
    %c0_42 = arith.constant 0 : index
    %38 = vector.load %arg6[%c5_40, %c0_41, %c0_42] : memref<20x1x128xf32, #tpu.memory_space<vmem>>, vector<1x1x128xf32>
    %39 = vector.shape_cast %38 : vector<1x1x128xf32> to vector<1x128xf32>
    %c6 = arith.constant 6 : index
    %c0_43 = arith.constant 0 : index
    %c0_44 = arith.constant 0 : index
    %40 = vector.load %arg6[%c6, %c0_43, %c0_44] : memref<20x1x128xf32, #tpu.memory_space<vmem>>, vector<1x1x128xf32>
    %41 = vector.shape_cast %40 : vector<1x1x128xf32> to vector<1x128xf32>
    %c7 = arith.constant 7 : index
    %c0_45 = arith.constant 0 : index
    %c0_46 = arith.constant 0 : index
    %42 = vector.load %arg6[%c7, %c0_45, %c0_46] : memref<20x1x128xf32, #tpu.memory_space<vmem>>, vector<1x1x128xf32>
    %43 = vector.shape_cast %42 : vector<1x1x128xf32> to vector<1x128xf32>
    %c8 = arith.constant 8 : index
    %c0_47 = arith.constant 0 : index
    %c0_48 = arith.constant 0 : index
    %44 = vector.load %arg6[%c8, %c0_47, %c0_48] : memref<20x1x128xf32, #tpu.memory_space<vmem>>, vector<1x1x128xf32>
    %45 = vector.shape_cast %44 : vector<1x1x128xf32> to vector<1x128xf32>
    %c9 = arith.constant 9 : index
    %c0_49 = arith.constant 0 : index
    %c0_50 = arith.constant 0 : index
    %46 = vector.load %arg6[%c9, %c0_49, %c0_50] : memref<20x1x128xf32, #tpu.memory_space<vmem>>, vector<1x1x128xf32>
    %47 = vector.shape_cast %46 : vector<1x1x128xf32> to vector<1x128xf32>
    %cst_51 = arith.constant dense<0.000000e+00> : vector<10x128xf32>
    %48 = tpu.matmul %11, %17, %cst_51 {dimension_numbers = #tpu.dot_dimension_numbers<[1], [0], [0], [1], [0, 0, 1, 1], [], []>} : vector<10x128xf32>, vector<128x128xf32>, vector<10x128xf32> -> vector<10x128xf32>
    %49 = vector.broadcast %29 : vector<1x128xf32> to vector<10x128xf32>
    %50 = arith.addf %48, %49 : vector<10x128xf32>
    %cst_52 = arith.constant dense<0.000000e+00> : vector<10x128xf32>
    %51 = tpu.matmul %15, %17, %cst_52 {dimension_numbers = #tpu.dot_dimension_numbers<[1], [0], [0], [1], [0, 0, 1, 1], [], []>} : vector<10x128xf32>, vector<128x128xf32>, vector<10x128xf32> -> vector<10x128xf32>
    %52 = vector.broadcast %29 : vector<1x128xf32> to vector<10x128xf32>
    %53 = arith.addf %51, %52 : vector<10x128xf32>
    %cst_53 = arith.constant dense<0.000000e+00> : vector<10x128xf32>
    %54 = tpu.matmul %11, %19, %cst_53 {dimension_numbers = #tpu.dot_dimension_numbers<[1], [0], [0], [1], [0, 0, 1, 1], [], []>} : vector<10x128xf32>, vector<128x128xf32>, vector<10x128xf32> -> vector<10x128xf32>
    %55 = vector.broadcast %31 : vector<1x128xf32> to vector<10x128xf32>
    %56 = arith.addf %54, %55 : vector<10x128xf32>
    %cst_54 = arith.constant dense<0.000000e+00> : vector<10x128xf32>
    %57 = tpu.matmul %15, %19, %cst_54 {dimension_numbers = #tpu.dot_dimension_numbers<[1], [0], [0], [1], [0, 0, 1, 1], [], []>} : vector<10x128xf32>, vector<128x128xf32>, vector<10x128xf32> -> vector<10x128xf32>
    %58 = vector.broadcast %31 : vector<1x128xf32> to vector<10x128xf32>
    %59 = arith.addf %57, %58 : vector<10x128xf32>
    %cst_55 = arith.constant dense<0.000000e+00> : vector<10x128xf32>
    %60 = tpu.matmul %11, %21, %cst_55 {dimension_numbers = #tpu.dot_dimension_numbers<[1], [0], [0], [1], [0, 0, 1, 1], [], []>} : vector<10x128xf32>, vector<128x128xf32>, vector<10x128xf32> -> vector<10x128xf32>
    %61 = vector.broadcast %33 : vector<1x128xf32> to vector<10x128xf32>
    %62 = arith.addf %60, %61 : vector<10x128xf32>
    %cst_56 = arith.constant dense<0.000000e+00> : vector<10x128xf32>
    %63 = tpu.matmul %15, %21, %cst_56 {dimension_numbers = #tpu.dot_dimension_numbers<[1], [0], [0], [1], [0, 0, 1, 1], [], []>} : vector<10x128xf32>, vector<128x128xf32>, vector<10x128xf32> -> vector<10x128xf32>
    %64 = vector.broadcast %33 : vector<1x128xf32> to vector<10x128xf32>
    %65 = arith.addf %63, %64 : vector<10x128xf32>
    %66 = arith.mulf %50, %56 : vector<10x128xf32>
    %cst_57 = arith.constant dense<0.000000e+00> : vector<10x128xf32>
    %67 = tpu.matmul %66, %7, %cst_57 {dimension_numbers = #tpu.dot_dimension_numbers<[1], [0], [0], [1], [0, 0, 1, 1], [], []>} : vector<10x128xf32>, vector<128x128xf32>, vector<10x128xf32> -> vector<10x128xf32>
    %cst_58 = arith.constant 0.44721359 : f32
    %68 = vector.broadcast %cst_58 : f32 to vector<10x128xf32>
    %69 = arith.mulf %67, %68 : vector<10x128xf32>
    %70 = arith.mulf %50, %59 : vector<10x128xf32>
    %cst_59 = arith.constant dense<0.000000e+00> : vector<10x128xf32>
    %71 = tpu.matmul %70, %7, %cst_59 {dimension_numbers = #tpu.dot_dimension_numbers<[1], [0], [0], [1], [0, 0, 1, 1], [], []>} : vector<10x128xf32>, vector<128x128xf32>, vector<10x128xf32> -> vector<10x128xf32>
    %cst_60 = arith.constant 0.44721359 : f32
    %72 = vector.broadcast %cst_60 : f32 to vector<10x128xf32>
    %73 = arith.mulf %71, %72 : vector<10x128xf32>
    %74 = arith.mulf %53, %56 : vector<10x128xf32>
    %cst_61 = arith.constant dense<0.000000e+00> : vector<10x128xf32>
    %75 = tpu.matmul %74, %7, %cst_61 {dimension_numbers = #tpu.dot_dimension_numbers<[1], [0], [0], [1], [0, 0, 1, 1], [], []>} : vector<10x128xf32>, vector<128x128xf32>, vector<10x128xf32> -> vector<10x128xf32>
    %cst_62 = arith.constant 0.44721359 : f32
    %76 = vector.broadcast %cst_62 : f32 to vector<10x128xf32>
    %77 = arith.mulf %75, %76 : vector<10x128xf32>
    %78 = arith.mulf %53, %59 : vector<10x128xf32>
    %cst_63 = arith.constant dense<0.000000e+00> : vector<10x128xf32>
    %79 = tpu.matmul %78, %7, %cst_63 {dimension_numbers = #tpu.dot_dimension_numbers<[1], [0], [0], [1], [0, 0, 1, 1], [], []>} : vector<10x128xf32>, vector<128x128xf32>, vector<10x128xf32> -> vector<10x128xf32>
    %cst_64 = arith.constant 0.44721359 : f32
    %80 = vector.broadcast %cst_64 : f32 to vector<10x128xf32>
    %81 = arith.mulf %79, %80 : vector<10x128xf32>
    %82 = arith.maximumf %69, %73 : vector<10x128xf32>
    %83 = arith.subf %69, %82 : vector<10x128xf32>
    %84 = math.exp %83 : vector<10x128xf32>
    %85 = arith.subf %73, %82 : vector<10x128xf32>
    %86 = math.exp %85 : vector<10x128xf32>
    %87 = arith.addf %84, %86 : vector<10x128xf32>
    %88 = arith.mulf %84, %62 : vector<10x128xf32>
    %89 = arith.mulf %86, %65 : vector<10x128xf32>
    %90 = arith.addf %88, %89 : vector<10x128xf32>
    %91 = tpu.reciprocal %87 {approx = true} : vector<10x128xf32> -> vector<10x128xf32>
    %92 = arith.mulf %90, %91 : vector<10x128xf32>
    %cst_65 = arith.constant dense<0.000000e+00> : vector<10x128xf32>
    %93 = tpu.matmul %92, %23, %cst_65 {dimension_numbers = #tpu.dot_dimension_numbers<[1], [0], [0], [1], [0, 0, 1, 1], [], []>} : vector<10x128xf32>, vector<128x128xf32>, vector<10x128xf32> -> vector<10x128xf32>
    %94 = vector.broadcast %35 : vector<1x128xf32> to vector<10x128xf32>
    %95 = arith.addf %93, %94 : vector<10x128xf32>
    %96 = arith.addf %11, %95 : vector<10x128xf32>
    %cst_66 = arith.constant dense<0.000000e+00> : vector<10xf32>
    %97 = vector.multi_reduction <add>, %96, %cst_66 [1] : vector<10x128xf32> to vector<10xf32>
    %98 = vector.shape_cast %97 : vector<10xf32> to vector<10x1xf32>
    %cst_67 = arith.constant 1.000000e-01 : f32
    %99 = vector.broadcast %cst_67 : f32 to vector<10x1xf32>
    %100 = arith.mulf %98, %99 : vector<10x1xf32>
    %101 = vector.broadcast %100 : vector<10x1xf32> to vector<10x128xf32>
    %102 = arith.subf %96, %101 : vector<10x128xf32>
    %103 = vector.broadcast %4 : vector<1x128xf32> to vector<10x128xf32>
    %104 = arith.mulf %102, %103 : vector<10x128xf32>
    %105 = arith.mulf %104, %104 : vector<10x128xf32>
    %cst_68 = arith.constant dense<0.000000e+00> : vector<10xf32>
    %106 = vector.multi_reduction <add>, %105, %cst_68 [1] : vector<10x128xf32> to vector<10xf32>
    %107 = vector.shape_cast %106 : vector<10xf32> to vector<10x1xf32>
    %cst_69 = arith.constant 1.000000e-01 : f32
    %108 = vector.broadcast %cst_69 : f32 to vector<10x1xf32>
    %109 = arith.mulf %107, %108 : vector<10x1xf32>
    %cst_70 = arith.constant 9.99999974E-6 : f32
    %110 = vector.broadcast %cst_70 : f32 to vector<10x1xf32>
    %111 = arith.addf %109, %110 : vector<10x1xf32>
    %112 = math.rsqrt %111 : vector<10x1xf32>
    %113 = vector.broadcast %112 : vector<10x1xf32> to vector<10x128xf32>
    %114 = arith.mulf %104, %113 : vector<10x128xf32>
    %115 = vector.broadcast %41 : vector<1x128xf32> to vector<10x128xf32>
    %116 = arith.mulf %114, %115 : vector<10x128xf32>
    %117 = vector.broadcast %43 : vector<1x128xf32> to vector<10x128xf32>
    %118 = arith.addf %116, %117 : vector<10x128xf32>
    %cst_71 = arith.constant dense<0.000000e+00> : vector<10x128xf32>
    %119 = tpu.matmul %118, %25, %cst_71 {dimension_numbers = #tpu.dot_dimension_numbers<[1], [0], [0], [1], [0, 0, 1, 1], [], []>} : vector<10x128xf32>, vector<128x128xf32>, vector<10x128xf32> -> vector<10x128xf32>
    %120 = vector.broadcast %37 : vector<1x128xf32> to vector<10x128xf32>
    %121 = arith.addf %119, %120 : vector<10x128xf32>
    %cst_72 = arith.constant 0.000000e+00 : f32
    %122 = vector.broadcast %cst_72 : f32 to vector<10x128xf32>
    %123 = arith.maximumf %121, %122 : vector<10x128xf32>
    %cst_73 = arith.constant dense<0.000000e+00> : vector<10x128xf32>
    %124 = tpu.matmul %123, %27, %cst_73 {dimension_numbers = #tpu.dot_dimension_numbers<[1], [0], [0], [1], [0, 0, 1, 1], [], []>} : vector<10x128xf32>, vector<128x128xf32>, vector<10x128xf32> -> vector<10x128xf32>
    %125 = vector.broadcast %39 : vector<1x128xf32> to vector<10x128xf32>
    %126 = arith.addf %124, %125 : vector<10x128xf32>
    %127 = arith.addf %118, %126 : vector<10x128xf32>
    %cst_74 = arith.constant dense<0.000000e+00> : vector<10xf32>
    %128 = vector.multi_reduction <add>, %127, %cst_74 [1] : vector<10x128xf32> to vector<10xf32>
    %129 = vector.shape_cast %128 : vector<10xf32> to vector<10x1xf32>
    %cst_75 = arith.constant 1.000000e-01 : f32
    %130 = vector.broadcast %cst_75 : f32 to vector<10x1xf32>
    %131 = arith.mulf %129, %130 : vector<10x1xf32>
    %132 = vector.broadcast %131 : vector<10x1xf32> to vector<10x128xf32>
    %133 = arith.subf %127, %132 : vector<10x128xf32>
    %134 = vector.broadcast %4 : vector<1x128xf32> to vector<10x128xf32>
    %135 = arith.mulf %133, %134 : vector<10x128xf32>
    %136 = arith.mulf %135, %135 : vector<10x128xf32>
    %cst_76 = arith.constant dense<0.000000e+00> : vector<10xf32>
    %137 = vector.multi_reduction <add>, %136, %cst_76 [1] : vector<10x128xf32> to vector<10xf32>
    %138 = vector.shape_cast %137 : vector<10xf32> to vector<10x1xf32>
    %cst_77 = arith.constant 1.000000e-01 : f32
    %139 = vector.broadcast %cst_77 : f32 to vector<10x1xf32>
    %140 = arith.mulf %138, %139 : vector<10x1xf32>
    %cst_78 = arith.constant 9.99999974E-6 : f32
    %141 = vector.broadcast %cst_78 : f32 to vector<10x1xf32>
    %142 = arith.addf %140, %141 : vector<10x1xf32>
    %143 = math.rsqrt %142 : vector<10x1xf32>
    %144 = vector.broadcast %143 : vector<10x1xf32> to vector<10x128xf32>
    %145 = arith.mulf %135, %144 : vector<10x128xf32>
    %146 = vector.broadcast %45 : vector<1x128xf32> to vector<10x128xf32>
    %147 = arith.mulf %145, %146 : vector<10x128xf32>
    %148 = vector.broadcast %47 : vector<1x128xf32> to vector<10x128xf32>
    %149 = arith.addf %147, %148 : vector<10x128xf32>
    %150 = arith.maximumf %77, %81 : vector<10x128xf32>
    %151 = arith.subf %77, %150 : vector<10x128xf32>
    %152 = math.exp %151 : vector<10x128xf32>
    %153 = arith.subf %81, %150 : vector<10x128xf32>
    %154 = math.exp %153 : vector<10x128xf32>
    %155 = arith.addf %152, %154 : vector<10x128xf32>
    %156 = arith.mulf %152, %62 : vector<10x128xf32>
    %157 = arith.mulf %154, %65 : vector<10x128xf32>
    %158 = arith.addf %156, %157 : vector<10x128xf32>
    %159 = tpu.reciprocal %155 {approx = true} : vector<10x128xf32> -> vector<10x128xf32>
    %160 = arith.mulf %158, %159 : vector<10x128xf32>
    %cst_79 = arith.constant dense<0.000000e+00> : vector<10x128xf32>
    %161 = tpu.matmul %160, %23, %cst_79 {dimension_numbers = #tpu.dot_dimension_numbers<[1], [0], [0], [1], [0, 0, 1, 1], [], []>} : vector<10x128xf32>, vector<128x128xf32>, vector<10x128xf32> -> vector<10x128xf32>
    %162 = vector.broadcast %35 : vector<1x128xf32> to vector<10x128xf32>
    %163 = arith.addf %161, %162 : vector<10x128xf32>
    %164 = arith.addf %15, %163 : vector<10x128xf32>
    %cst_80 = arith.constant dense<0.000000e+00> : vector<10xf32>
    %165 = vector.multi_reduction <add>, %164, %cst_80 [1] : vector<10x128xf32> to vector<10xf32>
    %166 = vector.shape_cast %165 : vector<10xf32> to vector<10x1xf32>
    %cst_81 = arith.constant 1.000000e-01 : f32
    %167 = vector.broadcast %cst_81 : f32 to vector<10x1xf32>
    %168 = arith.mulf %166, %167 : vector<10x1xf32>
    %169 = vector.broadcast %168 : vector<10x1xf32> to vector<10x128xf32>
    %170 = arith.subf %164, %169 : vector<10x128xf32>
    %171 = vector.broadcast %4 : vector<1x128xf32> to vector<10x128xf32>
    %172 = arith.mulf %170, %171 : vector<10x128xf32>
    %173 = arith.mulf %172, %172 : vector<10x128xf32>
    %cst_82 = arith.constant dense<0.000000e+00> : vector<10xf32>
    %174 = vector.multi_reduction <add>, %173, %cst_82 [1] : vector<10x128xf32> to vector<10xf32>
    %175 = vector.shape_cast %174 : vector<10xf32> to vector<10x1xf32>
    %cst_83 = arith.constant 1.000000e-01 : f32
    %176 = vector.broadcast %cst_83 : f32 to vector<10x1xf32>
    %177 = arith.mulf %175, %176 : vector<10x1xf32>
    %cst_84 = arith.constant 9.99999974E-6 : f32
    %178 = vector.broadcast %cst_84 : f32 to vector<10x1xf32>
    %179 = arith.addf %177, %178 : vector<10x1xf32>
    %180 = math.rsqrt %179 : vector<10x1xf32>
    %181 = vector.broadcast %180 : vector<10x1xf32> to vector<10x128xf32>
    %182 = arith.mulf %172, %181 : vector<10x128xf32>
    %183 = vector.broadcast %41 : vector<1x128xf32> to vector<10x128xf32>
    %184 = arith.mulf %182, %183 : vector<10x128xf32>
    %185 = vector.broadcast %43 : vector<1x128xf32> to vector<10x128xf32>
    %186 = arith.addf %184, %185 : vector<10x128xf32>
    %cst_85 = arith.constant dense<0.000000e+00> : vector<10x128xf32>
    %187 = tpu.matmul %186, %25, %cst_85 {dimension_numbers = #tpu.dot_dimension_numbers<[1], [0], [0], [1], [0, 0, 1, 1], [], []>} : vector<10x128xf32>, vector<128x128xf32>, vector<10x128xf32> -> vector<10x128xf32>
    %188 = vector.broadcast %37 : vector<1x128xf32> to vector<10x128xf32>
    %189 = arith.addf %187, %188 : vector<10x128xf32>
    %cst_86 = arith.constant 0.000000e+00 : f32
    %190 = vector.broadcast %cst_86 : f32 to vector<10x128xf32>
    %191 = arith.maximumf %189, %190 : vector<10x128xf32>
    %cst_87 = arith.constant dense<0.000000e+00> : vector<10x128xf32>
    %192 = tpu.matmul %191, %27, %cst_87 {dimension_numbers = #tpu.dot_dimension_numbers<[1], [0], [0], [1], [0, 0, 1, 1], [], []>} : vector<10x128xf32>, vector<128x128xf32>, vector<10x128xf32> -> vector<10x128xf32>
    %193 = vector.broadcast %39 : vector<1x128xf32> to vector<10x128xf32>
    %194 = arith.addf %192, %193 : vector<10x128xf32>
    %195 = arith.addf %186, %194 : vector<10x128xf32>
    %cst_88 = arith.constant dense<0.000000e+00> : vector<10xf32>
    %196 = vector.multi_reduction <add>, %195, %cst_88 [1] : vector<10x128xf32> to vector<10xf32>
    %197 = vector.shape_cast %196 : vector<10xf32> to vector<10x1xf32>
    %cst_89 = arith.constant 1.000000e-01 : f32
    %198 = vector.broadcast %cst_89 : f32 to vector<10x1xf32>
    %199 = arith.mulf %197, %198 : vector<10x1xf32>
    %200 = vector.broadcast %199 : vector<10x1xf32> to vector<10x128xf32>
    %201 = arith.subf %195, %200 : vector<10x128xf32>
    %202 = vector.broadcast %4 : vector<1x128xf32> to vector<10x128xf32>
    %203 = arith.mulf %201, %202 : vector<10x128xf32>
    %204 = arith.mulf %203, %203 : vector<10x128xf32>
    %cst_90 = arith.constant dense<0.000000e+00> : vector<10xf32>
    %205 = vector.multi_reduction <add>, %204, %cst_90 [1] : vector<10x128xf32> to vector<10xf32>
    %206 = vector.shape_cast %205 : vector<10xf32> to vector<10x1xf32>
    %cst_91 = arith.constant 1.000000e-01 : f32
    %207 = vector.broadcast %cst_91 : f32 to vector<10x1xf32>
    %208 = arith.mulf %206, %207 : vector<10x1xf32>
    %cst_92 = arith.constant 9.99999974E-6 : f32
    %209 = vector.broadcast %cst_92 : f32 to vector<10x1xf32>
    %210 = arith.addf %208, %209 : vector<10x1xf32>
    %211 = math.rsqrt %210 : vector<10x1xf32>
    %212 = vector.broadcast %211 : vector<10x1xf32> to vector<10x128xf32>
    %213 = arith.mulf %203, %212 : vector<10x128xf32>
    %214 = vector.broadcast %45 : vector<1x128xf32> to vector<10x128xf32>
    %215 = arith.mulf %213, %214 : vector<10x128xf32>
    %216 = vector.broadcast %47 : vector<1x128xf32> to vector<10x128xf32>
    %217 = arith.addf %215, %216 : vector<10x128xf32>
    %c6_93 = arith.constant 6 : index
    %c0_94 = arith.constant 0 : index
    %c0_95 = arith.constant 0 : index
    %218 = vector.load %arg5[%c6_93, %c0_94, %c0_95] : memref<12x128x128xf32, #tpu.memory_space<vmem>>, vector<1x128x128xf32>
    %219 = vector.shape_cast %218 : vector<1x128x128xf32> to vector<128x128xf32>
    %c7_96 = arith.constant 7 : index
    %c0_97 = arith.constant 0 : index
    %c0_98 = arith.constant 0 : index
    %220 = vector.load %arg5[%c7_96, %c0_97, %c0_98] : memref<12x128x128xf32, #tpu.memory_space<vmem>>, vector<1x128x128xf32>
    %221 = vector.shape_cast %220 : vector<1x128x128xf32> to vector<128x128xf32>
    %c8_99 = arith.constant 8 : index
    %c0_100 = arith.constant 0 : index
    %c0_101 = arith.constant 0 : index
    %222 = vector.load %arg5[%c8_99, %c0_100, %c0_101] : memref<12x128x128xf32, #tpu.memory_space<vmem>>, vector<1x128x128xf32>
    %223 = vector.shape_cast %222 : vector<1x128x128xf32> to vector<128x128xf32>
    %c9_102 = arith.constant 9 : index
    %c0_103 = arith.constant 0 : index
    %c0_104 = arith.constant 0 : index
    %224 = vector.load %arg5[%c9_102, %c0_103, %c0_104] : memref<12x128x128xf32, #tpu.memory_space<vmem>>, vector<1x128x128xf32>
    %225 = vector.shape_cast %224 : vector<1x128x128xf32> to vector<128x128xf32>
    %c10 = arith.constant 10 : index
    %c0_105 = arith.constant 0 : index
    %c0_106 = arith.constant 0 : index
    %226 = vector.load %arg5[%c10, %c0_105, %c0_106] : memref<12x128x128xf32, #tpu.memory_space<vmem>>, vector<1x128x128xf32>
    %227 = vector.shape_cast %226 : vector<1x128x128xf32> to vector<128x128xf32>
    %c11 = arith.constant 11 : index
    %c0_107 = arith.constant 0 : index
    %c0_108 = arith.constant 0 : index
    %228 = vector.load %arg5[%c11, %c0_107, %c0_108] : memref<12x128x128xf32, #tpu.memory_space<vmem>>, vector<1x128x128xf32>
    %229 = vector.shape_cast %228 : vector<1x128x128xf32> to vector<128x128xf32>
    %c10_109 = arith.constant 10 : index
    %c0_110 = arith.constant 0 : index
    %c0_111 = arith.constant 0 : index
    %230 = vector.load %arg6[%c10_109, %c0_110, %c0_111] : memref<20x1x128xf32, #tpu.memory_space<vmem>>, vector<1x1x128xf32>
    %231 = vector.shape_cast %230 : vector<1x1x128xf32> to vector<1x128xf32>
    %c11_112 = arith.constant 11 : index
    %c0_113 = arith.constant 0 : index
    %c0_114 = arith.constant 0 : index
    %232 = vector.load %arg6[%c11_112, %c0_113, %c0_114] : memref<20x1x128xf32, #tpu.memory_space<vmem>>, vector<1x1x128xf32>
    %233 = vector.shape_cast %232 : vector<1x1x128xf32> to vector<1x128xf32>
    %c12 = arith.constant 12 : index
    %c0_115 = arith.constant 0 : index
    %c0_116 = arith.constant 0 : index
    %234 = vector.load %arg6[%c12, %c0_115, %c0_116] : memref<20x1x128xf32, #tpu.memory_space<vmem>>, vector<1x1x128xf32>
    %235 = vector.shape_cast %234 : vector<1x1x128xf32> to vector<1x128xf32>
    %c13 = arith.constant 13 : index
    %c0_117 = arith.constant 0 : index
    %c0_118 = arith.constant 0 : index
    %236 = vector.load %arg6[%c13, %c0_117, %c0_118] : memref<20x1x128xf32, #tpu.memory_space<vmem>>, vector<1x1x128xf32>
    %237 = vector.shape_cast %236 : vector<1x1x128xf32> to vector<1x128xf32>
    %c14 = arith.constant 14 : index
    %c0_119 = arith.constant 0 : index
    %c0_120 = arith.constant 0 : index
    %238 = vector.load %arg6[%c14, %c0_119, %c0_120] : memref<20x1x128xf32, #tpu.memory_space<vmem>>, vector<1x1x128xf32>
    %239 = vector.shape_cast %238 : vector<1x1x128xf32> to vector<1x128xf32>
    %c15 = arith.constant 15 : index
    %c0_121 = arith.constant 0 : index
    %c0_122 = arith.constant 0 : index
    %240 = vector.load %arg6[%c15, %c0_121, %c0_122] : memref<20x1x128xf32, #tpu.memory_space<vmem>>, vector<1x1x128xf32>
    %241 = vector.shape_cast %240 : vector<1x1x128xf32> to vector<1x128xf32>
    %c16 = arith.constant 16 : index
    %c0_123 = arith.constant 0 : index
    %c0_124 = arith.constant 0 : index
    %242 = vector.load %arg6[%c16, %c0_123, %c0_124] : memref<20x1x128xf32, #tpu.memory_space<vmem>>, vector<1x1x128xf32>
    %243 = vector.shape_cast %242 : vector<1x1x128xf32> to vector<1x128xf32>
    %c17 = arith.constant 17 : index
    %c0_125 = arith.constant 0 : index
    %c0_126 = arith.constant 0 : index
    %244 = vector.load %arg6[%c17, %c0_125, %c0_126] : memref<20x1x128xf32, #tpu.memory_space<vmem>>, vector<1x1x128xf32>
    %245 = vector.shape_cast %244 : vector<1x1x128xf32> to vector<1x128xf32>
    %c18 = arith.constant 18 : index
    %c0_127 = arith.constant 0 : index
    %c0_128 = arith.constant 0 : index
    %246 = vector.load %arg6[%c18, %c0_127, %c0_128] : memref<20x1x128xf32, #tpu.memory_space<vmem>>, vector<1x1x128xf32>
    %247 = vector.shape_cast %246 : vector<1x1x128xf32> to vector<1x128xf32>
    %c19 = arith.constant 19 : index
    %c0_129 = arith.constant 0 : index
    %c0_130 = arith.constant 0 : index
    %248 = vector.load %arg6[%c19, %c0_129, %c0_130] : memref<20x1x128xf32, #tpu.memory_space<vmem>>, vector<1x1x128xf32>
    %249 = vector.shape_cast %248 : vector<1x1x128xf32> to vector<1x128xf32>
    %cst_131 = arith.constant dense<0.000000e+00> : vector<10x128xf32>
    %250 = tpu.matmul %149, %219, %cst_131 {dimension_numbers = #tpu.dot_dimension_numbers<[1], [0], [0], [1], [0, 0, 1, 1], [], []>} : vector<10x128xf32>, vector<128x128xf32>, vector<10x128xf32> -> vector<10x128xf32>
    %251 = vector.broadcast %231 : vector<1x128xf32> to vector<10x128xf32>
    %252 = arith.addf %250, %251 : vector<10x128xf32>
    %cst_132 = arith.constant dense<0.000000e+00> : vector<10x128xf32>
    %253 = tpu.matmul %217, %219, %cst_132 {dimension_numbers = #tpu.dot_dimension_numbers<[1], [0], [0], [1], [0, 0, 1, 1], [], []>} : vector<10x128xf32>, vector<128x128xf32>, vector<10x128xf32> -> vector<10x128xf32>
    %254 = vector.broadcast %231 : vector<1x128xf32> to vector<10x128xf32>
    %255 = arith.addf %253, %254 : vector<10x128xf32>
    %cst_133 = arith.constant dense<0.000000e+00> : vector<10x128xf32>
    %256 = tpu.matmul %149, %221, %cst_133 {dimension_numbers = #tpu.dot_dimension_numbers<[1], [0], [0], [1], [0, 0, 1, 1], [], []>} : vector<10x128xf32>, vector<128x128xf32>, vector<10x128xf32> -> vector<10x128xf32>
    %257 = vector.broadcast %233 : vector<1x128xf32> to vector<10x128xf32>
    %258 = arith.addf %256, %257 : vector<10x128xf32>
    %cst_134 = arith.constant dense<0.000000e+00> : vector<10x128xf32>
    %259 = tpu.matmul %217, %221, %cst_134 {dimension_numbers = #tpu.dot_dimension_numbers<[1], [0], [0], [1], [0, 0, 1, 1], [], []>} : vector<10x128xf32>, vector<128x128xf32>, vector<10x128xf32> -> vector<10x128xf32>
    %260 = vector.broadcast %233 : vector<1x128xf32> to vector<10x128xf32>
    %261 = arith.addf %259, %260 : vector<10x128xf32>
    %cst_135 = arith.constant dense<0.000000e+00> : vector<10x128xf32>
    %262 = tpu.matmul %149, %223, %cst_135 {dimension_numbers = #tpu.dot_dimension_numbers<[1], [0], [0], [1], [0, 0, 1, 1], [], []>} : vector<10x128xf32>, vector<128x128xf32>, vector<10x128xf32> -> vector<10x128xf32>
    %263 = vector.broadcast %235 : vector<1x128xf32> to vector<10x128xf32>
    %264 = arith.addf %262, %263 : vector<10x128xf32>
    %cst_136 = arith.constant dense<0.000000e+00> : vector<10x128xf32>
    %265 = tpu.matmul %217, %223, %cst_136 {dimension_numbers = #tpu.dot_dimension_numbers<[1], [0], [0], [1], [0, 0, 1, 1], [], []>} : vector<10x128xf32>, vector<128x128xf32>, vector<10x128xf32> -> vector<10x128xf32>
    %266 = vector.broadcast %235 : vector<1x128xf32> to vector<10x128xf32>
    %267 = arith.addf %265, %266 : vector<10x128xf32>
    %268 = arith.mulf %252, %258 : vector<10x128xf32>
    %cst_137 = arith.constant dense<0.000000e+00> : vector<10x128xf32>
    %269 = tpu.matmul %268, %7, %cst_137 {dimension_numbers = #tpu.dot_dimension_numbers<[1], [0], [0], [1], [0, 0, 1, 1], [], []>} : vector<10x128xf32>, vector<128x128xf32>, vector<10x128xf32> -> vector<10x128xf32>
    %cst_138 = arith.constant 0.44721359 : f32
    %270 = vector.broadcast %cst_138 : f32 to vector<10x128xf32>
    %271 = arith.mulf %269, %270 : vector<10x128xf32>
    %272 = arith.mulf %252, %261 : vector<10x128xf32>
    %cst_139 = arith.constant dense<0.000000e+00> : vector<10x128xf32>
    %273 = tpu.matmul %272, %7, %cst_139 {dimension_numbers = #tpu.dot_dimension_numbers<[1], [0], [0], [1], [0, 0, 1, 1], [], []>} : vector<10x128xf32>, vector<128x128xf32>, vector<10x128xf32> -> vector<10x128xf32>
    %cst_140 = arith.constant 0.44721359 : f32
    %274 = vector.broadcast %cst_140 : f32 to vector<10x128xf32>
    %275 = arith.mulf %273, %274 : vector<10x128xf32>
    %276 = arith.mulf %255, %258 : vector<10x128xf32>
    %cst_141 = arith.constant dense<0.000000e+00> : vector<10x128xf32>
    %277 = tpu.matmul %276, %7, %cst_141 {dimension_numbers = #tpu.dot_dimension_numbers<[1], [0], [0], [1], [0, 0, 1, 1], [], []>} : vector<10x128xf32>, vector<128x128xf32>, vector<10x128xf32> -> vector<10x128xf32>
    %cst_142 = arith.constant 0.44721359 : f32
    %278 = vector.broadcast %cst_142 : f32 to vector<10x128xf32>
    %279 = arith.mulf %277, %278 : vector<10x128xf32>
    %280 = arith.mulf %255, %261 : vector<10x128xf32>
    %cst_143 = arith.constant dense<0.000000e+00> : vector<10x128xf32>
    %281 = tpu.matmul %280, %7, %cst_143 {dimension_numbers = #tpu.dot_dimension_numbers<[1], [0], [0], [1], [0, 0, 1, 1], [], []>} : vector<10x128xf32>, vector<128x128xf32>, vector<10x128xf32> -> vector<10x128xf32>
    %cst_144 = arith.constant 0.44721359 : f32
    %282 = vector.broadcast %cst_144 : f32 to vector<10x128xf32>
    %283 = arith.mulf %281, %282 : vector<10x128xf32>
    %284 = arith.maximumf %271, %275 : vector<10x128xf32>
    %285 = arith.subf %271, %284 : vector<10x128xf32>
    %286 = math.exp %285 : vector<10x128xf32>
    %287 = arith.subf %275, %284 : vector<10x128xf32>
    %288 = math.exp %287 : vector<10x128xf32>
    %289 = arith.addf %286, %288 : vector<10x128xf32>
    %290 = arith.mulf %286, %264 : vector<10x128xf32>
    %291 = arith.mulf %288, %267 : vector<10x128xf32>
    %292 = arith.addf %290, %291 : vector<10x128xf32>
    %293 = tpu.reciprocal %289 {approx = true} : vector<10x128xf32> -> vector<10x128xf32>
    %294 = arith.mulf %292, %293 : vector<10x128xf32>
    %cst_145 = arith.constant dense<0.000000e+00> : vector<10x128xf32>
    %295 = tpu.matmul %294, %225, %cst_145 {dimension_numbers = #tpu.dot_dimension_numbers<[1], [0], [0], [1], [0, 0, 1, 1], [], []>} : vector<10x128xf32>, vector<128x128xf32>, vector<10x128xf32> -> vector<10x128xf32>
    %296 = vector.broadcast %237 : vector<1x128xf32> to vector<10x128xf32>
    %297 = arith.addf %295, %296 : vector<10x128xf32>
    %298 = arith.addf %149, %297 : vector<10x128xf32>
    %cst_146 = arith.constant dense<0.000000e+00> : vector<10xf32>
    %299 = vector.multi_reduction <add>, %298, %cst_146 [1] : vector<10x128xf32> to vector<10xf32>
    %300 = vector.shape_cast %299 : vector<10xf32> to vector<10x1xf32>
    %cst_147 = arith.constant 1.000000e-01 : f32
    %301 = vector.broadcast %cst_147 : f32 to vector<10x1xf32>
    %302 = arith.mulf %300, %301 : vector<10x1xf32>
    %303 = vector.broadcast %302 : vector<10x1xf32> to vector<10x128xf32>
    %304 = arith.subf %298, %303 : vector<10x128xf32>
    %305 = vector.broadcast %4 : vector<1x128xf32> to vector<10x128xf32>
    %306 = arith.mulf %304, %305 : vector<10x128xf32>
    %307 = arith.mulf %306, %306 : vector<10x128xf32>
    %cst_148 = arith.constant dense<0.000000e+00> : vector<10xf32>
    %308 = vector.multi_reduction <add>, %307, %cst_148 [1] : vector<10x128xf32> to vector<10xf32>
    %309 = vector.shape_cast %308 : vector<10xf32> to vector<10x1xf32>
    %cst_149 = arith.constant 1.000000e-01 : f32
    %310 = vector.broadcast %cst_149 : f32 to vector<10x1xf32>
    %311 = arith.mulf %309, %310 : vector<10x1xf32>
    %cst_150 = arith.constant 9.99999974E-6 : f32
    %312 = vector.broadcast %cst_150 : f32 to vector<10x1xf32>
    %313 = arith.addf %311, %312 : vector<10x1xf32>
    %314 = math.rsqrt %313 : vector<10x1xf32>
    %315 = vector.broadcast %314 : vector<10x1xf32> to vector<10x128xf32>
    %316 = arith.mulf %306, %315 : vector<10x128xf32>
    %317 = vector.broadcast %243 : vector<1x128xf32> to vector<10x128xf32>
    %318 = arith.mulf %316, %317 : vector<10x128xf32>
    %319 = vector.broadcast %245 : vector<1x128xf32> to vector<10x128xf32>
    %320 = arith.addf %318, %319 : vector<10x128xf32>
    %cst_151 = arith.constant dense<0.000000e+00> : vector<10x128xf32>
    %321 = tpu.matmul %320, %227, %cst_151 {dimension_numbers = #tpu.dot_dimension_numbers<[1], [0], [0], [1], [0, 0, 1, 1], [], []>} : vector<10x128xf32>, vector<128x128xf32>, vector<10x128xf32> -> vector<10x128xf32>
    %322 = vector.broadcast %239 : vector<1x128xf32> to vector<10x128xf32>
    %323 = arith.addf %321, %322 : vector<10x128xf32>
    %cst_152 = arith.constant 0.000000e+00 : f32
    %324 = vector.broadcast %cst_152 : f32 to vector<10x128xf32>
    %325 = arith.maximumf %323, %324 : vector<10x128xf32>
    %cst_153 = arith.constant dense<0.000000e+00> : vector<10x128xf32>
    %326 = tpu.matmul %325, %229, %cst_153 {dimension_numbers = #tpu.dot_dimension_numbers<[1], [0], [0], [1], [0, 0, 1, 1], [], []>} : vector<10x128xf32>, vector<128x128xf32>, vector<10x128xf32> -> vector<10x128xf32>
    %327 = vector.broadcast %241 : vector<1x128xf32> to vector<10x128xf32>
    %328 = arith.addf %326, %327 : vector<10x128xf32>
    %329 = arith.addf %320, %328 : vector<10x128xf32>
    %cst_154 = arith.constant dense<0.000000e+00> : vector<10xf32>
    %330 = vector.multi_reduction <add>, %329, %cst_154 [1] : vector<10x128xf32> to vector<10xf32>
    %331 = vector.shape_cast %330 : vector<10xf32> to vector<10x1xf32>
    %cst_155 = arith.constant 1.000000e-01 : f32
    %332 = vector.broadcast %cst_155 : f32 to vector<10x1xf32>
    %333 = arith.mulf %331, %332 : vector<10x1xf32>
    %334 = vector.broadcast %333 : vector<10x1xf32> to vector<10x128xf32>
    %335 = arith.subf %329, %334 : vector<10x128xf32>
    %336 = vector.broadcast %4 : vector<1x128xf32> to vector<10x128xf32>
    %337 = arith.mulf %335, %336 : vector<10x128xf32>
    %338 = arith.mulf %337, %337 : vector<10x128xf32>
    %cst_156 = arith.constant dense<0.000000e+00> : vector<10xf32>
    %339 = vector.multi_reduction <add>, %338, %cst_156 [1] : vector<10x128xf32> to vector<10xf32>
    %340 = vector.shape_cast %339 : vector<10xf32> to vector<10x1xf32>
    %cst_157 = arith.constant 1.000000e-01 : f32
    %341 = vector.broadcast %cst_157 : f32 to vector<10x1xf32>
    %342 = arith.mulf %340, %341 : vector<10x1xf32>
    %cst_158 = arith.constant 9.99999974E-6 : f32
    %343 = vector.broadcast %cst_158 : f32 to vector<10x1xf32>
    %344 = arith.addf %342, %343 : vector<10x1xf32>
    %345 = math.rsqrt %344 : vector<10x1xf32>
    %346 = vector.broadcast %345 : vector<10x1xf32> to vector<10x128xf32>
    %347 = arith.mulf %337, %346 : vector<10x128xf32>
    %348 = vector.broadcast %247 : vector<1x128xf32> to vector<10x128xf32>
    %349 = arith.mulf %347, %348 : vector<10x128xf32>
    %350 = vector.broadcast %249 : vector<1x128xf32> to vector<10x128xf32>
    %351 = arith.addf %349, %350 : vector<10x128xf32>
    %352 = arith.maximumf %279, %283 : vector<10x128xf32>
    %353 = arith.subf %279, %352 : vector<10x128xf32>
    %354 = math.exp %353 : vector<10x128xf32>
    %355 = arith.subf %283, %352 : vector<10x128xf32>
    %356 = math.exp %355 : vector<10x128xf32>
    %357 = arith.addf %354, %356 : vector<10x128xf32>
    %358 = arith.mulf %354, %264 : vector<10x128xf32>
    %359 = arith.mulf %356, %267 : vector<10x128xf32>
    %360 = arith.addf %358, %359 : vector<10x128xf32>
    %361 = tpu.reciprocal %357 {approx = true} : vector<10x128xf32> -> vector<10x128xf32>
    %362 = arith.mulf %360, %361 : vector<10x128xf32>
    %cst_159 = arith.constant dense<0.000000e+00> : vector<10x128xf32>
    %363 = tpu.matmul %362, %225, %cst_159 {dimension_numbers = #tpu.dot_dimension_numbers<[1], [0], [0], [1], [0, 0, 1, 1], [], []>} : vector<10x128xf32>, vector<128x128xf32>, vector<10x128xf32> -> vector<10x128xf32>
    %364 = vector.broadcast %237 : vector<1x128xf32> to vector<10x128xf32>
    %365 = arith.addf %363, %364 : vector<10x128xf32>
    %366 = arith.addf %217, %365 : vector<10x128xf32>
    %cst_160 = arith.constant dense<0.000000e+00> : vector<10xf32>
    %367 = vector.multi_reduction <add>, %366, %cst_160 [1] : vector<10x128xf32> to vector<10xf32>
    %368 = vector.shape_cast %367 : vector<10xf32> to vector<10x1xf32>
    %cst_161 = arith.constant 1.000000e-01 : f32
    %369 = vector.broadcast %cst_161 : f32 to vector<10x1xf32>
    %370 = arith.mulf %368, %369 : vector<10x1xf32>
    %371 = vector.broadcast %370 : vector<10x1xf32> to vector<10x128xf32>
    %372 = arith.subf %366, %371 : vector<10x128xf32>
    %373 = vector.broadcast %4 : vector<1x128xf32> to vector<10x128xf32>
    %374 = arith.mulf %372, %373 : vector<10x128xf32>
    %375 = arith.mulf %374, %374 : vector<10x128xf32>
    %cst_162 = arith.constant dense<0.000000e+00> : vector<10xf32>
    %376 = vector.multi_reduction <add>, %375, %cst_162 [1] : vector<10x128xf32> to vector<10xf32>
    %377 = vector.shape_cast %376 : vector<10xf32> to vector<10x1xf32>
    %cst_163 = arith.constant 1.000000e-01 : f32
    %378 = vector.broadcast %cst_163 : f32 to vector<10x1xf32>
    %379 = arith.mulf %377, %378 : vector<10x1xf32>
    %cst_164 = arith.constant 9.99999974E-6 : f32
    %380 = vector.broadcast %cst_164 : f32 to vector<10x1xf32>
    %381 = arith.addf %379, %380 : vector<10x1xf32>
    %382 = math.rsqrt %381 : vector<10x1xf32>
    %383 = vector.broadcast %382 : vector<10x1xf32> to vector<10x128xf32>
    %384 = arith.mulf %374, %383 : vector<10x128xf32>
    %385 = vector.broadcast %243 : vector<1x128xf32> to vector<10x128xf32>
    %386 = arith.mulf %384, %385 : vector<10x128xf32>
    %387 = vector.broadcast %245 : vector<1x128xf32> to vector<10x128xf32>
    %388 = arith.addf %386, %387 : vector<10x128xf32>
    %cst_165 = arith.constant dense<0.000000e+00> : vector<10x128xf32>
    %389 = tpu.matmul %388, %227, %cst_165 {dimension_numbers = #tpu.dot_dimension_numbers<[1], [0], [0], [1], [0, 0, 1, 1], [], []>} : vector<10x128xf32>, vector<128x128xf32>, vector<10x128xf32> -> vector<10x128xf32>
    %390 = vector.broadcast %239 : vector<1x128xf32> to vector<10x128xf32>
    %391 = arith.addf %389, %390 : vector<10x128xf32>
    %cst_166 = arith.constant 0.000000e+00 : f32
    %392 = vector.broadcast %cst_166 : f32 to vector<10x128xf32>
    %393 = arith.maximumf %391, %392 : vector<10x128xf32>
    %cst_167 = arith.constant dense<0.000000e+00> : vector<10x128xf32>
    %394 = tpu.matmul %393, %229, %cst_167 {dimension_numbers = #tpu.dot_dimension_numbers<[1], [0], [0], [1], [0, 0, 1, 1], [], []>} : vector<10x128xf32>, vector<128x128xf32>, vector<10x128xf32> -> vector<10x128xf32>
    %395 = vector.broadcast %241 : vector<1x128xf32> to vector<10x128xf32>
    %396 = arith.addf %394, %395 : vector<10x128xf32>
    %397 = arith.addf %388, %396 : vector<10x128xf32>
    %cst_168 = arith.constant dense<0.000000e+00> : vector<10xf32>
    %398 = vector.multi_reduction <add>, %397, %cst_168 [1] : vector<10x128xf32> to vector<10xf32>
    %399 = vector.shape_cast %398 : vector<10xf32> to vector<10x1xf32>
    %cst_169 = arith.constant 1.000000e-01 : f32
    %400 = vector.broadcast %cst_169 : f32 to vector<10x1xf32>
    %401 = arith.mulf %399, %400 : vector<10x1xf32>
    %402 = vector.broadcast %401 : vector<10x1xf32> to vector<10x128xf32>
    %403 = arith.subf %397, %402 : vector<10x128xf32>
    %404 = vector.broadcast %4 : vector<1x128xf32> to vector<10x128xf32>
    %405 = arith.mulf %403, %404 : vector<10x128xf32>
    %406 = arith.mulf %405, %405 : vector<10x128xf32>
    %cst_170 = arith.constant dense<0.000000e+00> : vector<10xf32>
    %407 = vector.multi_reduction <add>, %406, %cst_170 [1] : vector<10x128xf32> to vector<10xf32>
    %408 = vector.shape_cast %407 : vector<10xf32> to vector<10x1xf32>
    %cst_171 = arith.constant 1.000000e-01 : f32
    %409 = vector.broadcast %cst_171 : f32 to vector<10x1xf32>
    %410 = arith.mulf %408, %409 : vector<10x1xf32>
    %cst_172 = arith.constant 9.99999974E-6 : f32
    %411 = vector.broadcast %cst_172 : f32 to vector<10x1xf32>
    %412 = arith.addf %410, %411 : vector<10x1xf32>
    %413 = math.rsqrt %412 : vector<10x1xf32>
    %414 = vector.broadcast %413 : vector<10x1xf32> to vector<10x128xf32>
    %415 = arith.mulf %405, %414 : vector<10x128xf32>
    %416 = vector.broadcast %247 : vector<1x128xf32> to vector<10x128xf32>
    %417 = arith.mulf %415, %416 : vector<10x128xf32>
    %418 = vector.broadcast %249 : vector<1x128xf32> to vector<10x128xf32>
    %419 = arith.addf %417, %418 : vector<10x128xf32>
    %c0_173 = arith.constant 0 : index
    %c0_174 = arith.constant 0 : index
    %c0_175 = arith.constant 0 : index
    %420 = vector.load %arg7[%c0_173, %c0_174, %c0_175] : memref<3x128x128xf32, #tpu.memory_space<vmem>>, vector<1x128x128xf32>
    %421 = vector.shape_cast %420 : vector<1x128x128xf32> to vector<128x128xf32>
    %c1_176 = arith.constant 1 : index
    %c0_177 = arith.constant 0 : index
    %c0_178 = arith.constant 0 : index
    %422 = vector.load %arg7[%c1_176, %c0_177, %c0_178] : memref<3x128x128xf32, #tpu.memory_space<vmem>>, vector<1x128x128xf32>
    %423 = vector.shape_cast %422 : vector<1x128x128xf32> to vector<128x128xf32>
    %c2_179 = arith.constant 2 : index
    %c0_180 = arith.constant 0 : index
    %c0_181 = arith.constant 0 : index
    %424 = vector.load %arg7[%c2_179, %c0_180, %c0_181] : memref<3x128x128xf32, #tpu.memory_space<vmem>>, vector<1x128x128xf32>
    %425 = vector.shape_cast %424 : vector<1x128x128xf32> to vector<128x128xf32>
    %c0_182 = arith.constant 0 : index
    %c0_183 = arith.constant 0 : index
    %c0_184 = arith.constant 0 : index
    %426 = vector.load %arg8[%c0_182, %c0_183, %c0_184] : memref<5x1x128xf32, #tpu.memory_space<vmem>>, vector<1x1x128xf32>
    %427 = vector.shape_cast %426 : vector<1x1x128xf32> to vector<1x128xf32>
    %c1_185 = arith.constant 1 : index
    %c0_186 = arith.constant 0 : index
    %c0_187 = arith.constant 0 : index
    %428 = vector.load %arg8[%c1_185, %c0_186, %c0_187] : memref<5x1x128xf32, #tpu.memory_space<vmem>>, vector<1x1x128xf32>
    %429 = vector.shape_cast %428 : vector<1x1x128xf32> to vector<1x128xf32>
    %c2_188 = arith.constant 2 : index
    %c0_189 = arith.constant 0 : index
    %c0_190 = arith.constant 0 : index
    %430 = vector.load %arg8[%c2_188, %c0_189, %c0_190] : memref<5x1x128xf32, #tpu.memory_space<vmem>>, vector<1x1x128xf32>
    %431 = vector.shape_cast %430 : vector<1x1x128xf32> to vector<1x128xf32>
    %c3_191 = arith.constant 3 : index
    %c0_192 = arith.constant 0 : index
    %c0_193 = arith.constant 0 : index
    %432 = vector.load %arg8[%c3_191, %c0_192, %c0_193] : memref<5x1x128xf32, #tpu.memory_space<vmem>>, vector<1x1x128xf32>
    %433 = vector.shape_cast %432 : vector<1x1x128xf32> to vector<1x128xf32>
    %c4_194 = arith.constant 4 : index
    %c0_195 = arith.constant 0 : index
    %c0_196 = arith.constant 0 : index
    %434 = vector.load %arg8[%c4_194, %c0_195, %c0_196] : memref<5x1x128xf32, #tpu.memory_space<vmem>>, vector<1x1x128xf32>
    %435 = vector.shape_cast %434 : vector<1x1x128xf32> to vector<1x128xf32>
    %c0_197 = arith.constant 0 : index
    %c0_198 = arith.constant 0 : index
    %436 = vector.load %arg9[%c0_197, %c0_198] : memref<10x128xf32, #tpu.memory_space<vmem>>, vector<10x128xf32>
    %c0_199 = arith.constant 0 : index
    %c0_200 = arith.constant 0 : index
    %437 = vector.load %arg10[%c0_199, %c0_200] : memref<128x128xf32, #tpu.memory_space<vmem>>, vector<128x128xf32>
    %c0_201 = arith.constant 0 : index
    %c0_202 = arith.constant 0 : index
    %438 = vector.load %arg11[%c0_201, %c0_202] : memref<128x128xf32, #tpu.memory_space<vmem>>, vector<128x128xf32>
    %cst_203 = arith.constant dense<0.000000e+00> : vector<10x128xf32>
    %439 = tpu.matmul %351, %421, %cst_203 {dimension_numbers = #tpu.dot_dimension_numbers<[1], [0], [0], [1], [0, 0, 1, 1], [], []>} : vector<10x128xf32>, vector<128x128xf32>, vector<10x128xf32> -> vector<10x128xf32>
    %440 = vector.broadcast %427 : vector<1x128xf32> to vector<10x128xf32>
    %441 = arith.addf %439, %440 : vector<10x128xf32>
    %cst_204 = arith.constant dense<0.000000e+00> : vector<10x128xf32>
    %442 = tpu.matmul %351, %423, %cst_204 {dimension_numbers = #tpu.dot_dimension_numbers<[1], [0], [0], [1], [0, 0, 1, 1], [], []>} : vector<10x128xf32>, vector<128x128xf32>, vector<10x128xf32> -> vector<10x128xf32>
    %443 = vector.broadcast %429 : vector<1x128xf32> to vector<10x128xf32>
    %444 = arith.addf %442, %443 : vector<10x128xf32>
    %cst_205 = arith.constant dense<0.000000e+00> : vector<10x128xf32>
    %445 = tpu.matmul %351, %425, %cst_205 {dimension_numbers = #tpu.dot_dimension_numbers<[1], [0], [0], [1], [0, 0, 1, 1], [], []>} : vector<10x128xf32>, vector<128x128xf32>, vector<10x128xf32> -> vector<10x128xf32>
    %446 = vector.broadcast %431 : vector<1x128xf32> to vector<10x128xf32>
    %447 = arith.addf %445, %446 : vector<10x128xf32>
    %cst_206 = arith.constant dense<0.000000e+00> : vector<10x10xf32>
    %448 = tpu.matmul %441, %444, %cst_206 {dimension_numbers = #tpu.dot_dimension_numbers<[1], [1], [0], [0], [0, 0, 1, 0], [], []>} : vector<10x128xf32>, vector<10x128xf32>, vector<10x10xf32> -> vector<10x10xf32>
    %cst_207 = arith.constant 0.316227764 : f32
    %449 = vector.broadcast %cst_207 : f32 to vector<10x10xf32>
    %450 = arith.mulf %448, %449 : vector<10x10xf32>
    %cst_208 = arith.constant dense<0xFF800000> : vector<10xf32>
    %451 = vector.multi_reduction <maximumf>, %450, %cst_208 [1] : vector<10x10xf32> to vector<10xf32>
    %452 = vector.shape_cast %451 : vector<10xf32> to vector<10x1xf32>
    %453 = vector.broadcast %452 : vector<10x1xf32> to vector<10x10xf32>
    %454 = arith.subf %450, %453 : vector<10x10xf32>
    %455 = math.exp %454 : vector<10x10xf32>
    %cst_209 = arith.constant dense<0.000000e+00> : vector<10xf32>
    %456 = vector.multi_reduction <add>, %455, %cst_209 [1] : vector<10x10xf32> to vector<10xf32>
    %457 = vector.shape_cast %456 : vector<10xf32> to vector<10x1xf32>
    %458 = tpu.reciprocal %457 {approx = true} : vector<10x1xf32> -> vector<10x1xf32>
    %459 = vector.broadcast %458 : vector<10x1xf32> to vector<10x10xf32>
    %460 = arith.mulf %455, %459 : vector<10x10xf32>
    %cst_210 = arith.constant dense<0.000000e+00> : vector<10x128xf32>
    %461 = tpu.matmul %460, %436, %cst_210 {dimension_numbers = #tpu.dot_dimension_numbers<[1], [0], [0], [1], [0, 0, 1, 1], [], []>} : vector<10x10xf32>, vector<10x128xf32>, vector<10x128xf32> -> vector<10x128xf32>
    %462 = vector.extract_strided_slice %461 {offsets = [0, 0], sizes = [10, 10], strides = [1, 1]} : vector<10x128xf32> to vector<10x10xf32>
    %cst_211 = arith.constant dense<0.000000e+00> : vector<10x128xf32>
    %463 = tpu.matmul %462, %447, %cst_211 {dimension_numbers = #tpu.dot_dimension_numbers<[1], [0], [0], [1], [0, 0, 1, 1], [], []>} : vector<10x10xf32>, vector<10x128xf32>, vector<10x128xf32> -> vector<10x128xf32>
    %464 = vector.extract_strided_slice %463 {offsets = [0, 0], sizes = [1, 128], strides = [1, 1]} : vector<10x128xf32> to vector<1x128xf32>
    %cst_212 = arith.constant dense<0.000000e+00> : vector<1x128xf32>
    %465 = tpu.matmul %464, %437, %cst_212 {dimension_numbers = #tpu.dot_dimension_numbers<[1], [0], [0], [1], [0, 0, 1, 1], [], []>} : vector<1x128xf32>, vector<128x128xf32>, vector<1x128xf32> -> vector<1x128xf32>
    %466 = arith.addf %465, %433 : vector<1x128xf32>
    %cst_213 = arith.constant dense<0.000000e+00> : vector<1x128xf32>
    %467 = tpu.matmul %466, %438, %cst_213 {dimension_numbers = #tpu.dot_dimension_numbers<[1], [0], [0], [1], [0, 0, 1, 1], [], []>} : vector<1x128xf32>, vector<128x128xf32>, vector<1x128xf32> -> vector<1x128xf32>
    %468 = arith.addf %467, %435 : vector<1x128xf32>
    %c0_214 = arith.constant 0 : index
    %c0_215 = arith.constant 0 : index
    %c0_216 = arith.constant 0 : index
    %469 = vector.load %arg12[%c0_214, %c0_215, %c0_216] : memref<2x1x128xf32, #tpu.memory_space<vmem>>, vector<1x1x128xf32>
    %470 = vector.shape_cast %469 : vector<1x1x128xf32> to vector<1x128xf32>
    %471 = vector.shape_cast %468 : vector<1x128xf32> to vector<1x1x128xf32>
    tpu.vector_store %arg12[%c0_214, %c0_215, %c0_216], %471 {strides = array<i32>} : memref<2x1x128xf32, #tpu.memory_space<vmem>>, vector<1x1x128xf32>,
    %cst_217 = arith.constant dense<0.000000e+00> : vector<10x128xf32>
    %472 = tpu.matmul %419, %421, %cst_217 {dimension_numbers = #tpu.dot_dimension_numbers<[1], [0], [0], [1], [0, 0, 1, 1], [], []>} : vector<10x128xf32>, vector<128x128xf32>, vector<10x128xf32> -> vector<10x128xf32>
    %473 = vector.broadcast %427 : vector<1x128xf32> to vector<10x128xf32>
    %474 = arith.addf %472, %473 : vector<10x128xf32>
    %cst_218 = arith.constant dense<0.000000e+00> : vector<10x128xf32>
    %475 = tpu.matmul %419, %423, %cst_218 {dimension_numbers = #tpu.dot_dimension_numbers<[1], [0], [0], [1], [0, 0, 1, 1], [], []>} : vector<10x128xf32>, vector<128x128xf32>, vector<10x128xf32> -> vector<10x128xf32>
    %476 = vector.broadcast %429 : vector<1x128xf32> to vector<10x128xf32>
    %477 = arith.addf %475, %476 : vector<10x128xf32>
    %cst_219 = arith.constant dense<0.000000e+00> : vector<10x128xf32>
    %478 = tpu.matmul %419, %425, %cst_219 {dimension_numbers = #tpu.dot_dimension_numbers<[1], [0], [0], [1], [0, 0, 1, 1], [], []>} : vector<10x128xf32>, vector<128x128xf32>, vector<10x128xf32> -> vector<10x128xf32>
    %479 = vector.broadcast %431 : vector<1x128xf32> to vector<10x128xf32>
    %480 = arith.addf %478, %479 : vector<10x128xf32>
    %cst_220 = arith.constant dense<0.000000e+00> : vector<10x10xf32>
    %481 = tpu.matmul %474, %477, %cst_220 {dimension_numbers = #tpu.dot_dimension_numbers<[1], [1], [0], [0], [0, 0, 1, 0], [], []>} : vector<10x128xf32>, vector<10x128xf32>, vector<10x10xf32> -> vector<10x10xf32>
    %cst_221 = arith.constant 0.316227764 : f32
    %482 = vector.broadcast %cst_221 : f32 to vector<10x10xf32>
    %483 = arith.mulf %481, %482 : vector<10x10xf32>
    %cst_222 = arith.constant dense<0xFF800000> : vector<10xf32>
    %484 = vector.multi_reduction <maximumf>, %483, %cst_222 [1] : vector<10x10xf32> to vector<10xf32>
    %485 = vector.shape_cast %484 : vector<10xf32> to vector<10x1xf32>
    %486 = vector.broadcast %485 : vector<10x1xf32> to vector<10x10xf32>
    %487 = arith.subf %483, %486 : vector<10x10xf32>
    %488 = math.exp %487 : vector<10x10xf32>
    %cst_223 = arith.constant dense<0.000000e+00> : vector<10xf32>
    %489 = vector.multi_reduction <add>, %488, %cst_223 [1] : vector<10x10xf32> to vector<10xf32>
    %490 = vector.shape_cast %489 : vector<10xf32> to vector<10x1xf32>
    %491 = tpu.reciprocal %490 {approx = true} : vector<10x1xf32> -> vector<10x1xf32>
    %492 = vector.broadcast %491 : vector<10x1xf32> to vector<10x10xf32>
    %493 = arith.mulf %488, %492 : vector<10x10xf32>
    %cst_224 = arith.constant dense<0.000000e+00> : vector<10x128xf32>
    %494 = tpu.matmul %493, %436, %cst_224 {dimension_numbers = #tpu.dot_dimension_numbers<[1], [0], [0], [1], [0, 0, 1, 1], [], []>} : vector<10x10xf32>, vector<10x128xf32>, vector<10x128xf32> -> vector<10x128xf32>
    %495 = vector.extract_strided_slice %494 {offsets = [0, 0], sizes = [10, 10], strides = [1, 1]} : vector<10x128xf32> to vector<10x10xf32>
    %cst_225 = arith.constant dense<0.000000e+00> : vector<10x128xf32>
    %496 = tpu.matmul %495, %480, %cst_225 {dimension_numbers = #tpu.dot_dimension_numbers<[1], [0], [0], [1], [0, 0, 1, 1], [], []>} : vector<10x10xf32>, vector<10x128xf32>, vector<10x128xf32> -> vector<10x128xf32>
    %497 = vector.extract_strided_slice %496 {offsets = [0, 0], sizes = [1, 128], strides = [1, 1]} : vector<10x128xf32> to vector<1x128xf32>
    %cst_226 = arith.constant dense<0.000000e+00> : vector<1x128xf32>
    %498 = tpu.matmul %497, %437, %cst_226 {dimension_numbers = #tpu.dot_dimension_numbers<[1], [0], [0], [1], [0, 0, 1, 1], [], []>} : vector<1x128xf32>, vector<128x128xf32>, vector<1x128xf32> -> vector<1x128xf32>
    %499 = arith.addf %498, %433 : vector<1x128xf32>
    %cst_227 = arith.constant dense<0.000000e+00> : vector<1x128xf32>
    %500 = tpu.matmul %499, %438, %cst_227 {dimension_numbers = #tpu.dot_dimension_numbers<[1], [0], [0], [1], [0, 0, 1, 1], [], []>} : vector<1x128xf32>, vector<128x128xf32>, vector<1x128xf32> -> vector<1x128xf32>
    %501 = arith.addf %500, %435 : vector<1x128xf32>
    %c1_228 = arith.constant 1 : index
    %c0_229 = arith.constant 0 : index
    %c0_230 = arith.constant 0 : index
    %502 = vector.load %arg12[%c1_228, %c0_229, %c0_230] : memref<2x1x128xf32, #tpu.memory_space<vmem>>, vector<1x1x128xf32>
    %503 = vector.shape_cast %502 : vector<1x1x128xf32> to vector<1x128xf32>
    %504 = vector.shape_cast %501 : vector<1x128xf32> to vector<1x1x128xf32>
    tpu.vector_store %arg12[%c1_228, %c0_229, %c0_230], %504 {strides = array<i32>} : memref<2x1x128xf32, #tpu.memory_space<vmem>>, vector<1x1x128xf32>,
    return
  }
  func.func @transform_0(%arg0: i32) -> (i32, i32, i32) {
    %c0_i32 = arith.constant 0 : i32
    %c0_i32_0 = arith.constant 0 : i32
    %c0_i32_1 = arith.constant 0 : i32
    %c0_i32_2 = arith.constant 0 : i32
    return %c0_i32, %c0_i32_0, %c0_i32_1 : i32, i32, i32
  }
  func.func @transform_1(%arg0: i32) -> (i32, i32) {
    %c0_i32 = arith.constant 0 : i32
    %c0_i32_0 = arith.constant 0 : i32
    %c0_i32_1 = arith.constant 0 : i32
    return %c0_i32, %c0_i32_0 : i32, i32
  }
  func.func @transform_2(%arg0: i32) -> (i32, i32) {
    %c0_i32 = arith.constant 0 : i32
    %c0_i32_0 = arith.constant 0 : i32
    %c0_i32_1 = arith.constant 0 : i32
    return %c0_i32, %c0_i32_0 : i32, i32
  }
  func.func @transform_3(%arg0: i32) -> (i32, i32) {
    %c0_i32 = arith.constant 0 : i32
    %c0_i32_0 = arith.constant 0 : i32
    %c0_i32_1 = arith.constant 0 : i32
    return %c0_i32, %c0_i32_0 : i32, i32
  }
  func.func @transform_4(%arg0: i32) -> (i32, i32, i32) {
    %c0_i32 = arith.constant 0 : i32
    %c0_i32_0 = arith.constant 0 : i32
    %c0_i32_1 = arith.constant 0 : i32
    %c0_i32_2 = arith.constant 0 : i32
    return %c0_i32, %c0_i32_0, %c0_i32_1 : i32, i32, i32
  }
  func.func @transform_5(%arg0: i32) -> (i32, i32, i32) {
    %c0_i32 = arith.constant 0 : i32
    %c0_i32_0 = arith.constant 0 : i32
    %c0_i32_1 = arith.constant 0 : i32
    %c0_i32_2 = arith.constant 0 : i32
    return %c0_i32, %c0_i32_0, %c0_i32_1 : i32, i32, i32
  }
  func.func @transform_6(%arg0: i32) -> (i32, i32, i32) {
    %c0_i32 = arith.constant 0 : i32
    %c0_i32_0 = arith.constant 0 : i32
    %c0_i32_1 = arith.constant 0 : i32
    %c0_i32_2 = arith.constant 0 : i32
    return %c0_i32, %c0_i32_0, %c0_i32_1 : i32, i32, i32
  }
  func.func @transform_7(%arg0: i32) -> (i32, i32, i32) {
    %c0_i32 = arith.constant 0 : i32
    %c0_i32_0 = arith.constant 0 : i32
    %c0_i32_1 = arith.constant 0 : i32
    %c0_i32_2 = arith.constant 0 : i32
    return %c0_i32, %c0_i32_0, %c0_i32_1 : i32, i32, i32
  }
  func.func @transform_8(%arg0: i32) -> (i32, i32) {
    %c0_i32 = arith.constant 0 : i32
    %c0_i32_0 = arith.constant 0 : i32
    %c0_i32_1 = arith.constant 0 : i32
    return %c0_i32, %c0_i32_0 : i32, i32
  }
  func.func @transform_9(%arg0: i32) -> (i32, i32) {
    %c0_i32 = arith.constant 0 : i32
    %c0_i32_0 = arith.constant 0 : i32
    %c0_i32_1 = arith.constant 0 : i32
    return %c0_i32, %c0_i32_0 : i32, i32
  }
  func.func @transform_10(%arg0: i32) -> (i32, i32) {
    %c0_i32 = arith.constant 0 : i32
    %c0_i32_0 = arith.constant 0 : i32
    %c0_i32_1 = arith.constant 0 : i32
    return %c0_i32, %c0_i32_0 : i32, i32
  }
  func.func @transform_11(%arg0: i32) -> (i32, i32, i32) {
    %c0_i32 = arith.constant 0 : i32
    %c0_i32_0 = arith.constant 0 : i32
    %c0_i32_1 = arith.constant 0 : i32
    %c0_i32_2 = arith.constant 0 : i32
    return %c0_i32, %c0_i32_0, %c0_i32_1 : i32, i32, i32
  }
}

</mosaic_0001>

<bundles_post_ra>
// kernel: _lambda_.1
= control target key start
LH: loop header
LB: loop body
LE: loop exit
PB: predicated region body
PF: predicated region fallthrough
CT: control target
= control target key end

     0   :  { %16 = vsyncpa [#allocation3], 0  ;;  %s9915_s0 = inlined_call_operand.vmem [shape: f32[2,10,128], index: 0, kind: input, shape index: {}]   ;;  %s9916_s1 = inlined_call_operand.vmem [shape: f32[10,128], index: 1, kind: input, shape index: {}]   ;;  %s9917_s2 = inlined_call_operand.vmem [shape: f32[128,128], index: 2, kind: input, shape index: {}]   ;;  %s9918_s3 = inlined_call_operand.vmem [shape: f32[128,128], index: 3, kind: input, shape index: {}]   ;;  %s9919_s4 = inlined_call_operand.hbm [shape: f32[12,128,128], index: 4, kind: input, shape index: {}]   ;;  %s9920_s5 = inlined_call_operand.vmem [shape: f32[20,1,128], index: 5, kind: input, shape index: {}]   ;;  %s9921_s6 = inlined_call_operand.vmem [shape: f32[3,128,128], index: 6, kind: input, shape index: {}]   ;;  %s9922_s7 = inlined_call_operand.vmem [shape: f32[5,1,128], index: 7, kind: input, shape index: {}]   ;;  %s9923_s8 = inlined_call_operand.vmem [shape: f32[10,128], index: 8, kind: input, shape index: {}]   ;;  %s9924_s9 = inlined_call_operand.vmem [shape: f32[128,128], index: 9, kind: input, shape index: {}]   ;;  %s9925_s10 = inlined_call_operand.vmem [shape: f32[128,128], index: 10, kind: input, shape index: {}]   ;;  %s9926_s11 = inlined_call_operand.hbm [shape: f32[2,1,128], index: 11, kind: output, shape index: {}]  }
   0x1   :  { %17 = vsyncpa [#allocation4], 0  ;;  %s7453_s17 = smov [#allocation2]  }
   0x2   :  { %s31_s18 = sshll.u32 %s7453_s17, 4  ;;  %s32_s18 = int_to_ptr.vmem [resolvable:$true] %s31_s18 }
   0x3   :  { %s7417_s19 = scalar_lea.vmem %s32_s18, 24576  ;;  %p7422_p1 = scmp.lt.s32.totalorder %s32_s18, %s32_s18 }
   0x4   :  { %p7418_p0 = scmp.ne.s32.totalorder %s32_s18, %s7417_s19  ;;  %p7423_p2 = scmp.lt.s32.totalorder %s7417_s19, %s7417_s19 }
   0x6   :  { %p7424_p3 = por %p7423_p2, %p7422_p1 }
   0x8   :  { %p7425_p4 = pnand %p7424_p3, %p7418_p0 }
   0xa   :  { %7428 = shalt.err (!%p7425_p4)
}
   0xb   :  { %s7454_s20 = smov 128   ;;  %s7455_s21 = smov 8  }
   0xc   :  { %37 = dma.hbm_to_vmem [thread:$0]  %s9919_s4, 24576, %s32_s18, [#allocation3], %s7454_s20, %s7454_s20, %s7455_s21  }
   0xd   :  { %7449 = dma.done.wait [#allocation3], 24576  }
   0xe   :  { %7450 = vsyncadd [#allocation3], 4294942720  ;;  %v75_v0 = vld [vmem:[%s9917_s2 + $0x78] sm:$0xff]  ;;  %v74_v1 = vld [vmem:[%s9917_s2 + $0x70] sm:$0xff]  ;;  %vm1262_vm0 = vcmask 1041408   ;;  %vm3827_vm2 = vcmask 74752  }
   0xf   :  { %5707 = vmatprep.subr.mxu0 %v75_v0  ;;  %5742 = vmatprep.subr.mxu1 %v75_v0  ;;  %v73_v2 = vld [vmem:[%s9917_s2 + $0x68] sm:$0xff]  ;;  %v72_v3 = vld [vmem:[%s9917_s2 + $0x60] sm:$0xff]  ;;  %v71_v4 = vld [vmem:[%s9917_s2 + $0x58] sm:$0xff]  ;;  %vm3823_vm3 = vcmask 80896   ;;  %vm7457_vm4 = vmmov 0  }
  0x10   :  { %5708 = vmatpush3.msra.mxu0 %v75_v0  ;;  %5743 = vmatpush3.msra.mxu1 %v75_v0  ;;  %v70_v5 = vld [vmem:[%s9917_s2 + $0x50] sm:$0xff]  ;;  %v69_v6 = vld [vmem:[%s9917_s2 + $0x48] sm:$0xff]  ;;  %v68_v7 = vld [vmem:[%s9917_s2 + $0x40] sm:$0xff] }
  0x11   :  { %5709 = vmatprep.subr.mxu0 %v74_v1  ;;  %5744 = vmatprep.subr.mxu1 %v74_v1  ;;  %v67_v8 = vld [vmem:[%s9917_s2 + $0x38] sm:$0xff]  ;;  %v66_v9 = vld [vmem:[%s9917_s2 + $0x30] sm:$0xff]  ;;  %v65_v10 = vld [vmem:[%s9917_s2 + $0x28] sm:$0xff] }
  0x12   :  { %5710 = vmatpush3.msra.mxu0 %v74_v1  ;;  %5745 = vmatpush3.msra.mxu1 %v74_v1  ;;  %v64_v11 = vld [vmem:[%s9917_s2 + $0x20] sm:$0xff]  ;;  %v63_v12 = vld [vmem:[%s9917_s2 + $0x18] sm:$0xff]  ;;  %v62_v13 = vld [vmem:[%s9917_s2 + $0x10] sm:$0xff] }
  0x13   :  { %5711 = vmatprep.subr.mxu0 %v73_v2  ;;  %5746 = vmatprep.subr.mxu1 %v73_v2  ;;  %v61_v14 = vld [vmem:[%s9917_s2 + $0x8] sm:$0xff]  ;;  %v60_v15 = vld [vmem:[%s9917_s2] sm:$0xff]  ;;  %v4803_v17 = vld [vmem:[%s9915_s0 + $0x10] sm:$0xff] }
  0x14   :  { %5712 = vmatpush3.msra.mxu0 %v73_v2  ;;  %5747 = vmatpush3.msra.mxu1 %v73_v2  ;;  %v92_v16 = vld [vmem:[%s9915_s0] sm:$0xff]  ;;  %v93_v18 = vld [vmem:[%s9915_s0 + $0x8] sm:$0x3]  ;;  %v4804_v19 = vld [vmem:[%s9915_s0 + $0x18] sm:$0x3] }
  0x15   :  { %5713 = vmatprep.subr.mxu0 %v72_v3  ;;  %5748 = vmatprep.subr.mxu1 %v72_v3  ;;  %v262_v20 = vld [vmem:[#allocation2 + $0x78] sm:$0xff]  ;;  %v261_v21 = vld [vmem:[#allocation2 + $0x70] sm:$0xff]  ;;  %v260_v22 = vld [vmem:[#allocation2 + $0x68] sm:$0xff] }
  0x16   :  { %5714 = vmatpush3.msra.mxu0 %v72_v3  ;;  %5749 = vmatpush3.msra.mxu1 %v72_v3  ;;  %v259_v23 = vld [vmem:[#allocation2 + $0x60] sm:$0xff]  ;;  %v258_v24 = vld [vmem:[#allocation2 + $0x58] sm:$0xff]  ;;  %v257_v25 = vld [vmem:[#allocation2 + $0x50] sm:$0xff] }
  0x17   :  { %5715 = vmatprep.subr.mxu0 %v71_v4  ;;  %5750 = vmatprep.subr.mxu1 %v71_v4  ;;  %v256_v26 = vld [vmem:[#allocation2 + $0x48] sm:$0xff]  ;;  %v255_v27 = vld [vmem:[#allocation2 + $0x40] sm:$0xff]  ;;  %v254_v28 = vld [vmem:[#allocation2 + $0x38] sm:$0xff] }
  0x18   :  { %5716 = vmatpush3.msra.mxu0 %v71_v4  ;;  %5751 = vmatpush3.msra.mxu1 %v71_v4  ;;  %v253_v29 = vld [vmem:[#allocation2 + $0x30] sm:$0xff]  ;;  %v252_v30 = vld [vmem:[#allocation2 + $0x28] sm:$0xff]  ;;  %v251_v31 = vld [vmem:[#allocation2 + $0x20] sm:$0xff] }
  0x19   :  { %5717 = vmatprep.subr.mxu0 %v70_v5  ;;  %5752 = vmatprep.subr.mxu1 %v70_v5  ;;  %v250_v32 = vld [vmem:[#allocation2 + $0x18] sm:$0xff]  ;;  %v249_v33 = vld [vmem:[#allocation2 + $0x10] sm:$0xff]  ;;  %v248_v34 = vld [vmem:[#allocation2 + $0x8] sm:$0xff] }
  0x1a   :  { %5718 = vmatpush3.msra.mxu0 %v70_v5  ;;  %5753 = vmatpush3.msra.mxu1 %v70_v5  ;;  %v247_v35 = vld [vmem:[#allocation2] sm:$0xff]  ;;  %v279_v36 = vld [vmem:[#allocation2 + $0xf8] sm:$0xff]  ;;  %v59_v40 = vld [vmem:[%s9916_s1 + $0x8] sm:$0x3] }
  0x1b   :  { %5719 = vmatprep.subr.mxu0 %v69_v6  ;;  %5754 = vmatprep.subr.mxu1 %v69_v6  ;;  %v58_v39 = vld [vmem:[%s9916_s1] sm:$0xff]  ;;  %v278_v47 = vld [vmem:[#allocation2 + $0xf0] sm:$0xff]  ;;  %v277_v48 = vld [vmem:[#allocation2 + $0xe8] sm:$0xff] }
  0x1c   :  { %5720 = vmatpush3.msra.mxu0 %v69_v6  ;;  %5755 = vmatpush3.msra.mxu1 %v69_v6  ;;  %v276_v49 = vld [vmem:[#allocation2 + $0xe0] sm:$0xff]  ;;  %v275_v50 = vld [vmem:[#allocation2 + $0xd8] sm:$0xff]  ;;  %v274_v51 = vld [vmem:[#allocation2 + $0xd0] sm:$0xff] }
  0x1d   :  { %5721 = vmatprep.subr.mxu0 %v68_v7  ;;  %5756 = vmatprep.subr.mxu1 %v68_v7  ;;  %v273_v52 = vld [vmem:[#allocation2 + $0xc8] sm:$0xff]  ;;  %v272_v53 = vld [vmem:[#allocation2 + $0xc0] sm:$0xff]  ;;  %v271_v54 = vld [vmem:[#allocation2 + $0xb8] sm:$0xff] }
  0x1e   :  { %5722 = vmatpush3.msra.mxu0 %v68_v7  ;;  %5757 = vmatpush3.msra.mxu1 %v68_v7  ;;  %v270_v55 = vld [vmem:[#allocation2 + $0xb0] sm:$0xff]  ;;  %v269_v56 = vld [vmem:[#allocation2 + $0xa8] sm:$0xff]  ;;  %v268_v57 = vld [vmem:[#allocation2 + $0xa0] sm:$0xff] }
  0x1f   :  { %5723 = vmatprep.subr.mxu0 %v67_v8  ;;  %5758 = vmatprep.subr.mxu1 %v67_v8  ;;  %v267_v58 = vld [vmem:[#allocation2 + $0x98] sm:$0xff]  ;;  %v266_v59 = vld [vmem:[#allocation2 + $0x90] sm:$0xff]  ;;  %v265_v60 = vld [vmem:[#allocation2 + $0x88] sm:$0xff] }
  0x20   :  { %5724 = vmatpush3.msra.mxu0 %v67_v8  ;;  %5759 = vmatpush3.msra.mxu1 %v67_v8  ;;  %v264_v61 = vld [vmem:[#allocation2 + $0x80] sm:$0xff]  ;;  %v296_v62 = vld [vmem:[#allocation2 + $0x178] sm:$0xff]  ;;  %v295_v63 = vld [vmem:[#allocation2 + $0x170] sm:$0xff] }
  0x21   :  { %5725 = vmatprep.subr.mxu0 %v66_v9  ;;  %5760 = vmatprep.subr.mxu1 %v66_v9  ;;  %v294_v0 = vld [vmem:[#allocation2 + $0x168] sm:$0xff]  ;;  %v293_v1 = vld [vmem:[#allocation2 + $0x160] sm:$0xff]  ;;  %v292_v2 = vld [vmem:[#allocation2 + $0x158] sm:$0xff] }
  0x22   :  { %5726 = vmatpush3.msra.mxu0 %v66_v9  ;;  %5761 = vmatpush3.msra.mxu1 %v66_v9  ;;  %v291_v3 = vld [vmem:[#allocation2 + $0x150] sm:$0xff]  ;;  %v290_v4 = vld [vmem:[#allocation2 + $0x148] sm:$0xff]  ;;  %v289_v5 = vld [vmem:[#allocation2 + $0x140] sm:$0xff] }
  0x23   :  { %5727 = vmatprep.subr.mxu0 %v65_v10  ;;  %5762 = vmatprep.subr.mxu1 %v65_v10  ;;  %v288_v6 = vld [vmem:[#allocation2 + $0x138] sm:$0xff]  ;;  %v287_v7 = vld [vmem:[#allocation2 + $0x130] sm:$0xff]  ;;  %v286_v8 = vld [vmem:[#allocation2 + $0x128] sm:$0xff] }
  0x24   :  { %5728 = vmatpush3.msra.mxu0 %v65_v10  ;;  %5763 = vmatpush3.msra.mxu1 %v65_v10  ;;  %v285_v9 = vld [vmem:[#allocation2 + $0x120] sm:$0xff]  ;;  %v284_v10 = vld [vmem:[#allocation2 + $0x118] sm:$0xff] }
  0x25   :  { %5729 = vmatprep.subr.mxu0 %v64_v11  ;;  %5764 = vmatprep.subr.mxu1 %v64_v11 }
  0x26   :  { %5730 = vmatpush3.msra.mxu0 %v64_v11  ;;  %5765 = vmatpush3.msra.mxu1 %v64_v11  ;;  %v283_v11 = vld [vmem:[#allocation2 + $0x110] sm:$0xff] }
  0x27   :  { %5731 = vmatprep.subr.mxu0 %v63_v12  ;;  %5766 = vmatprep.subr.mxu1 %v63_v12 }
  0x28   :  { %5732 = vmatpush3.msra.mxu0 %v63_v12  ;;  %5767 = vmatpush3.msra.mxu1 %v63_v12  ;;  %v282_v12 = vld [vmem:[#allocation2 + $0x108] sm:$0xff] }
  0x29   :  { %5733 = vmatprep.subr.mxu0 %v62_v13  ;;  %5768 = vmatprep.subr.mxu1 %v62_v13 }
  0x2a   :  { %5734 = vmatpush3.msra.mxu0 %v62_v13  ;;  %5769 = vmatpush3.msra.mxu1 %v62_v13  ;;  %v281_v13 = vld [vmem:[#allocation2 + $0x100] sm:$0xff] }
  0x2b   :  { %5735 = vmatprep.subr.mxu0 %v61_v14  ;;  %5770 = vmatprep.subr.mxu1 %v61_v14 }
  0x2c   :  { %5736 = vmatpush3.msra.mxu0 %v61_v14  ;;  %5771 = vmatpush3.msra.mxu1 %v61_v14  ;;  %v7613_v14 = vld [vmem:[%s9918_s3 + $0x78] sm:$0xff] }
  0x2d   :  { %5737 = vmatprep.subr.mxu0 %v60_v15  ;;  %5772 = vmatprep.subr.mxu1 %v60_v15 }
  0x2e   :  { %5738 = vmatpush3.msra.mxu0 %v60_v15  ;;  %5739 = vmatprep.mubr.f32.mxu0 %v92_v16  ;;  %v7627_v16 = vld [vmem:[%s9918_s3 + $0x68] sm:$0xff] }
  0x2f   :  { %5773 = vmatpush3.msra.mxu1 %v60_v15  ;;  %5774 = vmatprep.mubr.f32.mxu1 %v4803_v17  ;;  %v7618_v15 = vld [vmem:[%s9918_s3 + $0x70] sm:$0xff]  ;;  %v7636_v17 = vld [vmem:[%s9918_s3 + $0x60] sm:$0xff] }
  0x30   :  { %5740 = vmatmul.mubr.f32.vlgmr.msra.gmra.mxu0 %v93_v18  ;;  %5775 = vmatmul.mubr.f32.vlgmr.msra.gmra.mxu1 %v4804_v19  ;;  %v7645_v18 = vld [vmem:[%s9918_s3 + $0x58] sm:$0xff]  ;;  %v7654_v19 = vld [vmem:[%s9918_s3 + $0x50] sm:$0xff] }
  0x31   :  { %5777 = vmatprep.subr.mxu0 %v262_v20  ;;  %5812 = vmatprep.subr.mxu1 %v262_v20 }
  0x32   :  { %5778 = vmatpush3.msra.mxu0 %v262_v20  ;;  %5813 = vmatpush3.msra.mxu1 %v262_v20  ;;  %v7663_v20 = vld [vmem:[%s9918_s3 + $0x48] sm:$0xff] }
  0x33   :  { %5779 = vmatprep.subr.mxu0 %v261_v21  ;;  %5814 = vmatprep.subr.mxu1 %v261_v21 }
  0x34   :  { %5780 = vmatpush3.msra.mxu0 %v261_v21  ;;  %5815 = vmatpush3.msra.mxu1 %v261_v21  ;;  %v7672_v21 = vld [vmem:[%s9918_s3 + $0x40] sm:$0xff] }
  0x35   :  { %5781 = vmatprep.subr.mxu0 %v260_v22  ;;  %5816 = vmatprep.subr.mxu1 %v260_v22 }
  0x36   :  { %5782 = vmatpush3.msra.mxu0 %v260_v22  ;;  %5817 = vmatpush3.msra.mxu1 %v260_v22  ;;  %v7681_v22 = vld [vmem:[%s9918_s3 + $0x38] sm:$0xff] }
  0x37   :  { %5783 = vmatprep.subr.mxu0 %v259_v23  ;;  %5818 = vmatprep.subr.mxu1 %v259_v23 }
  0x38   :  { %5784 = vmatpush3.msra.mxu0 %v259_v23  ;;  %5819 = vmatpush3.msra.mxu1 %v259_v23  ;;  %v7690_v23 = vld [vmem:[%s9918_s3 + $0x30] sm:$0xff] }
  0x39   :  { %5785 = vmatprep.subr.mxu0 %v258_v24  ;;  %5820 = vmatprep.subr.mxu1 %v258_v24 }
  0x3a   :  { %5786 = vmatpush3.msra.mxu0 %v258_v24  ;;  %5821 = vmatpush3.msra.mxu1 %v258_v24  ;;  %v7699_v24 = vld [vmem:[%s9918_s3 + $0x28] sm:$0xff] }
  0x3b   :  { %5787 = vmatprep.subr.mxu0 %v257_v25  ;;  %5822 = vmatprep.subr.mxu1 %v257_v25 }
  0x3c   :  { %5788 = vmatpush3.msra.mxu0 %v257_v25  ;;  %5823 = vmatpush3.msra.mxu1 %v257_v25  ;;  %v7708_v25 = vld [vmem:[%s9918_s3 + $0x20] sm:$0xff] }
  0x3d   :  { %5789 = vmatprep.subr.mxu0 %v256_v26  ;;  %5824 = vmatprep.subr.mxu1 %v256_v26 }
  0x3e   :  { %5790 = vmatpush3.msra.mxu0 %v256_v26  ;;  %5825 = vmatpush3.msra.mxu1 %v256_v26  ;;  %v7717_v26 = vld [vmem:[%s9918_s3 + $0x18] sm:$0xff] }
  0x3f   :  { %5791 = vmatprep.subr.mxu0 %v255_v27  ;;  %5826 = vmatprep.subr.mxu1 %v255_v27 }
  0x40   :  { %5792 = vmatpush3.msra.mxu0 %v255_v27  ;;  %5827 = vmatpush3.msra.mxu1 %v255_v27  ;;  %v7730_v27 = vld [vmem:[%s9918_s3 + $0x10] sm:$0xff] }
  0x41   :  { %5793 = vmatprep.subr.mxu0 %v254_v28  ;;  %5828 = vmatprep.subr.mxu1 %v254_v28 }
  0x42   :  { %5794 = vmatpush3.msra.mxu0 %v254_v28  ;;  %5829 = vmatpush3.msra.mxu1 %v254_v28  ;;  %v7739_v28 = vld [vmem:[%s9918_s3 + $0x8] sm:$0xff] }
  0x43   :  { %5795 = vmatprep.subr.mxu0 %v253_v29  ;;  %5830 = vmatprep.subr.mxu1 %v253_v29 }
  0x44   :  { %5796 = vmatpush3.msra.mxu0 %v253_v29  ;;  %5831 = vmatpush3.msra.mxu1 %v253_v29  ;;  %v7748_v29 = vld [vmem:[%s9918_s3] sm:$0xff] }
  0x45   :  { %5797 = vmatprep.subr.mxu0 %v252_v30  ;;  %5832 = vmatprep.subr.mxu1 %v252_v30 }
  0x46   :  { %5798 = vmatpush3.msra.mxu0 %v252_v30  ;;  %5833 = vmatpush3.msra.mxu1 %v252_v30 }
  0x47   :  { %5799 = vmatprep.subr.mxu0 %v251_v31  ;;  %5834 = vmatprep.subr.mxu1 %v251_v31 }
  0x48   :  { %5800 = vmatpush3.msra.mxu0 %v251_v31  ;;  %5835 = vmatpush3.msra.mxu1 %v251_v31 }
  0x49   :  { %5801 = vmatprep.subr.mxu0 %v250_v32  ;;  %5836 = vmatprep.subr.mxu1 %v250_v32 }
  0x4a   :  { %5802 = vmatpush3.msra.mxu0 %v250_v32  ;;  %5837 = vmatpush3.msra.mxu1 %v250_v32 }
  0x4b   :  { %5803 = vmatprep.subr.mxu0 %v249_v33  ;;  %5838 = vmatprep.subr.mxu1 %v249_v33 }
  0x4c   :  { %5804 = vmatpush3.msra.mxu0 %v249_v33  ;;  %5839 = vmatpush3.msra.mxu1 %v249_v33 }
  0x4d   :  { %5805 = vmatprep.subr.mxu0 %v248_v34  ;;  %5840 = vmatprep.subr.mxu1 %v248_v34 }
  0x4e   :  { %5806 = vmatpush3.msra.mxu0 %v248_v34  ;;  %5841 = vmatpush3.msra.mxu1 %v248_v34 }
  0x4f   :  { %5807 = vmatprep.subr.mxu0 %v247_v35  ;;  %5842 = vmatprep.subr.mxu1 %v247_v35 }
  0x50   :  { %5808 = vmatpush3.msra.mxu0 %v247_v35  ;;  %5843 = vmatpush3.msra.mxu1 %v247_v35  ;;  %v4815_v35 = vld [vmem:[%s9920_s5 + $0x1] ss:$0 sm:$0xff] }
  0x51   :  { %5847 = vmatprep.subr.mxu0 %v279_v36  ;;  %5882 = vmatprep.subr.mxu1 %v279_v36 }
  0xf0   :  { %v5741_v37 = vpop.f32.mrf.mxu0  ;;  %v5776_v38 = vpop.f32.mrf.mxu1 }
  0xf1   :  { %v7594_v45 = vadd.f32 %v5741_v37, %v59_v40  ;;  %v7596_v46 = vadd.f32 %v5776_v38, %v59_v40  ;;  %v7764_v37 = vld [vmem:[%s9920_s5] ss:$0 sm:$0xff] }
  0xf2   :  { %v160_v41 = vpop.f32.mrf.mxu0  ;;  %v238_v42 = vpop.f32.mrf.mxu1 }
  0xf3   :  { %v7590_v43 = vadd.f32 %v160_v41, %v58_v39  ;;  %v7592_v44 = vadd.f32 %v238_v42, %v58_v39 }
  0xf5   :  { %5809 = vmatprep.mubr.f32.mxu0 %v7590_v43  ;;  %5844 = vmatprep.mubr.f32.mxu1 %v7592_v44 }
  0xf6   :  { %5810 = vmatmul.mubr.f32.vlgmr.msra.gmra.mxu0 %v7594_v45  ;;  %5845 = vmatmul.mubr.f32.vlgmr.msra.gmra.mxu1 %v7596_v46 }
  0xf7   :  { %5848 = vmatpush3.msra.mxu0 %v279_v36  ;;  %5883 = vmatpush3.msra.mxu1 %v279_v36 }
  0xf8   :  { %5849 = vmatprep.subr.mxu0 %v278_v47  ;;  %5879 = vmatprep.mubr.f32.mxu0 %v7590_v43 }
  0xf9   :  { %5884 = vmatprep.subr.mxu1 %v278_v47  ;;  %5914 = vmatprep.mubr.f32.mxu1 %v7592_v44 }
  0xfa   :  { %5850 = vmatpush3.msra.mxu0 %v278_v47  ;;  %5885 = vmatpush3.msra.mxu1 %v278_v47 }
  0xfb   :  { %5851 = vmatprep.subr.mxu0 %v277_v48  ;;  %5886 = vmatprep.subr.mxu1 %v277_v48 }
  0xfc   :  { %5852 = vmatpush3.msra.mxu0 %v277_v48  ;;  %5887 = vmatpush3.msra.mxu1 %v277_v48 }
  0xfd   :  { %5853 = vmatprep.subr.mxu0 %v276_v49  ;;  %5888 = vmatprep.subr.mxu1 %v276_v49 }
  0xfe   :  { %5854 = vmatpush3.msra.mxu0 %v276_v49  ;;  %5889 = vmatpush3.msra.mxu1 %v276_v49 }
  0xff   :  { %5855 = vmatprep.subr.mxu0 %v275_v50  ;;  %5890 = vmatprep.subr.mxu1 %v275_v50 }
 0x100   :  { %5856 = vmatpush3.msra.mxu0 %v275_v50  ;;  %5891 = vmatpush3.msra.mxu1 %v275_v50 }
 0x101   :  { %5857 = vmatprep.subr.mxu0 %v274_v51  ;;  %5892 = vmatprep.subr.mxu1 %v274_v51 }
 0x102   :  { %5858 = vmatpush3.msra.mxu0 %v274_v51  ;;  %5893 = vmatpush3.msra.mxu1 %v274_v51 }
 0x103   :  { %5859 = vmatprep.subr.mxu0 %v273_v52  ;;  %5894 = vmatprep.subr.mxu1 %v273_v52 }
 0x104   :  { %5860 = vmatpush3.msra.mxu0 %v273_v52  ;;  %5895 = vmatpush3.msra.mxu1 %v273_v52 }
 0x105   :  { %5861 = vmatprep.subr.mxu0 %v272_v53  ;;  %5896 = vmatprep.subr.mxu1 %v272_v53 }
 0x106   :  { %5862 = vmatpush3.msra.mxu0 %v272_v53  ;;  %5897 = vmatpush3.msra.mxu1 %v272_v53 }
 0x107   :  { %5863 = vmatprep.subr.mxu0 %v271_v54  ;;  %5898 = vmatprep.subr.mxu1 %v271_v54 }
 0x108   :  { %5864 = vmatpush3.msra.mxu0 %v271_v54  ;;  %5899 = vmatpush3.msra.mxu1 %v271_v54 }
 0x109   :  { %5865 = vmatprep.subr.mxu0 %v270_v55  ;;  %5900 = vmatprep.subr.mxu1 %v270_v55 }
 0x10a   :  { %5866 = vmatpush3.msra.mxu0 %v270_v55  ;;  %5901 = vmatpush3.msra.mxu1 %v270_v55 }
 0x10b   :  { %5867 = vmatprep.subr.mxu0 %v269_v56  ;;  %5902 = vmatprep.subr.mxu1 %v269_v56 }
 0x10c   :  { %5868 = vmatpush3.msra.mxu0 %v269_v56  ;;  %5903 = vmatpush3.msra.mxu1 %v269_v56 }
 0x10d   :  { %5869 = vmatprep.subr.mxu0 %v268_v57  ;;  %5904 = vmatprep.subr.mxu1 %v268_v57 }
 0x10e   :  { %5870 = vmatpush3.msra.mxu0 %v268_v57  ;;  %5905 = vmatpush3.msra.mxu1 %v268_v57 }
 0x10f   :  { %5871 = vmatprep.subr.mxu0 %v267_v58  ;;  %5906 = vmatprep.subr.mxu1 %v267_v58 }
 0x110   :  { %5872 = vmatpush3.msra.mxu0 %v267_v58  ;;  %5907 = vmatpush3.msra.mxu1 %v267_v58 }
 0x111   :  { %5873 = vmatprep.subr.mxu0 %v266_v59  ;;  %5908 = vmatprep.subr.mxu1 %v266_v59 }
 0x112   :  { %5874 = vmatpush3.msra.mxu0 %v266_v59  ;;  %5909 = vmatpush3.msra.mxu1 %v266_v59 }
 0x113   :  { %5875 = vmatprep.subr.mxu0 %v265_v60  ;;  %5910 = vmatprep.subr.mxu1 %v265_v60 }
 0x114   :  { %5876 = vmatpush3.msra.mxu0 %v265_v60  ;;  %5911 = vmatpush3.msra.mxu1 %v265_v60  ;;  %v7841_v60 = vld [vmem:[#allocation2 + $0x1f8] sm:$0xff] }
 0x115   :  { %5877 = vmatprep.subr.mxu0 %v264_v61  ;;  %5912 = vmatprep.subr.mxu1 %v264_v61 }
 0x116   :  { %5878 = vmatpush3.msra.mxu0 %v264_v61  ;;  %5913 = vmatpush3.msra.mxu1 %v264_v61  ;;  %v7845_v61 = vld [vmem:[#allocation2 + $0x1f0] sm:$0xff] }
 0x117   :  { %5880 = vmatmul.mubr.f32.vlgmr.msra.gmra.mxu0 %v7594_v45  ;;  %5915 = vmatmul.mubr.f32.vlgmr.msra.gmra.mxu1 %v7596_v46 }
 0x118   :  { %5917 = vmatprep.subr.mxu0 %v296_v62  ;;  %5952 = vmatprep.subr.mxu1 %v296_v62 }
 0x119   :  { %5918 = vmatpush3.msra.mxu0 %v296_v62  ;;  %5949 = vmatprep.mubr.f32.mxu0 %v7590_v43 }
 0x11a   :  { %5953 = vmatpush3.msra.mxu1 %v296_v62  ;;  %5984 = vmatprep.mubr.f32.mxu1 %v7592_v44  ;;  %v7849_v62 = vld [vmem:[#allocation2 + $0x1e8] sm:$0xff] }
 0x11b   :  { %5919 = vmatprep.subr.mxu0 %v295_v63  ;;  %5954 = vmatprep.subr.mxu1 %v295_v63 }
 0x11c   :  { %5920 = vmatpush3.msra.mxu0 %v295_v63  ;;  %5955 = vmatpush3.msra.mxu1 %v295_v63  ;;  %v7853_v63 = vld [vmem:[#allocation2 + $0x1e0] sm:$0xff] }
 0x11d   :  { %5921 = vmatprep.subr.mxu0 %v294_v0  ;;  %5956 = vmatprep.subr.mxu1 %v294_v0 }
 0x11e   :  { %5922 = vmatpush3.msra.mxu0 %v294_v0  ;;  %5957 = vmatpush3.msra.mxu1 %v294_v0  ;;  %v7857_v0 = vld [vmem:[#allocation2 + $0x1d8] sm:$0xff] }
 0x11f   :  { %5923 = vmatprep.subr.mxu0 %v293_v1  ;;  %5958 = vmatprep.subr.mxu1 %v293_v1 }
 0x120   :  { %5924 = vmatpush3.msra.mxu0 %v293_v1  ;;  %5959 = vmatpush3.msra.mxu1 %v293_v1  ;;  %v7861_v1 = vld [vmem:[#allocation2 + $0x1d0] sm:$0xff] }
 0x121   :  { %5925 = vmatprep.subr.mxu0 %v292_v2  ;;  %5960 = vmatprep.subr.mxu1 %v292_v2 }
 0x122   :  { %5926 = vmatpush3.msra.mxu0 %v292_v2  ;;  %5961 = vmatpush3.msra.mxu1 %v292_v2  ;;  %v7865_v2 = vld [vmem:[#allocation2 + $0x1c8] sm:$0xff] }
 0x123   :  { %5927 = vmatprep.subr.mxu0 %v291_v3  ;;  %5962 = vmatprep.subr.mxu1 %v291_v3 }
 0x124   :  { %5928 = vmatpush3.msra.mxu0 %v291_v3  ;;  %5963 = vmatpush3.msra.mxu1 %v291_v3  ;;  %v7868_v3 = vld [vmem:[#allocation2 + $0x1c0] sm:$0xff] }
 0x125   :  { %5929 = vmatprep.subr.mxu0 %v290_v4  ;;  %5964 = vmatprep.subr.mxu1 %v290_v4 }
 0x126   :  { %5930 = vmatpush3.msra.mxu0 %v290_v4  ;;  %5965 = vmatpush3.msra.mxu1 %v290_v4  ;;  %v7871_v4 = vld [vmem:[#allocation2 + $0x1b8] sm:$0xff] }
 0x127   :  { %5931 = vmatprep.subr.mxu0 %v289_v5  ;;  %5966 = vmatprep.subr.mxu1 %v289_v5 }
 0x128   :  { %5932 = vmatpush3.msra.mxu0 %v289_v5  ;;  %5967 = vmatpush3.msra.mxu1 %v289_v5  ;;  %v7875_v5 = vld [vmem:[#allocation2 + $0x1b0] sm:$0xff] }
 0x129   :  { %5933 = vmatprep.subr.mxu0 %v288_v6  ;;  %5968 = vmatprep.subr.mxu1 %v288_v6 }
 0x12a   :  { %5934 = vmatpush3.msra.mxu0 %v288_v6  ;;  %5969 = vmatpush3.msra.mxu1 %v288_v6  ;;  %v7881_v6 = vld [vmem:[#allocation2 + $0x1a8] sm:$0xff] }
 0x12b   :  { %5935 = vmatprep.subr.mxu0 %v287_v7  ;;  %5970 = vmatprep.subr.mxu1 %v287_v7 }
 0x12c   :  { %5936 = vmatpush3.msra.mxu0 %v287_v7  ;;  %5971 = vmatpush3.msra.mxu1 %v287_v7  ;;  %v7885_v7 = vld [vmem:[#allocation2 + $0x1a0] sm:$0xff] }
 0x12d   :  { %5937 = vmatprep.subr.mxu0 %v286_v8  ;;  %5972 = vmatprep.subr.mxu1 %v286_v8 }
 0x12e   :  { %5938 = vmatpush3.msra.mxu0 %v286_v8  ;;  %5973 = vmatpush3.msra.mxu1 %v286_v8  ;;  %v7889_v8 = vld [vmem:[#allocation2 + $0x198] sm:$0xff] }
 0x12f   :  { %5939 = vmatprep.subr.mxu0 %v285_v9  ;;  %5974 = vmatprep.subr.mxu1 %v285_v9 }
 0x130   :  { %5940 = vmatpush3.msra.mxu0 %v285_v9  ;;  %5975 = vmatpush3.msra.mxu1 %v285_v9  ;;  %v7893_v9 = vld [vmem:[#allocation2 + $0x190] sm:$0xff] }
 0x131   :  { %5941 = vmatprep.subr.mxu0 %v284_v10  ;;  %5976 = vmatprep.subr.mxu1 %v284_v10 }
 0x132   :  { %5942 = vmatpush3.msra.mxu0 %v284_v10  ;;  %5977 = vmatpush3.msra.mxu1 %v284_v10  ;;  %v7897_v10 = vld [vmem:[#allocation2 + $0x188] sm:$0xff] }
 0x133   :  { %5943 = vmatprep.subr.mxu0 %v283_v11  ;;  %5978 = vmatprep.subr.mxu1 %v283_v11 }
 0x134   :  { %5944 = vmatpush3.msra.mxu0 %v283_v11  ;;  %5979 = vmatpush3.msra.mxu1 %v283_v11  ;;  %v7901_v11 = vld [vmem:[#allocation2 + $0x180] sm:$0xff] }
 0x135   :  { %5945 = vmatprep.subr.mxu0 %v282_v12  ;;  %5980 = vmatprep.subr.mxu1 %v282_v12 }
 0x136   :  { %5946 = vmatpush3.msra.mxu0 %v282_v12  ;;  %5981 = vmatpush3.msra.mxu1 %v282_v12 }
 0x137   :  { %5947 = vmatprep.subr.mxu0 %v281_v13  ;;  %5982 = vmatprep.subr.mxu1 %v281_v13 }
 0x138   :  { %5948 = vmatpush3.msra.mxu0 %v281_v13  ;;  %5983 = vmatpush3.msra.mxu1 %v281_v13 }
 0x139   :  { %5950 = vmatmul.mubr.f32.vlgmr.msra.gmra.mxu0 %v7594_v45  ;;  %5985 = vmatmul.mubr.f32.vlgmr.msra.gmra.mxu1 %v7596_v46 }
 0x13a   :  { %5987 = vmatprep.subr.mxu0 %v7613_v14  ;;  %6022 = vmatprep.subr.mxu1 %v7613_v14 }
 0x13b   :  { %5988 = vmatpush3.msra.mxu0 %v7613_v14  ;;  %6023 = vmatpush3.msra.mxu1 %v7613_v14 }
 0x13c   :  { %5989 = vmatprep.subr.mxu0 %v7618_v15  ;;  %6024 = vmatprep.subr.mxu1 %v7618_v15 }
 0x13d   :  { %5990 = vmatpush3.msra.mxu0 %v7618_v15  ;;  %6025 = vmatpush3.msra.mxu1 %v7618_v15 }
 0x13e   :  { %5991 = vmatprep.subr.mxu0 %v7627_v16  ;;  %6026 = vmatprep.subr.mxu1 %v7627_v16 }
 0x13f   :  { %5992 = vmatpush3.msra.mxu0 %v7627_v16  ;;  %6027 = vmatpush3.msra.mxu1 %v7627_v16 }
 0x140   :  { %5993 = vmatprep.subr.mxu0 %v7636_v17  ;;  %6028 = vmatprep.subr.mxu1 %v7636_v17 }
 0x141   :  { %5994 = vmatpush3.msra.mxu0 %v7636_v17  ;;  %6029 = vmatpush3.msra.mxu1 %v7636_v17 }
 0x142   :  { %5995 = vmatprep.subr.mxu0 %v7645_v18  ;;  %6030 = vmatprep.subr.mxu1 %v7645_v18 }
 0x143   :  { %5996 = vmatpush3.msra.mxu0 %v7645_v18  ;;  %6031 = vmatpush3.msra.mxu1 %v7645_v18 }
 0x144   :  { %5997 = vmatprep.subr.mxu0 %v7654_v19  ;;  %6032 = vmatprep.subr.mxu1 %v7654_v19 }
 0x145   :  { %5998 = vmatpush3.msra.mxu0 %v7654_v19  ;;  %6033 = vmatpush3.msra.mxu1 %v7654_v19 }
 0x146   :  { %5999 = vmatprep.subr.mxu0 %v7663_v20  ;;  %6034 = vmatprep.subr.mxu1 %v7663_v20 }
 0x147   :  { %6000 = vmatpush3.msra.mxu0 %v7663_v20  ;;  %6035 = vmatpush3.msra.mxu1 %v7663_v20 }
 0x148   :  { %6001 = vmatprep.subr.mxu0 %v7672_v21  ;;  %6036 = vmatprep.subr.mxu1 %v7672_v21 }
 0x149   :  { %6002 = vmatpush3.msra.mxu0 %v7672_v21  ;;  %6037 = vmatpush3.msra.mxu1 %v7672_v21 }
 0x14a   :  { %6003 = vmatprep.subr.mxu0 %v7681_v22  ;;  %6038 = vmatprep.subr.mxu1 %v7681_v22 }
 0x14b   :  { %6004 = vmatpush3.msra.mxu0 %v7681_v22  ;;  %6039 = vmatpush3.msra.mxu1 %v7681_v22 }
 0x14c   :  { %6005 = vmatprep.subr.mxu0 %v7690_v23  ;;  %6040 = vmatprep.subr.mxu1 %v7690_v23 }
 0x14d   :  { %6006 = vmatpush3.msra.mxu0 %v7690_v23  ;;  %6041 = vmatpush3.msra.mxu1 %v7690_v23 }
 0x14e   :  { %6007 = vmatprep.subr.mxu0 %v7699_v24  ;;  %6042 = vmatprep.subr.mxu1 %v7699_v24 }
 0x14f   :  { %6008 = vmatpush3.msra.mxu0 %v7699_v24  ;;  %6043 = vmatpush3.msra.mxu1 %v7699_v24 }
 0x150   :  { %6009 = vmatprep.subr.mxu0 %v7708_v25  ;;  %6044 = vmatprep.subr.mxu1 %v7708_v25 }
 0x151   :  { %6010 = vmatpush3.msra.mxu0 %v7708_v25  ;;  %6045 = vmatpush3.msra.mxu1 %v7708_v25 }
 0x152   :  { %6011 = vmatprep.subr.mxu0 %v7717_v26  ;;  %6046 = vmatprep.subr.mxu1 %v7717_v26 }
 0x153   :  { %6012 = vmatpush3.msra.mxu0 %v7717_v26  ;;  %6047 = vmatpush3.msra.mxu1 %v7717_v26 }
 0x154   :  { %6013 = vmatprep.subr.mxu0 %v7730_v27  ;;  %6048 = vmatprep.subr.mxu1 %v7730_v27 }
 0x155   :  { %6014 = vmatpush3.msra.mxu0 %v7730_v27  ;;  %6049 = vmatpush3.msra.mxu1 %v7730_v27 }
 0x156   :  { %6015 = vmatprep.subr.mxu0 %v7739_v28  ;;  %6050 = vmatprep.subr.mxu1 %v7739_v28 }
 0x157   :  { %6016 = vmatpush3.msra.mxu0 %v7739_v28  ;;  %6051 = vmatpush3.msra.mxu1 %v7739_v28 }
 0x158   :  { %6017 = vmatprep.subr.mxu0 %v7748_v29  ;;  %6052 = vmatprep.subr.mxu1 %v7748_v29 }
 0x159   :  { %6018 = vmatpush3.msra.mxu0 %v7748_v29  ;;  %6053 = vmatpush3.msra.mxu1 %v7748_v29 }
 0x15a   :  { %6057 = vmatprep.subr.mxu0 %v7613_v14  ;;  %6092 = vmatprep.subr.mxu1 %v7613_v14 }
 0x1b6   :  { %v5811_v30 = vpop.f32.mrf.mxu0  ;;  %v7756_v31 = vpop.f32.mrf.mxu1 }
 0x1b7   :  { %v445_v49 = vadd.f32 %v5811_v30, %v7764_v37  ;;  %v520_v57 = vadd.f32 %v7756_v31, %v7764_v37 }
 0x1b8   :  { %v439_v32 = vpop.f32.mrf.mxu0  ;;  %v514_v33 = vpop.f32.mrf.mxu1 }
 0x1b9   :  { %v440_v42 = vadd.f32 %v7764_v37, %v439_v32  ;;  %v515_v52 = vadd.f32 %v7764_v37, %v514_v33 }
 0x1d7   :  { %v5881_v34 = vpop.f32.mrf.mxu0  ;;  %v5916_v36 = vpop.f32.mrf.mxu1 }
 0x1d8   :  { %v7766_v40 = vadd.f32 %v5881_v34, %v4815_v35  ;;  %v7768_v41 = vadd.f32 %v5916_v36, %v4815_v35 }
 0x1d9   :  { %v595_v38 = vpop.f32.mrf.mxu0  ;;  %v670_v39 = vpop.f32.mrf.mxu1 }
 0x1da   :  { %v596_v47 = vadd.f32 %v4815_v35, %v595_v38  ;;  %v671_v48 = vadd.f32 %v4815_v35, %v670_v39  ;;  %v836_v53 = vmul.f32 %v7766_v40, %v445_v49  ;;  %v915_v54 = vmul.f32 %v7768_v41, %v445_v49 }
 0x1db   :  { %v994_v58 = vmul.f32 %v7766_v40, %v520_v57  ;;  %v1073_v59 = vmul.f32 %v7768_v41, %v520_v57  ;;  %v4816_v40 = vld [vmem:[%s9920_s5 + $0x2] ss:$0 sm:$0xff] }
 0x1dc   :  { %v835_v50 = vmul.f32 %v596_v47, %v440_v42  ;;  %v914_v51 = vmul.f32 %v671_v48, %v440_v42  ;;  %v993_v55 = vmul.f32 %v596_v47, %v515_v52  ;;  %v1072_v56 = vmul.f32 %v671_v48, %v515_v52 }
 0x1de   :  { %6019 = vmatprep.mubr.f32.mxu0 %v835_v50  ;;  %6054 = vmatprep.mubr.f32.mxu1 %v914_v51 }
 0x1df   :  { %6020 = vmatmul.mubr.f32.vlgmr.msra.gmra.mxu0 %v836_v53  ;;  %6055 = vmatmul.mubr.f32.vlgmr.msra.gmra.mxu1 %v915_v54 }
 0x1e0   :  { %6058 = vmatpush3.msra.mxu0 %v7613_v14  ;;  %6093 = vmatpush3.msra.mxu1 %v7613_v14 }
 0x1e1   :  { %6059 = vmatprep.subr.mxu0 %v7618_v15  ;;  %6089 = vmatprep.mubr.f32.mxu0 %v993_v55 }
 0x1e2   :  { %6094 = vmatprep.subr.mxu1 %v7618_v15  ;;  %6124 = vmatprep.mubr.f32.mxu1 %v1072_v56 }
 0x1e3   :  { %6060 = vmatpush3.msra.mxu0 %v7618_v15  ;;  %6095 = vmatpush3.msra.mxu1 %v7618_v15 }
 0x1e4   :  { %6061 = vmatprep.subr.mxu0 %v7627_v16  ;;  %6096 = vmatprep.subr.mxu1 %v7627_v16 }
 0x1e5   :  { %6062 = vmatpush3.msra.mxu0 %v7627_v16  ;;  %6097 = vmatpush3.msra.mxu1 %v7627_v16 }
 0x1e6   :  { %6063 = vmatprep.subr.mxu0 %v7636_v17  ;;  %6098 = vmatprep.subr.mxu1 %v7636_v17 }
 0x1e7   :  { %6064 = vmatpush3.msra.mxu0 %v7636_v17  ;;  %6099 = vmatpush3.msra.mxu1 %v7636_v17 }
 0x1e8   :  { %6065 = vmatprep.subr.mxu0 %v7645_v18  ;;  %6100 = vmatprep.subr.mxu1 %v7645_v18 }
 0x1e9   :  { %6066 = vmatpush3.msra.mxu0 %v7645_v18  ;;  %6101 = vmatpush3.msra.mxu1 %v7645_v18 }
 0x1ea   :  { %6067 = vmatprep.subr.mxu0 %v7654_v19  ;;  %6102 = vmatprep.subr.mxu1 %v7654_v19 }
 0x1eb   :  { %6068 = vmatpush3.msra.mxu0 %v7654_v19  ;;  %6103 = vmatpush3.msra.mxu1 %v7654_v19 }
 0x1ec   :  { %6069 = vmatprep.subr.mxu0 %v7663_v20  ;;  %6104 = vmatprep.subr.mxu1 %v7663_v20 }
 0x1ed   :  { %6070 = vmatpush3.msra.mxu0 %v7663_v20  ;;  %6105 = vmatpush3.msra.mxu1 %v7663_v20 }
 0x1ee   :  { %6071 = vmatprep.subr.mxu0 %v7672_v21  ;;  %6106 = vmatprep.subr.mxu1 %v7672_v21 }
 0x1ef   :  { %6072 = vmatpush3.msra.mxu0 %v7672_v21  ;;  %6107 = vmatpush3.msra.mxu1 %v7672_v21 }
 0x1f0   :  { %6073 = vmatprep.subr.mxu0 %v7681_v22  ;;  %6108 = vmatprep.subr.mxu1 %v7681_v22 }
 0x1f1   :  { %6074 = vmatpush3.msra.mxu0 %v7681_v22  ;;  %6109 = vmatpush3.msra.mxu1 %v7681_v22 }
 0x1f2   :  { %6075 = vmatprep.subr.mxu0 %v7690_v23  ;;  %6110 = vmatprep.subr.mxu1 %v7690_v23 }
 0x1f3   :  { %6076 = vmatpush3.msra.mxu0 %v7690_v23  ;;  %6111 = vmatpush3.msra.mxu1 %v7690_v23 }
 0x1f4   :  { %6077 = vmatprep.subr.mxu0 %v7699_v24  ;;  %6112 = vmatprep.subr.mxu1 %v7699_v24 }
 0x1f5   :  { %6078 = vmatpush3.msra.mxu0 %v7699_v24  ;;  %6113 = vmatpush3.msra.mxu1 %v7699_v24 }
 0x1f6   :  { %6079 = vmatprep.subr.mxu0 %v7708_v25  ;;  %6114 = vmatprep.subr.mxu1 %v7708_v25 }
 0x1f7   :  { %6080 = vmatpush3.msra.mxu0 %v7708_v25  ;;  %6115 = vmatpush3.msra.mxu1 %v7708_v25 }
 0x1f8   :  { %6081 = vmatprep.subr.mxu0 %v7717_v26  ;;  %6116 = vmatprep.subr.mxu1 %v7717_v26 }
 0x1f9   :  { %6082 = vmatpush3.msra.mxu0 %v7717_v26  ;;  %6117 = vmatpush3.msra.mxu1 %v7717_v26  ;;  %v5951_v12 = vpop.f32.mrf.mxu0  ;;  %v5986_v13 = vpop.f32.mrf.mxu1 }
 0x1fa   :  { %6083 = vmatprep.subr.mxu0 %v7730_v27  ;;  %6118 = vmatprep.subr.mxu1 %v7730_v27  ;;  %v757_v51 = vadd.f32 %v5951_v12, %v4816_v40  ;;  %v832_v52 = vadd.f32 %v5986_v13, %v4816_v40 }
 0x1fb   :  { %6084 = vmatpush3.msra.mxu0 %v7730_v27  ;;  %6119 = vmatpush3.msra.mxu1 %v7730_v27  ;;  %v751_v14 = vpop.f32.mrf.mxu0  ;;  %v826_v15 = vpop.f32.mrf.mxu1 }
 0x1fc   :  { %6085 = vmatprep.subr.mxu0 %v7739_v28  ;;  %6120 = vmatprep.subr.mxu1 %v7739_v28  ;;  %v752_v41 = vadd.f32 %v4816_v40, %v751_v14  ;;  %v827_v42 = vadd.f32 %v4816_v40, %v826_v15 }
 0x1fd   :  { %6086 = vmatpush3.msra.mxu0 %v7739_v28  ;;  %6121 = vmatpush3.msra.mxu1 %v7739_v28 }
 0x1fe   :  { %6087 = vmatprep.subr.mxu0 %v7748_v29  ;;  %6122 = vmatprep.subr.mxu1 %v7748_v29 }
 0x1ff   :  { %6088 = vmatpush3.msra.mxu0 %v7748_v29  ;;  %6123 = vmatpush3.msra.mxu1 %v7748_v29 }
 0x200   :  { %6090 = vmatmul.mubr.f32.vlgmr.msra.gmra.mxu0 %v994_v58  ;;  %6125 = vmatmul.mubr.f32.vlgmr.msra.gmra.mxu1 %v1073_v59 }
 0x201   :  { %6127 = vmatprep.subr.mxu0 %v7841_v60 }
 0x202   :  { %6128 = vmatpush3.msra.mxu0 %v7841_v60 }
 0x203   :  { %6129 = vmatprep.subr.mxu0 %v7845_v61 }
 0x204   :  { %6130 = vmatpush3.msra.mxu0 %v7845_v61 }
 0x205   :  { %6131 = vmatprep.subr.mxu0 %v7849_v62 }
 0x206   :  { %6132 = vmatpush3.msra.mxu0 %v7849_v62 }
 0x207   :  { %6133 = vmatprep.subr.mxu0 %v7853_v63 }
 0x208   :  { %6134 = vmatpush3.msra.mxu0 %v7853_v63 }
 0x209   :  { %6135 = vmatprep.subr.mxu0 %v7857_v0 }
 0x20a   :  { %6136 = vmatpush3.msra.mxu0 %v7857_v0 }
 0x20b   :  { %6137 = vmatprep.subr.mxu0 %v7861_v1 }
 0x20c   :  { %6138 = vmatpush3.msra.mxu0 %v7861_v1 }
 0x20d   :  { %6139 = vmatprep.subr.mxu0 %v7865_v2 }
 0x20e   :  { %6140 = vmatpush3.msra.mxu0 %v7865_v2 }
 0x20f   :  { %6141 = vmatprep.subr.mxu0 %v7868_v3 }
 0x210   :  { %6142 = vmatpush3.msra.mxu0 %v7868_v3 }
 0x211   :  { %6143 = vmatprep.subr.mxu0 %v7871_v4 }
 0x212   :  { %6144 = vmatpush3.msra.mxu0 %v7871_v4 }
 0x213   :  { %6145 = vmatprep.subr.mxu0 %v7875_v5 }
 0x214   :  { %6146 = vmatpush3.msra.mxu0 %v7875_v5 }
 0x215   :  { %6147 = vmatprep.subr.mxu0 %v7881_v6 }
 0x216   :  { %6148 = vmatpush3.msra.mxu0 %v7881_v6 }
 0x217   :  { %6149 = vmatprep.subr.mxu0 %v7885_v7 }
 0x218   :  { %6150 = vmatpush3.msra.mxu0 %v7885_v7 }
 0x219   :  { %6151 = vmatprep.subr.mxu0 %v7889_v8 }
 0x21a   :  { %6152 = vmatpush3.msra.mxu0 %v7889_v8 }
 0x21b   :  { %6153 = vmatprep.subr.mxu0 %v7893_v9 }
 0x21c   :  { %6154 = vmatpush3.msra.mxu0 %v7893_v9 }
 0x21d   :  { %6155 = vmatprep.subr.mxu0 %v7897_v10 }
 0x21e   :  { %6156 = vmatpush3.msra.mxu0 %v7897_v10 }
 0x21f   :  { %6157 = vmatprep.subr.mxu0 %v7901_v11 }
 0x220   :  { %6158 = vmatpush3.msra.mxu0 %v7901_v11 }
 0x29f   :  { %v6021_v16 = vpop.f32.mrf.mxu0  ;;  %v6056_v17 = vpop.f32.mrf.mxu1 }
 0x2a0   :  { %v913_v18 = vmul.f32 0.4472136, %v6021_v16  ;;  %v992_v19 = vmul.f32 0.4472136, %v6056_v17 }
 0x2a1   :  { %v903_v20 = vpop.f32.mrf.mxu0  ;;  %v982_v21 = vpop.f32.mrf.mxu1 }
 0x2a2   :  { %v1152_v22 = vmax.f32 %v913_v18, %v992_v19  ;;  %v912_v23 = vmul.f32 0.4472136, %v903_v20  ;;  %v991_v24 = vmul.f32 0.4472136, %v982_v21 }
 0x2a4   :  { %v1154_v25 = vsub.f32 %v913_v18, %v1152_v22  ;;  %v1160_v26 = vsub.f32 %v992_v19, %v1152_v22  ;;  %v1151_v27 = vmax.f32 %v912_v23, %v991_v24 }
 0x2a6   :  { %v1157_v28 = vmul.f32 1.442695, %v1154_v25  ;;  %v1163_v29 = vmul.f32 1.442695, %v1160_v26  ;;  %v1153_v30 = vsub.f32 %v912_v23, %v1151_v27  ;;  %v1159_v31 = vsub.f32 %v991_v24, %v1151_v27 }
 0x2a8   :  { %7297 = vpow2.f32 %v1157_v28  ;;  %v1155_v32 = vmul.f32 1.442695, %v1153_v30  ;;  %v1161_v33 = vmul.f32 1.442695, %v1159_v31 }
 0x2a9   :  { %7299 = vpow2.f32 %v1163_v29 }
 0x2aa   :  { %7301 = vpow2.f32 %v1155_v32 }
 0x2ab   :  { %7303 = vpow2.f32 %v1161_v33 }
 0x2b5   :  { %v7298_v34 = vpop.eup %7297 }
 0x2b6   :  { %v7300_v35 = vpop.eup %7299  ;;  %v1168_v16 = vmul.f32 %v7298_v34, %v757_v51 }
 0x2b7   :  { %v7302_v36 = vpop.eup %7301  ;;  %v1166_v37 = vadd.f32 %v7300_v35, %v7298_v34  ;;  %v1170_v17 = vmul.f32 %v7300_v35, %v832_v52 }
 0x2b8   :  { %v7304_v38 = vpop.eup %7303  ;;  %v1167_v55 = vmul.f32 %v7302_v36, %v752_v41 }
 0x2b9   :  { %v1165_v39 = vadd.f32 %v7304_v38, %v7302_v36  ;;  %7305 = vrcp.f32 %v1166_v37  ;;  %v1169_v56 = vmul.f32 %v7304_v38, %v827_v42  ;;  %v1172_v13 = vadd.f32 %v1170_v17, %v1168_v16 }
 0x2bb   :  { %7307 = vrcp.f32 %v1165_v39  ;;  %v1171_v14 = vadd.f32 %v1169_v56, %v1167_v55  ;;  %v7930_v55 = vld [vmem:[#allocation2 + $0x270] sm:$0xff] }
 0x2c0   :  { %v6091_v47 = vpop.f32.mrf.mxu0  ;;  %v6126_v48 = vpop.f32.mrf.mxu1 }
 0x2c1   :  { %v1071_v49 = vmul.f32 0.4472136, %v6091_v47  ;;  %v1150_v50 = vmul.f32 0.4472136, %v6126_v48  ;;  %v7921_v48 = vld [vmem:[%s9920_s5 + $0x3] ss:$0 sm:$0xff] }
 0x2c2   :  { %v1061_v53 = vpop.f32.mrf.mxu0  ;;  %v1140_v54 = vpop.f32.mrf.mxu1 }
 0x2c3   :  { %v1512_v57 = vmax.f32 %v1071_v49, %v1150_v50  ;;  %v1070_v58 = vmul.f32 0.4472136, %v1061_v53  ;;  %v1149_v59 = vmul.f32 0.4472136, %v1140_v54  ;;  %v7928_v54 = vld [vmem:[#allocation2 + $0x278] sm:$0xff] }
 0x2c4   :  { %6162 = vmatprep.subr.mxu1 %v7928_v54 }
 0x2c5   :  { %v1514_v18 = vsub.f32 %v1071_v49, %v1512_v57  ;;  %v1520_v19 = vsub.f32 %v1150_v50, %v1512_v57  ;;  %v1511_v20 = vmax.f32 %v1070_v58, %v1149_v59  ;;  %6163 = vmatpush3.msra.mxu1 %v7928_v54 }
 0x2c6   :  { %v7306_v15 = vpop.eup %7305  ;;  %6164 = vmatprep.subr.mxu1 %v7930_v55 }
 0x2c7   :  { %v1517_v21 = vmul.f32 1.442695, %v1514_v18  ;;  %v1523_v22 = vmul.f32 1.442695, %v1520_v19  ;;  %v1513_v23 = vsub.f32 %v1070_v58, %v1511_v20  ;;  %v1519_v24 = vsub.f32 %v1149_v59, %v1511_v20  ;;  %6165 = vmatpush3.msra.mxu1 %v7930_v55 }
 0x2c8   :  { %v7308_v12 = vpop.eup %7307  ;;  %v1176_v28 = vmul.f32 %v7306_v15, %v1172_v13  ;;  %v9927_v58 = vmov 0.0   ;;  %v7962_v13 = vld [vmem:[#allocation2 + $0x250] sm:$0xff] }
 0x2c9   :  { %7309 = vpow2.f32 %v1517_v21  ;;  %v1515_v25 = vmul.f32 1.442695, %v1513_v23  ;;  %v1521_v26 = vmul.f32 1.442695, %v1519_v24  ;;  %v1175_v27 = vmul.f32 %v7308_v12, %v1171_v14  ;;  %v7950_v23 = vld [vmem:[#allocation2 + $0x268] sm:$0xff]  ;;  %v7954_v24 = vld [vmem:[#allocation2 + $0x260] sm:$0xff] }
 0x2ca   :  { %7311 = vpow2.f32 %v1523_v22  ;;  %6166 = vmatprep.subr.mxu1 %v7950_v23  ;;  %v7957_v12 = vld [vmem:[#allocation2 + $0x258] sm:$0xff] }
 0x2cb   :  { %7313 = vpow2.f32 %v1515_v25  ;;  %6159 = vmatprep.mubr.f32.mxu0 %v1175_v27  ;;  %6167 = vmatpush3.msra.mxu1 %v7950_v23  ;;  %v7966_v25 = vld [vmem:[#allocation2 + $0x248] sm:$0xff]  ;;  %v7972_v27 = vld [vmem:[#allocation2 + $0x238] sm:$0xff] }
 0x2cc   :  { %7315 = vpow2.f32 %v1521_v26  ;;  %6160 = vmatmul.mubr.f32.vlgmr.msra.gmra.mxu0 %v1176_v28  ;;  %6168 = vmatprep.subr.mxu1 %v7954_v24  ;;  %v7968_v26 = vld [vmem:[#allocation2 + $0x240] sm:$0xff]  ;;  %v7976_v28 = vld [vmem:[#allocation2 + $0x230] sm:$0xff] }
 0x2cd   :  { %6169 = vmatpush3.msra.mxu1 %v7954_v24 }
 0x2ce   :  { %6170 = vmatprep.subr.mxu1 %v7957_v12 }
 0x2cf   :  { %6171 = vmatpush3.msra.mxu1 %v7957_v12 }
 0x2d0   :  { %6172 = vmatprep.subr.mxu1 %v7962_v13 }
 0x2d1   :  { %6173 = vmatpush3.msra.mxu1 %v7962_v13 }
 0x2d2   :  { %6174 = vmatprep.subr.mxu1 %v7966_v25 }
 0x2d3   :  { %6175 = vmatpush3.msra.mxu1 %v7966_v25 }
 0x2d4   :  { %6176 = vmatprep.subr.mxu1 %v7968_v26 }
 0x2d5   :  { %6177 = vmatpush3.msra.mxu1 %v7968_v26 }
 0x2d6   :  { %v7310_v29 = vpop.eup %7309  ;;  %6178 = vmatprep.subr.mxu1 %v7972_v27 }
 0x2d7   :  { %v7312_v30 = vpop.eup %7311  ;;  %v1528_v31 = vmul.f32 %v7310_v29, %v757_v51  ;;  %6179 = vmatpush3.msra.mxu1 %v7972_v27 }
 0x2d8   :  { %v7908_v32 = vpop.eup %7313  ;;  %v1526_v33 = vadd.f32 %v7312_v30, %v7310_v29  ;;  %v1530_v34 = vmul.f32 %v7312_v30, %v832_v52  ;;  %v7980_v29 = vld [vmem:[#allocation2 + $0x228] sm:$0xff]  ;;  %6180 = vmatprep.subr.mxu1 %v7976_v28  ;;  %v7984_v30 = vld [vmem:[#allocation2 + $0x220] sm:$0xff] }
 0x2d9   :  { %v7910_v35 = vpop.eup %7315  ;;  %v1527_v36 = vmul.f32 %v7908_v32, %v752_v41  ;;  %6181 = vmatpush3.msra.mxu1 %v7976_v28 }
 0x2da   :  { %7317 = vrcp.f32 %v1526_v33  ;;  %v1529_v37 = vmul.f32 %v7910_v35, %v827_v42  ;;  %v1532_v38 = vadd.f32 %v1530_v34, %v1528_v31  ;;  %6182 = vmatprep.subr.mxu1 %v7980_v29  ;;  %v7988_v31 = vld [vmem:[#allocation2 + $0x218] sm:$0xff]  ;;  %v7992_v33 = vld [vmem:[#allocation2 + $0x210] sm:$0xff]  ;;  %v7996_v34 = vld [vmem:[#allocation2 + $0x208] sm:$0xff] }
 0x2db   :  { %6183 = vmatpush3.msra.mxu1 %v7980_v29 }
 0x2dc   :  { %v7914_v39 = vadd.f32 %v1529_v37, %v1527_v36  ;;  %6184 = vmatprep.subr.mxu1 %v7984_v30  ;;  %v8000_v36 = vld [vmem:[#allocation2 + $0x200] sm:$0xff]  ;;  %v8007_v37 = vld [vmem:[#allocation2 + $0x2f8] sm:$0xff] }
 0x2dd   :  { %6185 = vmatpush3.msra.mxu1 %v7984_v30  ;;  %6197 = vmatprep.subr.mxu0 %v8007_v37 }
 0x2de   :  { %6186 = vmatprep.subr.mxu1 %v7988_v31  ;;  %6198 = vmatpush3.msra.mxu0 %v8007_v37 }
 0x2df   :  { %6187 = vmatpush3.msra.mxu1 %v7988_v31 }
 0x2e0   :  { %6188 = vmatprep.subr.mxu1 %v7992_v33 }
 0x2e1   :  { %6189 = vmatpush3.msra.mxu1 %v7992_v33 }
 0x2e2   :  { %6190 = vmatprep.subr.mxu1 %v7996_v34 }
 0x2e3   :  { %6191 = vmatpush3.msra.mxu1 %v7996_v34 }
 0x2e4   :  { %6192 = vmatprep.subr.mxu1 %v8000_v36 }
 0x2e5   :  { %6193 = vmatpush3.msra.mxu1 %v8000_v36 }
 0x2e6   :  { %6232 = vmatprep.subr.mxu1 %v7841_v60 }
 0x2e7   :  { %v7318_v40 = vpop.eup %7317 }
 0x2e8   :  { %v7916_v47 = vmul.f32 %v7318_v40, %v1532_v38  ;;  %v8009_v38 = vld [vmem:[#allocation2 + $0x2f0] sm:$0xff]  ;;  %v8013_v40 = vld [vmem:[#allocation2 + $0x2e8] sm:$0xff] }
 0x2e9   :  { %6199 = vmatprep.subr.mxu0 %v8009_v38 }
 0x2ea   :  { %6200 = vmatpush3.msra.mxu0 %v8009_v38 }
 0x2eb   :  { %6201 = vmatprep.subr.mxu0 %v8013_v40 }
 0x2ec   :  { %6202 = vmatpush3.msra.mxu0 %v8013_v40 }
 0x38c   :  { %v6161_v49 = vpop.f32.mrf.mxu0 }
 0x38d   :  { %v1255_v50 = vadd.f32 %v6161_v49, %v7921_v48  ;;  %v8017_v49 = vld [vmem:[#allocation2 + $0x2e0] sm:$0xff] }
 0x38e   :  { %v1249_v51 = vpop.f32.mrf.mxu0  ;;  %6203 = vmatprep.subr.mxu0 %v8017_v49 }
 0x38f   :  { %v1250_v41 = vadd.f32 %v7921_v48, %v1249_v51  ;;  %v1259_v42 = vadd.f32 %v1255_v50, %v7594_v45  ;;  %v8021_v50 = vld [vmem:[#allocation2 + $0x2d8] sm:$0xff]  ;;  %6204 = vmatpush3.msra.mxu0 %v8017_v49  ;;  %v8025_v51 = vld [vmem:[#allocation2 + $0x2d0] sm:$0xff] }
 0x390   :  { %6205 = vmatprep.subr.mxu0 %v8021_v50 }
 0x391   :  { %v1258_v52 = vadd.f32 %v1250_v41, %v7590_v43  ;;  %v1263_v53 = vsel %vm1262_vm0, %v1259_v42, 0.0  ;;  %v53_v43 = vlaneseq  ;;  %6206 = vmatpush3.msra.mxu0 %v8021_v50  ;;  %v8029_v41 = vld [vmem:[#allocation2 + $0x2c8] sm:$0xff] }
 0x392   :  { %6207 = vmatprep.subr.mxu0 %v8025_v51 }
 0x393   :  { %1260 = vadd.xlane.f32.xlu0 %v1258_v52  ;;  %v54_v56 = vand.u32 127, %v53_v43  ;;  %6208 = vmatpush3.msra.mxu0 %v8025_v51  ;;  %v8045_v43 = vld [vmem:[#allocation2 + $0x2a8] sm:$0xff] }
 0x394   :  { %6209 = vmatprep.subr.mxu0 %v8029_v41 }
 0x395   :  { %vm55_vm1 = vcmp.lt.s32.totalorder %v54_v56, 10  ;;  %6210 = vmatpush3.msra.mxu0 %v8029_v41  ;;  %v8049_v56 = vld [vmem:[#allocation2 + $0x2a0] sm:$0xff] }
 0x396   :  { %v7937_v59 = vsel %vm55_vm1, 1.0, %v9927_v58 }
 0x397   :  { %1264 = vadd.xlane.f32.xlu0 %v1263_v53  ;;  %9990 = vst [vmem:[#allocation8_spill] sm:$0xff] %v7937_v59  ;;  %v8041_v53 = vld [vmem:[#allocation2 + $0x2b0] sm:$0xff] }
 0x41c   :  { %v1261_v45 = vpop.xlane.xlu0 %1260 }
 0x41d   :  { %v1266_v57 = vmul.f32 0.1, %v1261_v45 }
 0x41f   :  { %v1268_v16 = vsub.f32 %v1258_v52, %v1266_v57  ;;  %v8033_v52 = vld [vmem:[#allocation2 + $0x2c0] sm:$0xff] }
 0x420   :  { %v1265_v17 = vpop.xlane.xlu0 %1264  ;;  %6211 = vmatprep.subr.mxu0 %v8033_v52 }
 0x421   :  { %v1267_v18 = vmul.f32 0.1, %v1265_v17  ;;  %v7940_v19 = vmul.f32 %v7937_v59, %v1268_v16  ;;  %6212 = vmatpush3.msra.mxu0 %v8033_v52 }
 0x423   :  { %v1269_v20 = vsub.f32 %v1259_v42, %v1267_v18  ;;  %v1272_v14 = vmul.f32 %v7940_v19, %v7940_v19  ;;  %v8037_v42 = vld [vmem:[#allocation2 + $0x2b8] sm:$0xff] }
 0x424   :  { %6213 = vmatprep.subr.mxu0 %v8037_v42 }
 0x425   :  { %1274 = vadd.xlane.f32.xlu1 %v1272_v14  ;;  %v7945_v15 = vmul.f32 %v7937_v59, %v1269_v20  ;;  %6214 = vmatpush3.msra.mxu0 %v8037_v42  ;;  %v1525_v14 = vadd.f32 %v7910_v35, %v7908_v32 }
 0x426   :  { %6215 = vmatprep.subr.mxu0 %v8041_v53 }
 0x427   :  { %v1273_v21 = vmul.f32 %v7945_v15, %v7945_v15  ;;  %6216 = vmatpush3.msra.mxu0 %v8041_v53 }
 0x428   :  { %6217 = vmatprep.subr.mxu0 %v8045_v43 }
 0x429   :  { %v1276_v22 = vsel %vm1262_vm0, %v1273_v21, 0.0  ;;  %6218 = vmatpush3.msra.mxu0 %v8045_v43 }
 0x42a   :  { %1277 = vadd.xlane.f32.xlu1 %v1276_v22  ;;  %6219 = vmatprep.subr.mxu0 %v8049_v56  ;;  %v8060_v22 = vld [vmem:[%s9920_s5 + $0x6] ss:$0 sm:$0xff] }
 0x42b   :  { %6220 = vmatpush3.msra.mxu0 %v8049_v56 }
 0x4ae   :  { %v1275_v45 = vpop.xlane.xlu1 %1274 }
 0x4af   :  { %v1279_v57 = vmul.f32 0.1, %v1275_v45  ;;  %v8066_v45 = vld [vmem:[%s9920_s5 + $0x7] ss:$0 sm:$0xff] }
 0x4b1   :  { %v1281_v16 = vadd.f32 1e-05, %v1279_v57 }
 0x4b3   :  { %7319 = vrsqrt.f32 %v1281_v16  ;;  %v1278_v17 = vpop.xlane.xlu1 %1277 }
 0x4b4   :  { %v1280_v18 = vmul.f32 0.1, %v1278_v17 }
 0x4b6   :  { %v1282_v20 = vadd.f32 1e-05, %v1280_v18 }
 0x4b8   :  { %7321 = vrsqrt.f32 %v1282_v20 }
 0x4b9   :  { %7323 = vrcp.f32 %v1525_v14 }
 0x4c0   :  { %v7320_v21 = vpop.eup %7319 }
 0x4c1   :  { %v1285_v58 = vmul.f32 %v7320_v21, %v7940_v19 }
 0x4c3   :  { %v1293_v57 = vmul.f32 %v8060_v22, %v1285_v58 }
 0x4c5   :  { %v7322_v16 = vpop.eup %7321  ;;  %v8070_v32 = vadd.f32 %v8066_v45, %v1293_v57 }
 0x4c6   :  { %v1286_v35 = vmul.f32 %v7322_v16, %v7945_v15  ;;  %v7324_v17 = vpop.eup %7323 }
 0x4c7   :  { %6194 = vmatprep.mubr.f32.mxu1 %v8070_v32  ;;  %v1535_v20 = vmul.f32 %v7324_v17, %v7914_v39 }
 0x4c8   :  { %v1294_v18 = vmul.f32 %v8060_v22, %v1286_v35 }
 0x4ca   :  { %v8076_v19 = vadd.f32 %v8066_v45, %v1294_v18 }
 0x4cc   :  { %6195 = vmatmul.mubr.f32.vlgmr.msra.gmra.mxu1 %v8076_v19 }
 0x4cd   :  { %6233 = vmatpush3.msra.mxu1 %v7841_v60  ;;  %6264 = vmatprep.mubr.f32.mxu1 %v1535_v20  ;;  %v335_v60 = vld [vmem:[#allocation2 + $0x298] sm:$0xff] }
 0x4ce   :  { %6234 = vmatprep.subr.mxu1 %v7845_v61  ;;  %6221 = vmatprep.subr.mxu0 %v335_v60 }
 0x4cf   :  { %6235 = vmatpush3.msra.mxu1 %v7845_v61  ;;  %6222 = vmatpush3.msra.mxu0 %v335_v60  ;;  %v334_v61 = vld [vmem:[#allocation2 + $0x290] sm:$0xff] }
 0x4d0   :  { %6236 = vmatprep.subr.mxu1 %v7849_v62  ;;  %6223 = vmatprep.subr.mxu0 %v334_v61 }
 0x4d1   :  { %6237 = vmatpush3.msra.mxu1 %v7849_v62  ;;  %6224 = vmatpush3.msra.mxu0 %v334_v61  ;;  %v333_v62 = vld [vmem:[#allocation2 + $0x288] sm:$0xff] }
 0x4d2   :  { %6238 = vmatprep.subr.mxu1 %v7853_v63  ;;  %6225 = vmatprep.subr.mxu0 %v333_v62 }
 0x4d3   :  { %6239 = vmatpush3.msra.mxu1 %v7853_v63  ;;  %v332_v63 = vld [vmem:[#allocation2 + $0x280] sm:$0xff]  ;;  %6226 = vmatpush3.msra.mxu0 %v333_v62 }
 0x4d4   :  { %6240 = vmatprep.subr.mxu1 %v7857_v0  ;;  %6227 = vmatprep.subr.mxu0 %v332_v63 }
 0x4d5   :  { %6241 = vmatpush3.msra.mxu1 %v7857_v0  ;;  %6228 = vmatpush3.msra.mxu0 %v332_v63  ;;  %v8140_v0 = vld [vmem:[%s9920_s5 + $0x4] ss:$0 sm:$0xff] }
 0x4d6   :  { %6242 = vmatprep.subr.mxu1 %v7861_v1  ;;  %6267 = vmatprep.subr.mxu0 %v7928_v54 }
 0x4d7   :  { %6243 = vmatpush3.msra.mxu1 %v7861_v1 }
 0x4d8   :  { %6244 = vmatprep.subr.mxu1 %v7865_v2 }
 0x4d9   :  { %6245 = vmatpush3.msra.mxu1 %v7865_v2 }
 0x4da   :  { %6246 = vmatprep.subr.mxu1 %v7868_v3 }
 0x4db   :  { %6247 = vmatpush3.msra.mxu1 %v7868_v3 }
 0x4dc   :  { %6248 = vmatprep.subr.mxu1 %v7871_v4 }
 0x4dd   :  { %6249 = vmatpush3.msra.mxu1 %v7871_v4 }
 0x4de   :  { %6250 = vmatprep.subr.mxu1 %v7875_v5 }
 0x4df   :  { %6251 = vmatpush3.msra.mxu1 %v7875_v5 }
 0x4e0   :  { %6252 = vmatprep.subr.mxu1 %v7881_v6 }
 0x4e1   :  { %6253 = vmatpush3.msra.mxu1 %v7881_v6 }
 0x4e2   :  { %6254 = vmatprep.subr.mxu1 %v7885_v7 }
 0x4e3   :  { %6255 = vmatpush3.msra.mxu1 %v7885_v7 }
 0x4e4   :  { %6256 = vmatprep.subr.mxu1 %v7889_v8 }
 0x4e5   :  { %6257 = vmatpush3.msra.mxu1 %v7889_v8 }
 0x4e6   :  { %6258 = vmatprep.subr.mxu1 %v7893_v9 }
 0x4e7   :  { %6259 = vmatpush3.msra.mxu1 %v7893_v9 }
 0x4e8   :  { %6260 = vmatprep.subr.mxu1 %v7897_v10 }
 0x4e9   :  { %6261 = vmatpush3.msra.mxu1 %v7897_v10 }
 0x4ea   :  { %6262 = vmatprep.subr.mxu1 %v7901_v11 }
 0x4eb   :  { %6263 = vmatpush3.msra.mxu1 %v7901_v11 }
 0x4ec   :  { %6265 = vmatmul.mubr.f32.vlgmr.msra.gmra.mxu1 %v7916_v47  ;;  %6302 = vmatprep.subr.mxu1 %v8007_v37 }
 0x4ed   :  { %6303 = vmatpush3.msra.mxu1 %v8007_v37 }
 0x4ee   :  { %6304 = vmatprep.subr.mxu1 %v8009_v38 }
 0x4ef   :  { %6305 = vmatpush3.msra.mxu1 %v8009_v38 }
 0x4f0   :  { %6306 = vmatprep.subr.mxu1 %v8013_v40 }
 0x4f1   :  { %6307 = vmatpush3.msra.mxu1 %v8013_v40 }
 0x4f2   :  { %6308 = vmatprep.subr.mxu1 %v8017_v49 }
 0x4f3   :  { %6309 = vmatpush3.msra.mxu1 %v8017_v49 }
 0x4f4   :  { %6310 = vmatprep.subr.mxu1 %v8021_v50 }
 0x4f5   :  { %6311 = vmatpush3.msra.mxu1 %v8021_v50 }
 0x4f6   :  { %6312 = vmatprep.subr.mxu1 %v8025_v51 }
 0x4f7   :  { %6313 = vmatpush3.msra.mxu1 %v8025_v51 }
 0x4f8   :  { %6314 = vmatprep.subr.mxu1 %v8029_v41 }
 0x4f9   :  { %6315 = vmatpush3.msra.mxu1 %v8029_v41 }
 0x4fa   :  { %6316 = vmatprep.subr.mxu1 %v8033_v52 }
 0x4fb   :  { %6317 = vmatpush3.msra.mxu1 %v8033_v52 }
 0x4fc   :  { %6318 = vmatprep.subr.mxu1 %v8037_v42 }
 0x4fd   :  { %6319 = vmatpush3.msra.mxu1 %v8037_v42 }
 0x4fe   :  { %6320 = vmatprep.subr.mxu1 %v8041_v53 }
 0x4ff   :  { %6321 = vmatpush3.msra.mxu1 %v8041_v53 }
 0x500   :  { %6322 = vmatprep.subr.mxu1 %v8045_v43 }
 0x501   :  { %6323 = vmatpush3.msra.mxu1 %v8045_v43 }
 0x502   :  { %6324 = vmatprep.subr.mxu1 %v8049_v56 }
 0x503   :  { %6325 = vmatpush3.msra.mxu1 %v8049_v56 }
 0x504   :  { %6326 = vmatprep.subr.mxu1 %v335_v60 }
 0x505   :  { %6327 = vmatpush3.msra.mxu1 %v335_v60 }
 0x506   :  { %6328 = vmatprep.subr.mxu1 %v334_v61 }
 0x507   :  { %6329 = vmatpush3.msra.mxu1 %v334_v61 }
 0x508   :  { %6330 = vmatprep.subr.mxu1 %v333_v62 }
 0x509   :  { %6331 = vmatpush3.msra.mxu1 %v333_v62 }
 0x50a   :  { %6332 = vmatprep.subr.mxu1 %v332_v63 }
 0x50b   :  { %6333 = vmatpush3.msra.mxu1 %v332_v63 }
 0x58c   :  { %v6196_v1 = vpop.f32.mrf.mxu1 }
 0x58d   :  { %v1381_v2 = vadd.f32 %v6196_v1, %v8140_v0 }
 0x58e   :  { %v1375_v3 = vpop.f32.mrf.mxu1 }
 0x58f   :  { %v1376_v4 = vadd.f32 %v8140_v0, %v1375_v3  ;;  %v1385_v6 = vmax.f32 %v1381_v2, 0.0 }
 0x591   :  { %v1384_v5 = vmax.f32 %v1376_v4, 0.0 }
 0x593   :  { %6229 = vmatprep.mubr.f32.mxu0 %v1384_v5 }
 0x594   :  { %6230 = vmatmul.mubr.f32.vlgmr.msra.gmra.mxu0 %v1385_v6 }
 0x595   :  { %6268 = vmatpush3.msra.mxu0 %v7928_v54 }
 0x596   :  { %6269 = vmatprep.subr.mxu0 %v7930_v55 }
 0x597   :  { %6270 = vmatpush3.msra.mxu0 %v7930_v55 }
 0x598   :  { %6271 = vmatprep.subr.mxu0 %v7950_v23 }
 0x599   :  { %6272 = vmatpush3.msra.mxu0 %v7950_v23 }
 0x59a   :  { %6273 = vmatprep.subr.mxu0 %v7954_v24 }
 0x59b   :  { %6274 = vmatpush3.msra.mxu0 %v7954_v24 }
 0x59c   :  { %6275 = vmatprep.subr.mxu0 %v7957_v12 }
 0x59d   :  { %6276 = vmatpush3.msra.mxu0 %v7957_v12 }
 0x59e   :  { %6277 = vmatprep.subr.mxu0 %v7962_v13 }
 0x59f   :  { %6278 = vmatpush3.msra.mxu0 %v7962_v13 }
 0x5a0   :  { %6279 = vmatprep.subr.mxu0 %v7966_v25 }
 0x5a1   :  { %6280 = vmatpush3.msra.mxu0 %v7966_v25  ;;  %v4821_v25 = vld [vmem:[%s9920_s5 + $0x5] ss:$0 sm:$0xff] }
 0x5a2   :  { %6281 = vmatprep.subr.mxu0 %v7968_v26 }
 0x5a3   :  { %6282 = vmatpush3.msra.mxu0 %v7968_v26 }
 0x5a4   :  { %6283 = vmatprep.subr.mxu0 %v7972_v27 }
 0x5a5   :  { %6284 = vmatpush3.msra.mxu0 %v7972_v27 }
 0x5a6   :  { %6285 = vmatprep.subr.mxu0 %v7976_v28 }
 0x5a7   :  { %6286 = vmatpush3.msra.mxu0 %v7976_v28 }
 0x5a8   :  { %6287 = vmatprep.subr.mxu0 %v7980_v29 }
 0x5a9   :  { %6288 = vmatpush3.msra.mxu0 %v7980_v29 }
 0x5aa   :  { %6289 = vmatprep.subr.mxu0 %v7984_v30 }
 0x5ab   :  { %6290 = vmatpush3.msra.mxu0 %v7984_v30 }
 0x5ac   :  { %v6266_v7 = vpop.f32.mrf.mxu1  ;;  %6291 = vmatprep.subr.mxu0 %v7988_v31 }
 0x5ad   :  { %v1609_v8 = vadd.f32 %v6266_v7, %v7921_v48  ;;  %6292 = vmatpush3.msra.mxu0 %v7988_v31 }
 0x5ae   :  { %v1603_v9 = vpop.f32.mrf.mxu1  ;;  %6293 = vmatprep.subr.mxu0 %v7992_v33 }
 0x5af   :  { %v1604_v10 = vadd.f32 %v7921_v48, %v1603_v9  ;;  %v1613_v11 = vadd.f32 %v1609_v8, %v7596_v46  ;;  %6294 = vmatpush3.msra.mxu0 %v7992_v33  ;;  %v1844_v8 = vld [vmem:[#allocation2 + $0x378] sm:$0xff]  ;;  %v1843_v9 = vld [vmem:[#allocation2 + $0x370] sm:$0xff] }
 0x5b0   :  { %6295 = vmatprep.subr.mxu0 %v7996_v34  ;;  %6372 = vmatprep.subr.mxu1 %v1844_v8 }
 0x5b1   :  { %v1616_v39 = vsel %vm1262_vm0, %v1613_v11, 0.0  ;;  %v1612_v47 = vadd.f32 %v1604_v10, %v7592_v44  ;;  %6296 = vmatpush3.msra.mxu0 %v7996_v34  ;;  %v1842_v10 = vld [vmem:[#allocation2 + $0x368] sm:$0xff] }
 0x5b2   :  { %1617 = vadd.xlane.f32.xlu1 %v1616_v39  ;;  %6297 = vmatprep.subr.mxu0 %v8000_v36  ;;  %v1840_v39 = vld [vmem:[#allocation2 + $0x358] sm:$0xff] }
 0x5b3   :  { %1614 = vadd.xlane.f32.xlu0 %v1612_v47  ;;  %6298 = vmatpush3.msra.mxu0 %v8000_v36 }
 0x5b4   :  { %6337 = vmatprep.subr.mxu0 %v1844_v8 }
 0x63b   :  { %v1618_v54 = vpop.xlane.xlu1 %1617 }
 0x63c   :  { %v1620_v48 = vmul.f32 0.1, %v1618_v54  ;;  %v1615_v55 = vpop.xlane.xlu0 %1614  ;;  %v1838_v54 = vld [vmem:[#allocation2 + $0x348] sm:$0xff] }
 0x63d   :  { %v1619_v46 = vmul.f32 0.1, %v1615_v55  ;;  %v1836_v55 = vld [vmem:[#allocation2 + $0x338] sm:$0xff] }
 0x63e   :  { %v1622_v58 = vsub.f32 %v1613_v11, %v1620_v48  ;;  %v1841_v11 = vld [vmem:[#allocation2 + $0x360] sm:$0xff] }
 0x63f   :  { %v1621_v15 = vsub.f32 %v1612_v47, %v1619_v46  ;;  %v1839_v47 = vld [vmem:[#allocation2 + $0x350] sm:$0xff]  ;;  %v1837_v48 = vld [vmem:[#allocation2 + $0x340] sm:$0xff] }
 0x640   :  { %v1624_v23 = vmul.f32 %v7937_v59, %v1622_v58  ;;  %v1835_v46 = vld [vmem:[#allocation2 + $0x330] sm:$0xff]  ;;  %v1834_v58 = vld [vmem:[#allocation2 + $0x328] sm:$0xff] }
 0x641   :  { %v1623_v24 = vmul.f32 %v7937_v59, %v1621_v15  ;;  %v1833_v15 = vld [vmem:[#allocation2 + $0x320] sm:$0xff] }
 0x642   :  { %v1626_v12 = vmul.f32 %v1624_v23, %v1624_v23 }
 0x643   :  { %v1625_v44 = vmul.f32 %v1623_v24, %v1623_v24 }
 0x644   :  { %v1629_v13 = vsel %vm1262_vm0, %v1626_v12, 0.0  ;;  %v1830_v12 = vld [vmem:[#allocation2 + $0x308] sm:$0xff] }
 0x645   :  { %1630 = vadd.xlane.f32.xlu1 %v1629_v13  ;;  %1627 = vadd.xlane.f32.xlu0 %v1625_v44  ;;  %v1829_v44 = vld [vmem:[#allocation2 + $0x300] sm:$0xff]  ;;  %v8213_v13 = vld [vmem:[#allocation2 + $0x3f8] sm:$0xff] }
 0x654   :  { %v6231_v26 = vpop.f32.mrf.mxu0 }
 0x655   :  { %v1464_v27 = vadd.f32 %v6231_v26, %v4821_v25 }
 0x656   :  { %v1458_v28 = vpop.f32.mrf.mxu0 }
 0x657   :  { %v1459_v29 = vadd.f32 %v4821_v25, %v1458_v28  ;;  %v1468_v30 = vadd.f32 %v1464_v27, %v8076_v19 }
 0x659   :  { %v1471_v31 = vsel %vm1262_vm0, %v1468_v30, 0.0  ;;  %v1467_v33 = vadd.f32 %v1459_v29, %v8070_v32 }
 0x65a   :  { %1472 = vadd.xlane.f32.xlu1 %v1471_v31 }
 0x65b   :  { %1469 = vadd.xlane.f32.xlu0 %v1467_v33 }
 0x6ce   :  { %v1631_v34 = vpop.xlane.xlu1 %1630  ;;  %v1628_v36 = vpop.xlane.xlu0 %1627 }
 0x6cf   :  { %v1633_v37 = vmul.f32 0.1, %v1631_v34  ;;  %v1632_v38 = vmul.f32 0.1, %v1628_v36 }
 0x6d1   :  { %v1635_v40 = vadd.f32 1e-05, %v1633_v37  ;;  %v1634_v49 = vadd.f32 1e-05, %v1632_v38 }
 0x6d3   :  { %7325 = vrsqrt.f32 %v1635_v40 }
 0x6d4   :  { %7327 = vrsqrt.f32 %v1634_v49 }
 0x6e0   :  { %v7326_v50 = vpop.eup %7325 }
 0x6e1   :  { %v7328_v51 = vpop.eup %7327  ;;  %v1639_v41 = vmul.f32 %v7326_v50, %v1624_v23  ;;  %v1832_v23 = vld [vmem:[#allocation2 + $0x318] sm:$0xff] }
 0x6e2   :  { %v1638_v52 = vmul.f32 %v7328_v51, %v1623_v24  ;;  %v1831_v24 = vld [vmem:[#allocation2 + $0x310] sm:$0xff] }
 0x6e3   :  { %v1641_v42 = vmul.f32 %v8060_v22, %v1639_v41  ;;  %v1473_v18 = vpop.xlane.xlu1 %1472 }
 0x6e4   :  { %v1640_v53 = vmul.f32 %v8060_v22, %v1638_v52  ;;  %v1470_v17 = vpop.xlane.xlu0 %1469  ;;  %v1475_v22 = vmul.f32 0.1, %v1473_v18  ;;  %v8260_v18 = vld [vmem:[#allocation2 + $0x3e0] sm:$0xff] }
 0x6e5   :  { %v1643_v43 = vadd.f32 %v8066_v45, %v1641_v42  ;;  %v1474_v19 = vmul.f32 0.1, %v1470_v17  ;;  %v8233_v42 = vld [vmem:[%s9920_s5 + $0x8] ss:$0 sm:$0xff] }
 0x6e6   :  { %v1642_v56 = vadd.f32 %v8066_v45, %v1640_v53  ;;  %v1477_v45 = vsub.f32 %v1468_v30, %v1475_v22  ;;  %v8256_v17 = vld [vmem:[#allocation2 + $0x3e8] sm:$0xff]  ;;  %v8268_v22 = vld [vmem:[#allocation2 + $0x3d0] sm:$0xff] }
 0x6e7   :  { %v1476_v60 = vsub.f32 %v1467_v33, %v1474_v19  ;;  %v8264_v19 = vld [vmem:[#allocation2 + $0x3d8] sm:$0xff] }
 0x6e8   :  { %6299 = vmatprep.mubr.f32.mxu0 %v1642_v56  ;;  %v8205_v4 = vmul.f32 %v7937_v59, %v1477_v45  ;;  %v8284_v45 = vld [vmem:[#allocation2 + $0x3b0] sm:$0xff] }
 0x6e9   :  { %6300 = vmatmul.mubr.f32.vlgmr.msra.gmra.mxu0 %v1643_v43  ;;  %v8202_v3 = vmul.f32 %v7937_v59, %v1476_v60  ;;  %v8276_v60 = vld [vmem:[#allocation2 + $0x3c0] sm:$0xff] }
 0x6ea   :  { %v1481_v6 = vmul.f32 %v8205_v4, %v8205_v4  ;;  %6338 = vmatpush3.msra.mxu0 %v1844_v8 }
 0x6eb   :  { %v1480_v5 = vmul.f32 %v8202_v3, %v8202_v3  ;;  %6339 = vmatprep.subr.mxu0 %v1843_v9 }
 0x6ec   :  { %v1484_v7 = vsel %vm1262_vm0, %v1481_v6, 0.0  ;;  %6340 = vmatpush3.msra.mxu0 %v1843_v9  ;;  %v8322_v6 = vld [vmem:[#allocation2 + $0x468] sm:$0xff] }
 0x6ed   :  { %6341 = vmatprep.subr.mxu0 %v1842_v10 }
 0x6ee   :  { %6342 = vmatpush3.msra.mxu0 %v1842_v10 }
 0x6ef   :  { %6343 = vmatprep.subr.mxu0 %v1841_v11 }
 0x6f0   :  { %6344 = vmatpush3.msra.mxu0 %v1841_v11 }
 0x6f1   :  { %6345 = vmatprep.subr.mxu0 %v1840_v39 }
 0x6f2   :  { %6346 = vmatpush3.msra.mxu0 %v1840_v39 }
 0x6f3   :  { %6347 = vmatprep.subr.mxu0 %v1839_v47 }
 0x6f4   :  { %6348 = vmatpush3.msra.mxu0 %v1839_v47 }
 0x6f5   :  { %6349 = vmatprep.subr.mxu0 %v1838_v54 }
 0x6f6   :  { %6350 = vmatpush3.msra.mxu0 %v1838_v54 }
 0x6f7   :  { %6351 = vmatprep.subr.mxu0 %v1837_v48 }
 0x6f8   :  { %6352 = vmatpush3.msra.mxu0 %v1837_v48 }
 0x6f9   :  { %6353 = vmatprep.subr.mxu0 %v1836_v55 }
 0x6fa   :  { %6354 = vmatpush3.msra.mxu0 %v1836_v55 }
 0x6fb   :  { %6355 = vmatprep.subr.mxu0 %v1835_v46 }
 0x6fc   :  { %6356 = vmatpush3.msra.mxu0 %v1835_v46 }
 0x6fd   :  { %6357 = vmatprep.subr.mxu0 %v1834_v58 }
 0x6fe   :  { %6358 = vmatpush3.msra.mxu0 %v1834_v58 }
 0x6ff   :  { %6359 = vmatprep.subr.mxu0 %v1833_v15 }
 0x700   :  { %6360 = vmatpush3.msra.mxu0 %v1833_v15 }
 0x701   :  { %6361 = vmatprep.subr.mxu0 %v1832_v23 }
 0x702   :  { %6362 = vmatpush3.msra.mxu0 %v1832_v23 }
 0x703   :  { %6363 = vmatprep.subr.mxu0 %v1831_v24 }
 0x704   :  { %6364 = vmatpush3.msra.mxu0 %v1831_v24 }
 0x705   :  { %6365 = vmatprep.subr.mxu0 %v1830_v12 }
 0x706   :  { %6366 = vmatpush3.msra.mxu0 %v1830_v12 }
 0x707   :  { %6367 = vmatprep.subr.mxu0 %v1829_v44 }
 0x708   :  { %6368 = vmatpush3.msra.mxu0 %v1829_v44 }
 0x709   :  { %6407 = vmatprep.subr.mxu0 %v8213_v13 }
 0x7a9   :  { %v6301_v14 = vpop.f32.mrf.mxu0 }
 0x7aa   :  { %v1716_v21 = vadd.f32 %v6301_v14, %v8140_v0 }
 0x7ab   :  { %v1710_v57 = vpop.f32.mrf.mxu0 }
 0x7ac   :  { %v1711_v16 = vadd.f32 %v8140_v0, %v1710_v57  ;;  %v1720_v35 = vmax.f32 %v1716_v21, 0.0 }
 0x7ae   :  { %v1719_v32 = vmax.f32 %v1711_v16, 0.0 }
 0x7b0   :  { %6334 = vmatprep.mubr.f32.mxu1 %v1719_v32 }
 0x7b1   :  { %6335 = vmatmul.mubr.f32.vlgmr.msra.gmra.mxu1 %v1720_v35  ;;  %v8251_v35 = vld [vmem:[#allocation2 + $0x3f0] sm:$0xff] }
 0x7b2   :  { %6373 = vmatpush3.msra.mxu1 %v1844_v8  ;;  %v8330_v8 = vld [vmem:[#allocation2 + $0x458] sm:$0xff] }
 0x7b3   :  { %6374 = vmatprep.subr.mxu1 %v1843_v9 }
 0x7b4   :  { %6375 = vmatpush3.msra.mxu1 %v1843_v9  ;;  %v8334_v9 = vld [vmem:[#allocation2 + $0x450] sm:$0xff] }
 0x7b5   :  { %6376 = vmatprep.subr.mxu1 %v1842_v10 }
 0x7b6   :  { %6377 = vmatpush3.msra.mxu1 %v1842_v10  ;;  %v8338_v10 = vld [vmem:[#allocation2 + $0x448] sm:$0xff] }
 0x7b7   :  { %6378 = vmatprep.subr.mxu1 %v1841_v11 }
 0x7b8   :  { %6379 = vmatpush3.msra.mxu1 %v1841_v11  ;;  %v8342_v11 = vld [vmem:[#allocation2 + $0x440] sm:$0xff] }
 0x7b9   :  { %6380 = vmatprep.subr.mxu1 %v1840_v39 }
 0x7ba   :  { %6381 = vmatpush3.msra.mxu1 %v1840_v39  ;;  %v8346_v39 = vld [vmem:[#allocation2 + $0x438] sm:$0xff] }
 0x7bb   :  { %6382 = vmatprep.subr.mxu1 %v1839_v47 }
 0x7bc   :  { %6383 = vmatpush3.msra.mxu1 %v1839_v47  ;;  %v8350_v47 = vld [vmem:[#allocation2 + $0x430] sm:$0xff] }
 0x7bd   :  { %6384 = vmatprep.subr.mxu1 %v1838_v54 }
 0x7be   :  { %6385 = vmatpush3.msra.mxu1 %v1838_v54  ;;  %v8354_v54 = vld [vmem:[#allocation2 + $0x428] sm:$0xff] }
 0x7bf   :  { %6386 = vmatprep.subr.mxu1 %v1837_v48 }
 0x7c0   :  { %6387 = vmatpush3.msra.mxu1 %v1837_v48  ;;  %v8358_v48 = vld [vmem:[#allocation2 + $0x420] sm:$0xff] }
 0x7c1   :  { %6388 = vmatprep.subr.mxu1 %v1836_v55 }
 0x7c2   :  { %6389 = vmatpush3.msra.mxu1 %v1836_v55  ;;  %v8362_v55 = vld [vmem:[#allocation2 + $0x418] sm:$0xff] }
 0x7c3   :  { %6390 = vmatprep.subr.mxu1 %v1835_v46 }
 0x7c4   :  { %6391 = vmatpush3.msra.mxu1 %v1835_v46  ;;  %v8366_v46 = vld [vmem:[#allocation2 + $0x410] sm:$0xff] }
 0x7c5   :  { %6392 = vmatprep.subr.mxu1 %v1834_v58 }
 0x7c6   :  { %6393 = vmatpush3.msra.mxu1 %v1834_v58  ;;  %v8370_v58 = vld [vmem:[#allocation2 + $0x408] sm:$0xff] }
 0x7c7   :  { %6394 = vmatprep.subr.mxu1 %v1833_v15 }
 0x7c8   :  { %6395 = vmatpush3.msra.mxu1 %v1833_v15  ;;  %v8374_v15 = vld [vmem:[#allocation2 + $0x400] sm:$0xff] }
 0x7c9   :  { %6396 = vmatprep.subr.mxu1 %v1832_v23 }
 0x7ca   :  { %6397 = vmatpush3.msra.mxu1 %v1832_v23  ;;  %v8384_v23 = vld [vmem:[%s9918_s3 + $0x78] sm:$0xff] }
 0x7cb   :  { %6398 = vmatprep.subr.mxu1 %v1831_v24 }
 0x7cc   :  { %6399 = vmatpush3.msra.mxu1 %v1831_v24  ;;  %v8391_v24 = vld [vmem:[%s9918_s3 + $0x70] sm:$0xff] }
 0x7cd   :  { %6400 = vmatprep.subr.mxu1 %v1830_v12 }
 0x7ce   :  { %6401 = vmatpush3.msra.mxu1 %v1830_v12  ;;  %v8398_v12 = vld [vmem:[%s9918_s3 + $0x68] sm:$0xff] }
 0x7cf   :  { %6402 = vmatprep.subr.mxu1 %v1829_v44 }
 0x7d0   :  { %6403 = vmatpush3.msra.mxu1 %v1829_v44  ;;  %v8405_v44 = vld [vmem:[%s9918_s3 + $0x60] sm:$0xff] }
 0x7d1   :  { %6442 = vmatprep.subr.mxu1 %v8213_v13 }
 0x871   :  { %v6336_v20 = vpop.f32.mrf.mxu1 }
 0x872   :  { %v1793_v61 = vadd.f32 %v6336_v20, %v4821_v25  ;;  %v8272_v20 = vld [vmem:[#allocation2 + $0x3c8] sm:$0xff] }
 0x873   :  { %v1787_v62 = vpop.f32.mrf.mxu1 }
 0x874   :  { %v1788_v63 = vadd.f32 %v4821_v25, %v1787_v62  ;;  %v8195_v1 = vadd.f32 %v1793_v61, %v1643_v43  ;;  %v8239_v43 = vld [vmem:[%s9920_s5 + $0x9] ss:$0 sm:$0xff]  ;;  %v8280_v61 = vld [vmem:[#allocation2 + $0x3b8] sm:$0xff] }
 0x875   :  { %v8288_v62 = vld [vmem:[#allocation2 + $0x3a8] sm:$0xff] }
 0x876   :  { %v1800_v2 = vsel %vm1262_vm0, %v8195_v1, 0.0  ;;  %v8199_v0 = vadd.f32 %v1788_v63, %v1642_v56  ;;  %v8292_v63 = vld [vmem:[#allocation2 + $0x3a0] sm:$0xff] }
 0x877   :  { %1801 = vadd.xlane.f32.xlu1 %v1800_v2  ;;  %v8300_v2 = vld [vmem:[#allocation2 + $0x390] sm:$0xff] }
 0x878   :  { %1798 = vadd.xlane.f32.xlu0 %v8199_v0 }
 0x87c   :  { %1482 = vadd.xlane.f32.xlu0 %v1480_v5  ;;  %v8316_v5 = vld [vmem:[#allocation2 + $0x470] sm:$0xff] }
 0x880   :  { %1485 = vadd.xlane.f32.xlu0 %v1484_v7  ;;  %v8326_v7 = vld [vmem:[#allocation2 + $0x460] sm:$0xff] }
 0x900   :  { %v1802_v25 = vpop.xlane.xlu1 %1801 }
 0x901   :  { %v1804_v26 = vmul.f32 0.1, %v1802_v25  ;;  %v1799_v27 = vpop.xlane.xlu0 %1798  ;;  %v8412_v25 = vld [vmem:[%s9918_s3 + $0x58] sm:$0xff] }
 0x902   :  { %v1803_v28 = vmul.f32 0.1, %v1799_v27  ;;  %v8426_v27 = vld [vmem:[%s9918_s3 + $0x48] sm:$0xff] }
 0x903   :  { %v1806_v29 = vsub.f32 %v8195_v1, %v1804_v26  ;;  %v8296_v1 = vld [vmem:[#allocation2 + $0x398] sm:$0xff]  ;;  %v8419_v26 = vld [vmem:[%s9918_s3 + $0x50] sm:$0xff] }
 0x904   :  { %v1805_v30 = vsub.f32 %v8199_v0, %v1803_v28  ;;  %v8304_v0 = vld [vmem:[#allocation2 + $0x388] sm:$0xff]  ;;  %v8433_v28 = vld [vmem:[%s9918_s3 + $0x40] sm:$0xff] }
 0x905   :  { %v1483_v31 = vpop.xlane.xlu0 %1482  ;;  %v8220_v33 = vmul.f32 %v7937_v59, %v1806_v29  ;;  %v8440_v29 = vld [vmem:[%s9918_s3 + $0x38] sm:$0xff] }
 0x906   :  { %v1487_v34 = vmul.f32 0.1, %v1483_v31  ;;  %v8223_v36 = vmul.f32 %v7937_v59, %v1805_v30  ;;  %v8447_v30 = vld [vmem:[%s9918_s3 + $0x30] sm:$0xff]  ;;  %v8454_v31 = vld [vmem:[%s9918_s3 + $0x28] sm:$0xff] }
 0x907   :  { %v1810_v49 = vmul.f32 %v8220_v33, %v8220_v33 }
 0x908   :  { %v1489_v37 = vadd.f32 1e-05, %v1487_v34  ;;  %v1809_v38 = vmul.f32 %v8223_v36, %v8223_v36  ;;  %v8461_v34 = vld [vmem:[%s9918_s3 + $0x20] sm:$0xff] }
 0x909   :  { %v1486_v40 = vpop.xlane.xlu0 %1485  ;;  %v1813_v41 = vsel %vm1262_vm0, %v1810_v49, 0.0  ;;  %v8489_v49 = vld [vmem:[%s9918_s3] sm:$0xff] }
 0x90a   :  { %7329 = vrsqrt.f32 %v1489_v37  ;;  %v1488_v50 = vmul.f32 0.1, %v1486_v40  ;;  %1811 = vadd.xlane.f32.xlu1 %v1809_v38  ;;  %v8468_v37 = vld [vmem:[%s9918_s3 + $0x18] sm:$0xff]  ;;  %v8475_v38 = vld [vmem:[%s9918_s3 + $0x10] sm:$0xff]  ;;  %v8482_v40 = vld [vmem:[%s9918_s3 + $0x8] sm:$0xff] }
 0x90c   :  { %v1490_v51 = vadd.f32 1e-05, %v1488_v50 }
 0x90e   :  { %7331 = vrsqrt.f32 %v1490_v51  ;;  %1814 = vadd.xlane.f32.xlu1 %v1813_v41 }
 0x917   :  { %v7330_v52 = vpop.eup %7329 }
 0x918   :  { %v1493_v53 = vmul.f32 %v7330_v52, %v8202_v3  ;;  %v8308_v3 = vld [vmem:[#allocation2 + $0x380] sm:$0xff] }
 0x91a   :  { %v1501_v56 = vmul.f32 %v8233_v42, %v1493_v53 }
 0x91b   :  { %v7332_v14 = vpop.eup %7331 }
 0x91c   :  { %v8243_v21 = vadd.f32 %v8239_v43, %v1501_v56  ;;  %v1494_v57 = vmul.f32 %v7332_v14, %v8205_v4  ;;  %v8312_v4 = vld [vmem:[#allocation2 + $0x478] sm:$0xff] }
 0x91e   :  { %9991 = vst [vmem:[#allocation9_spill] sm:$0xff] %v8243_v21  ;;  %6369 = vmatprep.mubr.f32.mxu0 %v8243_v21  ;;  %v1502_v16 = vmul.f32 %v8233_v42, %v1494_v57 }
 0x920   :  { %v8249_v32 = vadd.f32 %v8239_v43, %v1502_v16 }
 0x922   :  { %9992 = vst [vmem:[#allocation10_spill] sm:$0xff] %v8249_v32  ;;  %6370 = vmatmul.mubr.f32.vlgmr.msra.gmra.mxu0 %v8249_v32 }
 0x923   :  { %6408 = vmatpush3.msra.mxu0 %v8213_v13  ;;  %6439 = vmatprep.mubr.f32.mxu0 %v8243_v21 }
 0x924   :  { %6409 = vmatprep.subr.mxu0 %v8251_v35 }
 0x925   :  { %6410 = vmatpush3.msra.mxu0 %v8251_v35 }
 0x926   :  { %6411 = vmatprep.subr.mxu0 %v8256_v17 }
 0x927   :  { %6412 = vmatpush3.msra.mxu0 %v8256_v17 }
 0x928   :  { %6413 = vmatprep.subr.mxu0 %v8260_v18 }
 0x929   :  { %6414 = vmatpush3.msra.mxu0 %v8260_v18 }
 0x92a   :  { %6415 = vmatprep.subr.mxu0 %v8264_v19 }
 0x92b   :  { %6416 = vmatpush3.msra.mxu0 %v8264_v19 }
 0x92c   :  { %6417 = vmatprep.subr.mxu0 %v8268_v22 }
 0x92d   :  { %6418 = vmatpush3.msra.mxu0 %v8268_v22 }
 0x92e   :  { %6419 = vmatprep.subr.mxu0 %v8272_v20 }
 0x92f   :  { %6420 = vmatpush3.msra.mxu0 %v8272_v20 }
 0x930   :  { %6421 = vmatprep.subr.mxu0 %v8276_v60 }
 0x931   :  { %6422 = vmatpush3.msra.mxu0 %v8276_v60 }
 0x932   :  { %6423 = vmatprep.subr.mxu0 %v8280_v61 }
 0x933   :  { %6424 = vmatpush3.msra.mxu0 %v8280_v61 }
 0x934   :  { %6425 = vmatprep.subr.mxu0 %v8284_v45 }
 0x935   :  { %6426 = vmatpush3.msra.mxu0 %v8284_v45 }
 0x936   :  { %6427 = vmatprep.subr.mxu0 %v8288_v62 }
 0x937   :  { %6428 = vmatpush3.msra.mxu0 %v8288_v62 }
 0x938   :  { %6429 = vmatprep.subr.mxu0 %v8292_v63 }
 0x939   :  { %6430 = vmatpush3.msra.mxu0 %v8292_v63 }
 0x93a   :  { %6431 = vmatprep.subr.mxu0 %v8296_v1 }
 0x93b   :  { %6432 = vmatpush3.msra.mxu0 %v8296_v1 }
 0x93c   :  { %6433 = vmatprep.subr.mxu0 %v8300_v2 }
 0x93d   :  { %6434 = vmatpush3.msra.mxu0 %v8300_v2 }
 0x93e   :  { %6435 = vmatprep.subr.mxu0 %v8304_v0 }
 0x93f   :  { %6436 = vmatpush3.msra.mxu0 %v8304_v0 }
 0x940   :  { %6437 = vmatprep.subr.mxu0 %v8308_v3 }
 0x941   :  { %6438 = vmatpush3.msra.mxu0 %v8308_v3 }
 0x942   :  { %6440 = vmatmul.mubr.f32.vlgmr.msra.gmra.mxu0 %v8249_v32  ;;  %6477 = vmatprep.subr.mxu0 %v8312_v4 }
 0x943   :  { %6478 = vmatpush3.msra.mxu0 %v8312_v4  ;;  %6509 = vmatprep.mubr.f32.mxu0 %v8243_v21 }
 0x944   :  { %6479 = vmatprep.subr.mxu0 %v8316_v5 }
 0x945   :  { %6480 = vmatpush3.msra.mxu0 %v8316_v5 }
 0x946   :  { %6481 = vmatprep.subr.mxu0 %v8322_v6 }
 0x947   :  { %6482 = vmatpush3.msra.mxu0 %v8322_v6 }
 0x948   :  { %6483 = vmatprep.subr.mxu0 %v8326_v7 }
 0x949   :  { %6484 = vmatpush3.msra.mxu0 %v8326_v7 }
 0x94a   :  { %6485 = vmatprep.subr.mxu0 %v8330_v8 }
 0x94b   :  { %6486 = vmatpush3.msra.mxu0 %v8330_v8 }
 0x94c   :  { %6487 = vmatprep.subr.mxu0 %v8334_v9 }
 0x94d   :  { %6488 = vmatpush3.msra.mxu0 %v8334_v9 }
 0x94e   :  { %6489 = vmatprep.subr.mxu0 %v8338_v10 }
 0x94f   :  { %6490 = vmatpush3.msra.mxu0 %v8338_v10 }
 0x950   :  { %6491 = vmatprep.subr.mxu0 %v8342_v11 }
 0x951   :  { %6492 = vmatpush3.msra.mxu0 %v8342_v11 }
 0x952   :  { %6493 = vmatprep.subr.mxu0 %v8346_v39 }
 0x953   :  { %6494 = vmatpush3.msra.mxu0 %v8346_v39 }
 0x954   :  { %6495 = vmatprep.subr.mxu0 %v8350_v47 }
 0x955   :  { %6496 = vmatpush3.msra.mxu0 %v8350_v47 }
 0x956   :  { %6497 = vmatprep.subr.mxu0 %v8354_v54 }
 0x957   :  { %6498 = vmatpush3.msra.mxu0 %v8354_v54 }
 0x958   :  { %6499 = vmatprep.subr.mxu0 %v8358_v48 }
 0x959   :  { %6500 = vmatpush3.msra.mxu0 %v8358_v48 }
 0x95a   :  { %6501 = vmatprep.subr.mxu0 %v8362_v55 }
 0x95b   :  { %6502 = vmatpush3.msra.mxu0 %v8362_v55 }
 0x95c   :  { %6503 = vmatprep.subr.mxu0 %v8366_v46 }
 0x95d   :  { %6504 = vmatpush3.msra.mxu0 %v8366_v46 }
 0x95e   :  { %6505 = vmatprep.subr.mxu0 %v8370_v58 }
 0x95f   :  { %6506 = vmatpush3.msra.mxu0 %v8370_v58 }
 0x960   :  { %6507 = vmatprep.subr.mxu0 %v8374_v15 }
 0x961   :  { %6508 = vmatpush3.msra.mxu0 %v8374_v15 }
 0x962   :  { %6510 = vmatmul.mubr.f32.vlgmr.msra.gmra.mxu0 %v8249_v32  ;;  %6547 = vmatprep.subr.mxu0 %v8384_v23 }
 0x963   :  { %6548 = vmatpush3.msra.mxu0 %v8384_v23 }
 0x964   :  { %6549 = vmatprep.subr.mxu0 %v8391_v24 }
 0x965   :  { %6550 = vmatpush3.msra.mxu0 %v8391_v24 }
 0x966   :  { %6551 = vmatprep.subr.mxu0 %v8398_v12 }
 0x967   :  { %6552 = vmatpush3.msra.mxu0 %v8398_v12 }
 0x968   :  { %6553 = vmatprep.subr.mxu0 %v8405_v44 }
 0x969   :  { %6554 = vmatpush3.msra.mxu0 %v8405_v44 }
 0x96a   :  { %6555 = vmatprep.subr.mxu0 %v8412_v25 }
 0x96b   :  { %6556 = vmatpush3.msra.mxu0 %v8412_v25 }
 0x96c   :  { %6557 = vmatprep.subr.mxu0 %v8419_v26 }
 0x96d   :  { %6558 = vmatpush3.msra.mxu0 %v8419_v26 }
 0x96e   :  { %6559 = vmatprep.subr.mxu0 %v8426_v27 }
 0x96f   :  { %6560 = vmatpush3.msra.mxu0 %v8426_v27 }
 0x970   :  { %6561 = vmatprep.subr.mxu0 %v8433_v28 }
 0x971   :  { %6562 = vmatpush3.msra.mxu0 %v8433_v28 }
 0x972   :  { %6563 = vmatprep.subr.mxu0 %v8440_v29 }
 0x973   :  { %6564 = vmatpush3.msra.mxu0 %v8440_v29 }
 0x974   :  { %6565 = vmatprep.subr.mxu0 %v8447_v30 }
 0x975   :  { %6566 = vmatpush3.msra.mxu0 %v8447_v30 }
 0x976   :  { %6567 = vmatprep.subr.mxu0 %v8454_v31 }
 0x977   :  { %6568 = vmatpush3.msra.mxu0 %v8454_v31 }
 0x978   :  { %6569 = vmatprep.subr.mxu0 %v8461_v34 }
 0x979   :  { %6570 = vmatpush3.msra.mxu0 %v8461_v34 }
 0x97a   :  { %6571 = vmatprep.subr.mxu0 %v8468_v37 }
 0x97b   :  { %6572 = vmatpush3.msra.mxu0 %v8468_v37 }
 0x97c   :  { %6573 = vmatprep.subr.mxu0 %v8475_v38 }
 0x97d   :  { %6574 = vmatpush3.msra.mxu0 %v8475_v38 }
 0x97e   :  { %6575 = vmatprep.subr.mxu0 %v8482_v40 }
 0x97f   :  { %6576 = vmatpush3.msra.mxu0 %v8482_v40 }
 0x980   :  { %6577 = vmatprep.subr.mxu0 %v8489_v49 }
 0x981   :  { %6578 = vmatpush3.msra.mxu0 %v8489_v49 }
 0x982   :  { %6617 = vmatprep.subr.mxu0 %v8384_v23 }
 0x993   :  { %v1812_v50 = vpop.xlane.xlu1 %1811 }
 0x994   :  { %v1816_v51 = vmul.f32 0.1, %v1812_v50 }
 0x996   :  { %v1818_v41 = vadd.f32 1e-05, %v1816_v51 }
 0x997   :  { %v1815_v52 = vpop.xlane.xlu1 %1814 }
 0x998   :  { %7333 = vrsqrt.f32 %v1818_v41  ;;  %v1817_v53 = vmul.f32 0.1, %v1815_v52 }
 0x99a   :  { %v1819_v56 = vadd.f32 1e-05, %v1817_v53 }
 0x99c   :  { %7335 = vrsqrt.f32 %v1819_v56 }
 0x9a5   :  { %v7334_v14 = vpop.eup %7333 }
 0x9a6   :  { %v1822_v57 = vmul.f32 %v7334_v14, %v8223_v36 }
 0x9a8   :  { %v1824_v16 = vmul.f32 %v8233_v42, %v1822_v57 }
 0x9a9   :  { %v7336_v59 = vpop.eup %7335 }
 0x9aa   :  { %v8497_v21 = vadd.f32 %v8239_v43, %v1824_v16  ;;  %v1823_v32 = vmul.f32 %v7336_v59, %v8220_v33  ;;  %v8593_v33 = vld [vmem:[%s9920_s5 + $0xb] ss:$0 sm:$0xff] }
 0x9ac   :  { %6404 = vmatprep.mubr.f32.mxu1 %v8497_v21  ;;  %v1825_v50 = vmul.f32 %v8233_v42, %v1823_v32  ;;  %v4834_v42 = vld [vmem:[%s9920_s5 + $0xa] ss:$0 sm:$0xff] }
 0x9ae   :  { %v8503_v51 = vadd.f32 %v8239_v43, %v1825_v50 }
 0x9b0   :  { %6405 = vmatmul.mubr.f32.vlgmr.msra.gmra.mxu1 %v8503_v51 }
 0x9b1   :  { %6443 = vmatpush3.msra.mxu1 %v8213_v13  ;;  %6474 = vmatprep.mubr.f32.mxu1 %v8497_v21 }
 0x9b2   :  { %6444 = vmatprep.subr.mxu1 %v8251_v35 }
 0x9b3   :  { %6445 = vmatpush3.msra.mxu1 %v8251_v35 }
 0x9b4   :  { %6446 = vmatprep.subr.mxu1 %v8256_v17 }
 0x9b5   :  { %6447 = vmatpush3.msra.mxu1 %v8256_v17 }
 0x9b6   :  { %6448 = vmatprep.subr.mxu1 %v8260_v18 }
 0x9b7   :  { %6449 = vmatpush3.msra.mxu1 %v8260_v18 }
 0x9b8   :  { %6450 = vmatprep.subr.mxu1 %v8264_v19 }
 0x9b9   :  { %6451 = vmatpush3.msra.mxu1 %v8264_v19 }
 0x9ba   :  { %6452 = vmatprep.subr.mxu1 %v8268_v22 }
 0x9bb   :  { %6453 = vmatpush3.msra.mxu1 %v8268_v22 }
 0x9bc   :  { %6454 = vmatprep.subr.mxu1 %v8272_v20 }
 0x9bd   :  { %6455 = vmatpush3.msra.mxu1 %v8272_v20 }
 0x9be   :  { %6456 = vmatprep.subr.mxu1 %v8276_v60 }
 0x9bf   :  { %6457 = vmatpush3.msra.mxu1 %v8276_v60 }
 0x9c0   :  { %6458 = vmatprep.subr.mxu1 %v8280_v61 }
 0x9c1   :  { %6459 = vmatpush3.msra.mxu1 %v8280_v61 }
 0x9c2   :  { %6460 = vmatprep.subr.mxu1 %v8284_v45 }
 0x9c3   :  { %6461 = vmatpush3.msra.mxu1 %v8284_v45 }
 0x9c4   :  { %6462 = vmatprep.subr.mxu1 %v8288_v62 }
 0x9c5   :  { %6463 = vmatpush3.msra.mxu1 %v8288_v62 }
 0x9c6   :  { %6464 = vmatprep.subr.mxu1 %v8292_v63 }
 0x9c7   :  { %6465 = vmatpush3.msra.mxu1 %v8292_v63 }
 0x9c8   :  { %6466 = vmatprep.subr.mxu1 %v8296_v1 }
 0x9c9   :  { %6467 = vmatpush3.msra.mxu1 %v8296_v1 }
 0x9ca   :  { %6468 = vmatprep.subr.mxu1 %v8300_v2 }
 0x9cb   :  { %6469 = vmatpush3.msra.mxu1 %v8300_v2 }
 0x9cc   :  { %6470 = vmatprep.subr.mxu1 %v8304_v0 }
 0x9cd   :  { %6471 = vmatpush3.msra.mxu1 %v8304_v0 }
 0x9ce   :  { %6472 = vmatprep.subr.mxu1 %v8308_v3 }
 0x9cf   :  { %6473 = vmatpush3.msra.mxu1 %v8308_v3 }
 0x9d0   :  { %6475 = vmatmul.mubr.f32.vlgmr.msra.gmra.mxu1 %v8503_v51  ;;  %6512 = vmatprep.subr.mxu1 %v8312_v4 }
 0x9d1   :  { %6513 = vmatpush3.msra.mxu1 %v8312_v4  ;;  %6544 = vmatprep.mubr.f32.mxu1 %v8497_v21 }
 0x9d2   :  { %6514 = vmatprep.subr.mxu1 %v8316_v5 }
 0x9d3   :  { %6515 = vmatpush3.msra.mxu1 %v8316_v5 }
 0x9d4   :  { %6516 = vmatprep.subr.mxu1 %v8322_v6 }
 0x9d5   :  { %6517 = vmatpush3.msra.mxu1 %v8322_v6 }
 0x9d6   :  { %6518 = vmatprep.subr.mxu1 %v8326_v7 }
 0x9d7   :  { %6519 = vmatpush3.msra.mxu1 %v8326_v7 }
 0x9d8   :  { %6520 = vmatprep.subr.mxu1 %v8330_v8 }
 0x9d9   :  { %6521 = vmatpush3.msra.mxu1 %v8330_v8  ;;  %v8680_v8 = vld [vmem:[#allocation2 + $0x4f8] sm:$0xff] }
 0x9da   :  { %6522 = vmatprep.subr.mxu1 %v8334_v9 }
 0x9db   :  { %6523 = vmatpush3.msra.mxu1 %v8334_v9  ;;  %v8684_v9 = vld [vmem:[#allocation2 + $0x4f0] sm:$0xff] }
 0x9dc   :  { %6524 = vmatprep.subr.mxu1 %v8338_v10 }
 0x9dd   :  { %6525 = vmatpush3.msra.mxu1 %v8338_v10  ;;  %v8688_v10 = vld [vmem:[#allocation2 + $0x4e8] sm:$0xff] }
 0x9de   :  { %6526 = vmatprep.subr.mxu1 %v8342_v11 }
 0x9df   :  { %6527 = vmatpush3.msra.mxu1 %v8342_v11  ;;  %v8692_v11 = vld [vmem:[#allocation2 + $0x4e0] sm:$0xff] }
 0x9e0   :  { %6528 = vmatprep.subr.mxu1 %v8346_v39 }
 0x9e1   :  { %6529 = vmatpush3.msra.mxu1 %v8346_v39  ;;  %v8696_v39 = vld [vmem:[#allocation2 + $0x4d8] sm:$0xff] }
 0x9e2   :  { %6530 = vmatprep.subr.mxu1 %v8350_v47  ;;  %v6371_v59 = vpop.f32.mrf.mxu0 }
 0x9e3   :  { %6531 = vmatpush3.msra.mxu1 %v8350_v47  ;;  %v2028_v18 = vadd.f32 %v6371_v59, %v4834_v42  ;;  %v8700_v47 = vld [vmem:[#allocation2 + $0x4d0] sm:$0xff] }
 0x9e4   :  { %6532 = vmatprep.subr.mxu1 %v8354_v54  ;;  %v2022_v13 = vpop.f32.mrf.mxu0 }
 0x9e5   :  { %6533 = vmatpush3.msra.mxu1 %v8354_v54  ;;  %v2023_v35 = vadd.f32 %v4834_v42, %v2022_v13  ;;  %v8704_v54 = vld [vmem:[#allocation2 + $0x4c8] sm:$0xff] }
 0x9e6   :  { %6534 = vmatprep.subr.mxu1 %v8358_v48 }
 0x9e7   :  { %6535 = vmatpush3.msra.mxu1 %v8358_v48  ;;  %v8708_v48 = vld [vmem:[#allocation2 + $0x4c0] sm:$0xff] }
 0x9e8   :  { %6536 = vmatprep.subr.mxu1 %v8362_v55 }
 0x9e9   :  { %6537 = vmatpush3.msra.mxu1 %v8362_v55  ;;  %v8710_v55 = vld [vmem:[#allocation2 + $0x4b8] sm:$0xff] }
 0x9ea   :  { %6538 = vmatprep.subr.mxu1 %v8366_v46 }
 0x9eb   :  { %6539 = vmatpush3.msra.mxu1 %v8366_v46  ;;  %v8714_v46 = vld [vmem:[#allocation2 + $0x4b0] sm:$0xff] }
 0x9ec   :  { %6540 = vmatprep.subr.mxu1 %v8370_v58 }
 0x9ed   :  { %6541 = vmatpush3.msra.mxu1 %v8370_v58  ;;  %v8720_v58 = vld [vmem:[#allocation2 + $0x4a8] sm:$0xff] }
 0x9ee   :  { %6542 = vmatprep.subr.mxu1 %v8374_v15 }
 0x9ef   :  { %6543 = vmatpush3.msra.mxu1 %v8374_v15  ;;  %v8724_v15 = vld [vmem:[#allocation2 + $0x4a0] sm:$0xff] }
 0x9f0   :  { %6545 = vmatmul.mubr.f32.vlgmr.msra.gmra.mxu1 %v8503_v51  ;;  %6582 = vmatprep.subr.mxu1 %v8384_v23 }
 0x9f1   :  { %6583 = vmatpush3.msra.mxu1 %v8384_v23 }
 0x9f2   :  { %6584 = vmatprep.subr.mxu1 %v8391_v24 }
 0x9f3   :  { %6585 = vmatpush3.msra.mxu1 %v8391_v24 }
 0x9f4   :  { %6586 = vmatprep.subr.mxu1 %v8398_v12 }
 0x9f5   :  { %6587 = vmatpush3.msra.mxu1 %v8398_v12 }
 0x9f6   :  { %6588 = vmatprep.subr.mxu1 %v8405_v44 }
 0x9f7   :  { %6589 = vmatpush3.msra.mxu1 %v8405_v44 }
 0x9f8   :  { %6590 = vmatprep.subr.mxu1 %v8412_v25 }
 0x9f9   :  { %6591 = vmatpush3.msra.mxu1 %v8412_v25 }
 0x9fa   :  { %6592 = vmatprep.subr.mxu1 %v8419_v26 }
 0x9fb   :  { %6593 = vmatpush3.msra.mxu1 %v8419_v26 }
 0x9fc   :  { %6594 = vmatprep.subr.mxu1 %v8426_v27 }
 0x9fd   :  { %6595 = vmatpush3.msra.mxu1 %v8426_v27 }
 0x9fe   :  { %6596 = vmatprep.subr.mxu1 %v8433_v28 }
 0x9ff   :  { %6597 = vmatpush3.msra.mxu1 %v8433_v28 }
 0xa00   :  { %6598 = vmatprep.subr.mxu1 %v8440_v29 }
 0xa01   :  { %6599 = vmatpush3.msra.mxu1 %v8440_v29 }
 0xa02   :  { %v6441_v36 = vpop.f32.mrf.mxu0  ;;  %6600 = vmatprep.subr.mxu1 %v8447_v30 }
 0xa03   :  { %6601 = vmatpush3.msra.mxu1 %v8447_v30  ;;  %v2184_v43 = vadd.f32 %v6441_v36, %v8593_v33 }
 0xa04   :  { %v2178_v32 = vpop.f32.mrf.mxu0  ;;  %6602 = vmatprep.subr.mxu1 %v8454_v31 }
 0xa05   :  { %v2179_v17 = vadd.f32 %v8593_v33, %v2178_v32  ;;  %6603 = vmatpush3.msra.mxu1 %v8454_v31  ;;  %v2419_v22 = vmul.f32 %v2184_v43, %v2028_v18 }
 0xa06   :  { %6604 = vmatprep.subr.mxu1 %v8461_v34 }
 0xa07   :  { %v2418_v19 = vmul.f32 %v2179_v17, %v2023_v35  ;;  %6605 = vmatpush3.msra.mxu1 %v8461_v34 }
 0xa08   :  { %6606 = vmatprep.subr.mxu1 %v8468_v37 }
 0xa09   :  { %6579 = vmatprep.mubr.f32.mxu0 %v2418_v19  ;;  %6607 = vmatpush3.msra.mxu1 %v8468_v37 }
 0xa0a   :  { %6580 = vmatmul.mubr.f32.vlgmr.msra.gmra.mxu0 %v2419_v22  ;;  %6608 = vmatprep.subr.mxu1 %v8475_v38 }
 0xa0b   :  { %6618 = vmatpush3.msra.mxu0 %v8384_v23  ;;  %6609 = vmatpush3.msra.mxu1 %v8475_v38 }
 0xa0c   :  { %6619 = vmatprep.subr.mxu0 %v8391_v24  ;;  %6610 = vmatprep.subr.mxu1 %v8482_v40 }
 0xa0d   :  { %6620 = vmatpush3.msra.mxu0 %v8391_v24  ;;  %6611 = vmatpush3.msra.mxu1 %v8482_v40 }
 0xa0e   :  { %6621 = vmatprep.subr.mxu0 %v8398_v12  ;;  %6612 = vmatprep.subr.mxu1 %v8489_v49 }
 0xa0f   :  { %6622 = vmatpush3.msra.mxu0 %v8398_v12  ;;  %6613 = vmatpush3.msra.mxu1 %v8489_v49 }
 0xa10   :  { %6623 = vmatprep.subr.mxu0 %v8405_v44  ;;  %6652 = vmatprep.subr.mxu1 %v8384_v23 }
 0xa11   :  { %6624 = vmatpush3.msra.mxu0 %v8405_v44 }
 0xa12   :  { %6625 = vmatprep.subr.mxu0 %v8412_v25 }
 0xa13   :  { %6626 = vmatpush3.msra.mxu0 %v8412_v25 }
 0xa14   :  { %6627 = vmatprep.subr.mxu0 %v8419_v26 }
 0xa15   :  { %6628 = vmatpush3.msra.mxu0 %v8419_v26 }
 0xa16   :  { %6629 = vmatprep.subr.mxu0 %v8426_v27 }
 0xa17   :  { %6630 = vmatpush3.msra.mxu0 %v8426_v27 }
 0xa18   :  { %6631 = vmatprep.subr.mxu0 %v8433_v28 }
 0xa19   :  { %6632 = vmatpush3.msra.mxu0 %v8433_v28 }
 0xa1a   :  { %6633 = vmatprep.subr.mxu0 %v8440_v29 }
 0xa1b   :  { %6634 = vmatpush3.msra.mxu0 %v8440_v29 }
 0xa1c   :  { %6635 = vmatprep.subr.mxu0 %v8447_v30 }
 0xa1d   :  { %6636 = vmatpush3.msra.mxu0 %v8447_v30 }
 0xa1e   :  { %6637 = vmatprep.subr.mxu0 %v8454_v31 }
 0xa1f   :  { %6638 = vmatpush3.msra.mxu0 %v8454_v31 }
 0xa20   :  { %6639 = vmatprep.subr.mxu0 %v8461_v34 }
 0xa21   :  { %6640 = vmatpush3.msra.mxu0 %v8461_v34 }
 0xa22   :  { %6641 = vmatprep.subr.mxu0 %v8468_v37 }
 0xa23   :  { %6642 = vmatpush3.msra.mxu0 %v8468_v37 }
 0xa24   :  { %6643 = vmatprep.subr.mxu0 %v8475_v38 }
 0xa25   :  { %6644 = vmatpush3.msra.mxu0 %v8475_v38 }
 0xa26   :  { %6645 = vmatprep.subr.mxu0 %v8482_v40 }
 0xa27   :  { %6646 = vmatpush3.msra.mxu0 %v8482_v40 }
 0xa28   :  { %6647 = vmatprep.subr.mxu0 %v8489_v49 }
 0xa29   :  { %6648 = vmatpush3.msra.mxu0 %v8489_v49 }
 0xa2a   :  { %6687 = vmatprep.subr.mxu0 %v8680_v8 }
 0xa70   :  { %v6406_v20 = vpop.f32.mrf.mxu1 }
 0xa71   :  { %v2103_v60 = vadd.f32 %v6406_v20, %v4834_v42 }
 0xa72   :  { %v2097_v61 = vpop.f32.mrf.mxu1 }
 0xa73   :  { %v2098_v45 = vadd.f32 %v4834_v42, %v2097_v61  ;;  %v2577_v63 = vmul.f32 %v2184_v43, %v2103_v60 }
 0xa75   :  { %v2576_v62 = vmul.f32 %v2179_v17, %v2098_v45 }
 0xa77   :  { %6649 = vmatprep.mubr.f32.mxu0 %v2576_v62 }
 0xa78   :  { %6650 = vmatmul.mubr.f32.vlgmr.msra.gmra.mxu0 %v2577_v63 }
 0xa79   :  { %6688 = vmatpush3.msra.mxu0 %v8680_v8 }
 0xa7a   :  { %6689 = vmatprep.subr.mxu0 %v8684_v9 }
 0xa7b   :  { %6690 = vmatpush3.msra.mxu0 %v8684_v9 }
 0xa7c   :  { %6691 = vmatprep.subr.mxu0 %v8688_v10 }
 0xa7d   :  { %6692 = vmatpush3.msra.mxu0 %v8688_v10 }
 0xa7e   :  { %6693 = vmatprep.subr.mxu0 %v8692_v11 }
 0xa7f   :  { %6694 = vmatpush3.msra.mxu0 %v8692_v11 }
 0xa80   :  { %6695 = vmatprep.subr.mxu0 %v8696_v39 }
 0xa81   :  { %6696 = vmatpush3.msra.mxu0 %v8696_v39 }
 0xa82   :  { %6697 = vmatprep.subr.mxu0 %v8700_v47 }
 0xa83   :  { %6698 = vmatpush3.msra.mxu0 %v8700_v47 }
 0xa84   :  { %6699 = vmatprep.subr.mxu0 %v8704_v54 }
 0xa85   :  { %6700 = vmatpush3.msra.mxu0 %v8704_v54 }
 0xa86   :  { %6701 = vmatprep.subr.mxu0 %v8708_v48 }
 0xa87   :  { %6702 = vmatpush3.msra.mxu0 %v8708_v48 }
 0xa88   :  { %6703 = vmatprep.subr.mxu0 %v8710_v55 }
 0xa89   :  { %6704 = vmatpush3.msra.mxu0 %v8710_v55 }
 0xa8a   :  { %6705 = vmatprep.subr.mxu0 %v8714_v46 }
 0xa8b   :  { %6706 = vmatpush3.msra.mxu0 %v8714_v46 }
 0xa8c   :  { %6707 = vmatprep.subr.mxu0 %v8720_v58 }
 0xa8d   :  { %6708 = vmatpush3.msra.mxu0 %v8720_v58 }
 0xa8e   :  { %6709 = vmatprep.subr.mxu0 %v8724_v15 }
 0xa8f   :  { %6710 = vmatpush3.msra.mxu0 %v8724_v15 }
 0xa90   :  { %v6476_v1 = vpop.f32.mrf.mxu1 }
 0xa91   :  { %v2259_v2 = vadd.f32 %v6476_v1, %v8593_v33 }
 0xa92   :  { %v2253_v0 = vpop.f32.mrf.mxu1 }
 0xa93   :  { %v2254_v3 = vadd.f32 %v8593_v33, %v2253_v0  ;;  %v2498_v5 = vmul.f32 %v2259_v2, %v2028_v18  ;;  %v2656_v7 = vmul.f32 %v2259_v2, %v2103_v60  ;;  %v4836_v18 = vld [vmem:[%s9920_s5 + $0xc] ss:$0 sm:$0xff] }
 0xa95   :  { %v2497_v4 = vmul.f32 %v2254_v3, %v2023_v35  ;;  %v2655_v6 = vmul.f32 %v2254_v3, %v2098_v45 }
 0xa97   :  { %6614 = vmatprep.mubr.f32.mxu1 %v2497_v4 }
 0xa98   :  { %6615 = vmatmul.mubr.f32.vlgmr.msra.gmra.mxu1 %v2498_v5 }
 0xa99   :  { %6653 = vmatpush3.msra.mxu1 %v8384_v23  ;;  %6684 = vmatprep.mubr.f32.mxu1 %v2655_v6  ;;  %v8728_v23 = vld [vmem:[#allocation2 + $0x498] sm:$0xff] }
 0xa9a   :  { %6654 = vmatprep.subr.mxu1 %v8391_v24  ;;  %6711 = vmatprep.subr.mxu0 %v8728_v23 }
 0xa9b   :  { %6655 = vmatpush3.msra.mxu1 %v8391_v24  ;;  %6712 = vmatpush3.msra.mxu0 %v8728_v23  ;;  %v8732_v24 = vld [vmem:[#allocation2 + $0x490] sm:$0xff] }
 0xa9c   :  { %6656 = vmatprep.subr.mxu1 %v8398_v12  ;;  %6713 = vmatprep.subr.mxu0 %v8732_v24 }
 0xa9d   :  { %6657 = vmatpush3.msra.mxu1 %v8398_v12  ;;  %6714 = vmatpush3.msra.mxu0 %v8732_v24  ;;  %v8736_v12 = vld [vmem:[#allocation2 + $0x488] sm:$0xff] }
 0xa9e   :  { %6658 = vmatprep.subr.mxu1 %v8405_v44  ;;  %6715 = vmatprep.subr.mxu0 %v8736_v12 }
 0xa9f   :  { %6659 = vmatpush3.msra.mxu1 %v8405_v44  ;;  %6716 = vmatpush3.msra.mxu0 %v8736_v12  ;;  %v8740_v44 = vld [vmem:[#allocation2 + $0x480] sm:$0xff] }
 0xaa0   :  { %6660 = vmatprep.subr.mxu1 %v8412_v25  ;;  %6717 = vmatprep.subr.mxu0 %v8740_v44 }
 0xaa1   :  { %6661 = vmatpush3.msra.mxu1 %v8412_v25  ;;  %6718 = vmatpush3.msra.mxu0 %v8740_v44  ;;  %v6511_v25 = vpop.f32.mrf.mxu0 }
 0xaa2   :  { %6662 = vmatprep.subr.mxu1 %v8419_v26  ;;  %v2340_v61 = vadd.f32 %v6511_v25, %v4836_v18 }
 0xaa3   :  { %6663 = vmatpush3.msra.mxu1 %v8419_v26  ;;  %v2334_v26 = vpop.f32.mrf.mxu0 }
 0xaa4   :  { %6664 = vmatprep.subr.mxu1 %v8426_v27  ;;  %v2335_v45 = vadd.f32 %v4836_v18, %v2334_v26 }
 0xaa5   :  { %6665 = vmatpush3.msra.mxu1 %v8426_v27 }
 0xaa6   :  { %6666 = vmatprep.subr.mxu1 %v8433_v28 }
 0xaa7   :  { %6667 = vmatpush3.msra.mxu1 %v8433_v28 }
 0xaa8   :  { %6668 = vmatprep.subr.mxu1 %v8440_v29 }
 0xaa9   :  { %6669 = vmatpush3.msra.mxu1 %v8440_v29 }
 0xaaa   :  { %6670 = vmatprep.subr.mxu1 %v8447_v30 }
 0xaab   :  { %6671 = vmatpush3.msra.mxu1 %v8447_v30 }
 0xaac   :  { %6672 = vmatprep.subr.mxu1 %v8454_v31 }
 0xaad   :  { %6673 = vmatpush3.msra.mxu1 %v8454_v31 }
 0xaae   :  { %6674 = vmatprep.subr.mxu1 %v8461_v34 }
 0xaaf   :  { %6675 = vmatpush3.msra.mxu1 %v8461_v34 }
 0xab0   :  { %6676 = vmatprep.subr.mxu1 %v8468_v37  ;;  %v6546_v27 = vpop.f32.mrf.mxu1 }
 0xab1   :  { %6677 = vmatpush3.msra.mxu1 %v8468_v37  ;;  %v2415_v1 = vadd.f32 %v6546_v27, %v4836_v18 }
 0xab2   :  { %6678 = vmatprep.subr.mxu1 %v8475_v38  ;;  %v2409_v29 = vpop.f32.mrf.mxu1 }
 0xab3   :  { %6679 = vmatpush3.msra.mxu1 %v8475_v38  ;;  %v2410_v62 = vadd.f32 %v4836_v18, %v2409_v29 }
 0xab4   :  { %6680 = vmatprep.subr.mxu1 %v8482_v40 }
 0xab5   :  { %6681 = vmatpush3.msra.mxu1 %v8482_v40 }
 0xab6   :  { %6682 = vmatprep.subr.mxu1 %v8489_v49 }
 0xab7   :  { %6683 = vmatpush3.msra.mxu1 %v8489_v49 }
 0xab8   :  { %6685 = vmatmul.mubr.f32.vlgmr.msra.gmra.mxu1 %v2656_v7 }
 0xaca   :  { %v6581_v28 = vpop.f32.mrf.mxu0 }
 0xacb   :  { %v2496_v34 = vmul.f32 0.4472136, %v6581_v28 }
 0xacc   :  { %v2486_v30 = vpop.f32.mrf.mxu0 }
 0xacd   :  { %v2495_v40 = vmul.f32 0.4472136, %v2486_v30 }
 0xb38   :  { %v6651_v17 = vpop.f32.mrf.mxu0 }
 0xb39   :  { %v2654_v20 = vmul.f32 0.4472136, %v6651_v17  ;;  %v8760_v17 = vld [vmem:[%s9920_s5 + $0xd] ss:$0 sm:$0xff] }
 0xb3a   :  { %v2644_v19 = vpop.f32.mrf.mxu0 }
 0xb3b   :  { %v2653_v2 = vmul.f32 0.4472136, %v2644_v19 }
 0xb58   :  { %v6616_v31 = vpop.f32.mrf.mxu1 }
 0xb59   :  { %v2575_v37 = vmul.f32 0.4472136, %v6616_v31 }
 0xb5a   :  { %v2565_v38 = vpop.f32.mrf.mxu1 }
 0xb5b   :  { %v2735_v49 = vmax.f32 %v2496_v34, %v2575_v37  ;;  %v2574_v41 = vmul.f32 0.4472136, %v2565_v38 }
 0xb5d   :  { %v2737_v52 = vsub.f32 %v2496_v34, %v2735_v49  ;;  %v2743_v53 = vsub.f32 %v2575_v37, %v2735_v49  ;;  %v2734_v56 = vmax.f32 %v2495_v40, %v2574_v41 }
 0xb5f   :  { %v2740_v14 = vmul.f32 1.442695, %v2737_v52  ;;  %v2746_v57 = vmul.f32 1.442695, %v2743_v53  ;;  %v2736_v16 = vsub.f32 %v2495_v40, %v2734_v56  ;;  %v2742_v50 = vsub.f32 %v2574_v41, %v2734_v56 }
 0xb61   :  { %7337 = vpow2.f32 %v2740_v14  ;;  %v2738_v59 = vmul.f32 1.442695, %v2736_v16  ;;  %v2744_v13 = vmul.f32 1.442695, %v2742_v50 }
 0xb62   :  { %7339 = vpow2.f32 %v2746_v57 }
 0xb63   :  { %7341 = vpow2.f32 %v2738_v59 }
 0xb64   :  { %7343 = vpow2.f32 %v2744_v13 }
 0xb6e   :  { %v7338_v33 = vpop.eup %7337 }
 0xb6f   :  { %v7340_v36 = vpop.eup %7339  ;;  %v2751_v6 = vmul.f32 %v7338_v33, %v2340_v61 }
 0xb70   :  { %v7342_v42 = vpop.eup %7341  ;;  %v2749_v43 = vadd.f32 %v7340_v36, %v7338_v33  ;;  %v2753_v31 = vmul.f32 %v7340_v36, %v2415_v1 }
 0xb71   :  { %v7344_v32 = vpop.eup %7343  ;;  %v2750_v4 = vmul.f32 %v7342_v42, %v2335_v45 }
 0xb72   :  { %v2748_v35 = vadd.f32 %v7344_v32, %v7342_v42  ;;  %7345 = vrcp.f32 %v2749_v43  ;;  %v2752_v5 = vmul.f32 %v7344_v32, %v2410_v62  ;;  %v2755_v41 = vadd.f32 %v2753_v31, %v2751_v6  ;;  %v9995_v31 = vld [vmem:[#allocation8_spill] sm:$0xff] }
 0xb74   :  { %7347 = vrcp.f32 %v2748_v35  ;;  %v2754_v25 = vadd.f32 %v2752_v5, %v2750_v4 }
 0xb78   :  { %v6686_v22 = vpop.f32.mrf.mxu1 }
 0xb79   :  { %v2733_v60 = vmul.f32 0.4472136, %v6686_v22 }
 0xb7a   :  { %v2723_v63 = vpop.f32.mrf.mxu1 }
 0xb7b   :  { %v3094_v0 = vmax.f32 %v2654_v20, %v2733_v60  ;;  %v2732_v3 = vmul.f32 0.4472136, %v2723_v63 }
 0xb7d   :  { %v3096_v7 = vsub.f32 %v2654_v20, %v3094_v0  ;;  %v3102_v28 = vsub.f32 %v2733_v60, %v3094_v0  ;;  %v3093_v30 = vmax.f32 %v2653_v2, %v2732_v3  ;;  %v9993_v60 = vld [vmem:[#allocation10_spill] sm:$0xff]  ;;  %v8773_v0 = vld [vmem:[#allocation2 + $0x568] sm:$0xff] }
 0xb7f   :  { %v3099_v34 = vmul.f32 1.442695, %v3096_v7  ;;  %v3105_v37 = vmul.f32 1.442695, %v3102_v28  ;;  %v3095_v38 = vsub.f32 %v2653_v2, %v3093_v30  ;;  %v3101_v40 = vsub.f32 %v2732_v3, %v3093_v30  ;;  %v7346_v49 = vpop.eup %7345  ;;  %v8769_v2 = vld [vmem:[#allocation2 + $0x570] sm:$0xff]  ;;  %v8777_v3 = vld [vmem:[#allocation2 + $0x560] sm:$0xff] }
 0xb80   :  { %v2759_v53 = vmul.f32 %v7346_v49, %v2755_v41  ;;  %v8808_v41 = vld [vmem:[#allocation2 + $0x538] sm:$0xff] }
 0xb81   :  { %v7348_v26 = vpop.eup %7347  ;;  %7349 = vpow2.f32 %v3099_v34  ;;  %v3097_v29 = vmul.f32 1.442695, %v3095_v38  ;;  %v3103_v27 = vmul.f32 1.442695, %v3101_v40 }
 0xb82   :  { %7351 = vpow2.f32 %v3105_v37  ;;  %v2758_v52 = vmul.f32 %v7348_v26, %v2754_v25  ;;  %v8794_v25 = vld [vmem:[#allocation2 + $0x558] sm:$0xff]  ;;  %v8798_v26 = vld [vmem:[#allocation2 + $0x550] sm:$0xff] }
 0xb83   :  { %7353 = vpow2.f32 %v3097_v29  ;;  %v8802_v29 = vld [vmem:[#allocation2 + $0x548] sm:$0xff] }
 0xb84   :  { %7355 = vpow2.f32 %v3103_v27  ;;  %6719 = vmatprep.mubr.f32.mxu0 %v2758_v52  ;;  %v8805_v27 = vld [vmem:[#allocation2 + $0x540] sm:$0xff]  ;;  %v8812_v52 = vld [vmem:[#allocation2 + $0x530] sm:$0xff] }
 0xb85   :  { %6720 = vmatmul.mubr.f32.vlgmr.msra.gmra.mxu0 %v2759_v53  ;;  %v8816_v53 = vld [vmem:[#allocation2 + $0x528] sm:$0xff] }
 0xb8e   :  { %v7350_v56 = vpop.eup %7349 }
 0xb8f   :  { %v7352_v14 = vpop.eup %7351  ;;  %v3110_v57 = vmul.f32 %v7350_v56, %v2340_v61 }
 0xb90   :  { %v8747_v16 = vpop.eup %7353  ;;  %v3108_v50 = vadd.f32 %v7352_v14, %v7350_v56  ;;  %v3112_v59 = vmul.f32 %v7352_v14, %v2415_v1  ;;  %v8767_v1 = vld [vmem:[#allocation2 + $0x578] sm:$0xff]  ;;  %v8820_v56 = vld [vmem:[#allocation2 + $0x520] sm:$0xff] }
 0xb91   :  { %v8749_v13 = vpop.eup %7355  ;;  %v3109_v33 = vmul.f32 %v8747_v16, %v2335_v45  ;;  %6722 = vmatprep.subr.mxu1 %v8767_v1  ;;  %v8824_v14 = vld [vmem:[#allocation2 + $0x518] sm:$0xff] }
 0xb92   :  { %7357 = vrcp.f32 %v3108_v50  ;;  %v3111_v36 = vmul.f32 %v8749_v13, %v2410_v62  ;;  %v3114_v42 = vadd.f32 %v3112_v59, %v3110_v57  ;;  %v9994_v62 = vld [vmem:[#allocation9_spill] sm:$0xff]  ;;  %6723 = vmatpush3.msra.mxu1 %v8767_v1  ;;  %v8836_v59 = vld [vmem:[#allocation2 + $0x500] sm:$0xff] }
 0xb93   :  { %6724 = vmatprep.subr.mxu1 %v8769_v2  ;;  %v8828_v57 = vld [vmem:[#allocation2 + $0x510] sm:$0xff]  ;;  %v8832_v50 = vld [vmem:[#allocation2 + $0x508] sm:$0xff] }
 0xb94   :  { %v8753_v43 = vadd.f32 %v3111_v36, %v3109_v33  ;;  %6725 = vmatpush3.msra.mxu1 %v8769_v2  ;;  %v8843_v33 = vld [vmem:[#allocation2 + $0x5f8] sm:$0xff]  ;;  %v8845_v36 = vld [vmem:[#allocation2 + $0x5f0] sm:$0xff] }
 0xb95   :  { %6726 = vmatprep.subr.mxu1 %v8773_v0  ;;  %6757 = vmatprep.subr.mxu0 %v8843_v33 }
 0xb96   :  { %6727 = vmatpush3.msra.mxu1 %v8773_v0  ;;  %6758 = vmatpush3.msra.mxu0 %v8843_v33 }
 0xb97   :  { %6728 = vmatprep.subr.mxu1 %v8777_v3  ;;  %6759 = vmatprep.subr.mxu0 %v8845_v36 }
 0xb98   :  { %6729 = vmatpush3.msra.mxu1 %v8777_v3  ;;  %6760 = vmatpush3.msra.mxu0 %v8845_v36 }
 0xb99   :  { %6730 = vmatprep.subr.mxu1 %v8794_v25 }
 0xb9a   :  { %6731 = vmatpush3.msra.mxu1 %v8794_v25 }
 0xb9b   :  { %6732 = vmatprep.subr.mxu1 %v8798_v26 }
 0xb9c   :  { %6733 = vmatpush3.msra.mxu1 %v8798_v26 }
 0xb9d   :  { %6734 = vmatprep.subr.mxu1 %v8802_v29 }
 0xb9e   :  { %6735 = vmatpush3.msra.mxu1 %v8802_v29 }
 0xb9f   :  { %v7358_v32 = vpop.eup %7357  ;;  %6736 = vmatprep.subr.mxu1 %v8805_v27 }
 0xba0   :  { %v8755_v35 = vmul.f32 %v7358_v32, %v3114_v42  ;;  %6737 = vmatpush3.msra.mxu1 %v8805_v27  ;;  %v8849_v42 = vld [vmem:[#allocation2 + $0x5e8] sm:$0xff]  ;;  %v8853_v32 = vld [vmem:[#allocation2 + $0x5e0] sm:$0xff] }
 0xba1   :  { %6738 = vmatprep.subr.mxu1 %v8808_v41  ;;  %6761 = vmatprep.subr.mxu0 %v8849_v42 }
 0xba2   :  { %6739 = vmatpush3.msra.mxu1 %v8808_v41  ;;  %6762 = vmatpush3.msra.mxu0 %v8849_v42 }
 0xba3   :  { %6740 = vmatprep.subr.mxu1 %v8812_v52  ;;  %6763 = vmatprep.subr.mxu0 %v8853_v32 }
 0xba4   :  { %6741 = vmatpush3.msra.mxu1 %v8812_v52  ;;  %6764 = vmatpush3.msra.mxu0 %v8853_v32 }
 0xba5   :  { %6742 = vmatprep.subr.mxu1 %v8816_v53 }
 0xba6   :  { %6743 = vmatpush3.msra.mxu1 %v8816_v53 }
 0xba7   :  { %6744 = vmatprep.subr.mxu1 %v8820_v56 }
 0xba8   :  { %6745 = vmatpush3.msra.mxu1 %v8820_v56 }
 0xba9   :  { %6746 = vmatprep.subr.mxu1 %v8824_v14 }
 0xbaa   :  { %6747 = vmatpush3.msra.mxu1 %v8824_v14 }
 0xbab   :  { %6748 = vmatprep.subr.mxu1 %v8828_v57 }
 0xbac   :  { %6749 = vmatpush3.msra.mxu1 %v8828_v57 }
 0xbad   :  { %6750 = vmatprep.subr.mxu1 %v8832_v50 }
 0xbae   :  { %6751 = vmatpush3.msra.mxu1 %v8832_v50 }
 0xbaf   :  { %6752 = vmatprep.subr.mxu1 %v8836_v59 }
 0xbb0   :  { %6753 = vmatpush3.msra.mxu1 %v8836_v59 }
 0xbb1   :  { %6792 = vmatprep.subr.mxu1 %v8680_v8 }
 0xc45   :  { %v6721_v18 = vpop.f32.mrf.mxu0 }
 0xc46   :  { %v2838_v19 = vadd.f32 %v6721_v18, %v8760_v17  ;;  %v8857_v18 = vld [vmem:[#allocation2 + $0x5d8] sm:$0xff] }
 0xc47   :  { %v2832_v22 = vpop.f32.mrf.mxu0  ;;  %6765 = vmatprep.subr.mxu0 %v8857_v18 }
 0xc48   :  { %v2833_v20 = vadd.f32 %v8760_v17, %v2832_v22  ;;  %v2842_v61 = vadd.f32 %v2838_v19, %v9993_v60  ;;  %v8861_v19 = vld [vmem:[#allocation2 + $0x5d0] sm:$0xff]  ;;  %6766 = vmatpush3.msra.mxu0 %v8857_v18  ;;  %v8865_v22 = vld [vmem:[#allocation2 + $0x5c8] sm:$0xff]  ;;  %v8873_v60 = vld [vmem:[#allocation2 + $0x5b8] sm:$0xff] }
 0xc49   :  { %6767 = vmatprep.subr.mxu0 %v8861_v19 }
 0xc4a   :  { %v2845_v45 = vsel %vm1262_vm0, %v2842_v61, 0.0  ;;  %v2841_v63 = vadd.f32 %v2833_v20, %v9994_v62  ;;  %6768 = vmatpush3.msra.mxu0 %v8861_v19  ;;  %v8869_v20 = vld [vmem:[#allocation2 + $0x5c0] sm:$0xff] }
 0xc4b   :  { %2846 = vadd.xlane.f32.xlu1 %v2845_v45  ;;  %6769 = vmatprep.subr.mxu0 %v8865_v22  ;;  %v8881_v45 = vld [vmem:[#allocation2 + $0x5a8] sm:$0xff]  ;;  %v8885_v62 = vld [vmem:[#allocation2 + $0x5a0] sm:$0xff] }
 0xc4c   :  { %2843 = vadd.xlane.f32.xlu0 %v2841_v63  ;;  %6770 = vmatpush3.msra.mxu0 %v8865_v22 }
 0xc4d   :  { %6771 = vmatprep.subr.mxu0 %v8869_v20 }
 0xc4e   :  { %6772 = vmatpush3.msra.mxu0 %v8869_v20 }
 0xc4f   :  { %6773 = vmatprep.subr.mxu0 %v8873_v60 }
 0xc50   :  { %6774 = vmatpush3.msra.mxu0 %v8873_v60 }
 0xcd4   :  { %v2847_v4 = vpop.xlane.xlu1 %2846 }
 0xcd5   :  { %v2849_v5 = vmul.f32 0.1, %v2847_v4  ;;  %v2844_v6 = vpop.xlane.xlu0 %2843 }
 0xcd6   :  { %v2848_v7 = vmul.f32 0.1, %v2844_v6 }
 0xcd7   :  { %v2851_v28 = vsub.f32 %v2842_v61, %v2849_v5  ;;  %v8877_v61 = vld [vmem:[#allocation2 + $0x5b0] sm:$0xff] }
 0xcd8   :  { %v2850_v30 = vsub.f32 %v2841_v63, %v2848_v7  ;;  %6775 = vmatprep.subr.mxu0 %v8877_v61 }
 0xcd9   :  { %v8784_v34 = vmul.f32 %v9995_v31, %v2851_v28  ;;  %6776 = vmatpush3.msra.mxu0 %v8877_v61 }
 0xcda   :  { %v8787_v37 = vmul.f32 %v9995_v31, %v2850_v30  ;;  %6777 = vmatprep.subr.mxu0 %v8881_v45  ;;  %v3107_v30 = vadd.f32 %v8749_v13, %v8747_v16 }
 0xcdb   :  { %v2855_v38 = vmul.f32 %v8784_v34, %v8784_v34  ;;  %6778 = vmatpush3.msra.mxu0 %v8881_v45 }
 0xcdc   :  { %v2854_v40 = vmul.f32 %v8787_v37, %v8787_v37  ;;  %6779 = vmatprep.subr.mxu0 %v8885_v62 }
 0xcdd   :  { %v2858_v49 = vsel %vm1262_vm0, %v2855_v38, 0.0  ;;  %6780 = vmatpush3.msra.mxu0 %v8885_v62 }
 0xcde   :  { %2859 = vadd.xlane.f32.xlu1 %v2858_v49  ;;  %2856 = vadd.xlane.f32.xlu0 %v2854_v40  ;;  %v8896_v40 = vld [vmem:[%s9920_s5 + $0x10] ss:$0 sm:$0xff] }
 0xd67   :  { %v2860_v63 = vpop.xlane.xlu1 %2859  ;;  %v2857_v4 = vpop.xlane.xlu0 %2856 }
 0xd68   :  { %v2862_v5 = vmul.f32 0.1, %v2860_v63  ;;  %v2861_v6 = vmul.f32 0.1, %v2857_v4  ;;  %v8902_v63 = vld [vmem:[%s9920_s5 + $0x11] ss:$0 sm:$0xff] }
 0xd6a   :  { %v2864_v7 = vadd.f32 1e-05, %v2862_v5  ;;  %v2863_v28 = vadd.f32 1e-05, %v2861_v6 }
 0xd6c   :  { %7359 = vrsqrt.f32 %v2864_v7 }
 0xd6d   :  { %7361 = vrsqrt.f32 %v2863_v28 }
 0xd6e   :  { %7363 = vrcp.f32 %v3107_v30 }
 0xd79   :  { %v7360_v38 = vpop.eup %7359 }
 0xd7a   :  { %v7362_v49 = vpop.eup %7361  ;;  %v2868_v31 = vmul.f32 %v7360_v38, %v8784_v34 }
 0xd7b   :  { %v2867_v4 = vmul.f32 %v7362_v49, %v8787_v37  ;;  %v7364_v5 = vpop.eup %7363 }
 0xd7c   :  { %v2876_v16 = vmul.f32 %v8896_v40, %v2868_v31  ;;  %v3117_v34 = vmul.f32 %v7364_v5, %v8753_v43  ;;  %v9996_v31 = vld [vmem:[#allocation8_spill] sm:$0xff] }
 0xd7d   :  { %v2875_v13 = vmul.f32 %v8896_v40, %v2867_v4 }
 0xd7e   :  { %v8908_v6 = vadd.f32 %v8902_v63, %v2876_v16 }
 0xd7f   :  { %v8911_v7 = vadd.f32 %v8902_v63, %v2875_v13 }
 0xd81   :  { %6754 = vmatprep.mubr.f32.mxu1 %v8911_v7 }
 0xd82   :  { %6755 = vmatmul.mubr.f32.vlgmr.msra.gmra.mxu1 %v8908_v6 }
 0xd83   :  { %6793 = vmatpush3.msra.mxu1 %v8680_v8  ;;  %6824 = vmatprep.mubr.f32.mxu1 %v3117_v34  ;;  %v1917_v8 = vld [vmem:[#allocation2 + $0x598] sm:$0xff] }
 0xd84   :  { %6794 = vmatprep.subr.mxu1 %v8684_v9  ;;  %6781 = vmatprep.subr.mxu0 %v1917_v8 }
 0xd85   :  { %6795 = vmatpush3.msra.mxu1 %v8684_v9  ;;  %6782 = vmatpush3.msra.mxu0 %v1917_v8  ;;  %v1916_v9 = vld [vmem:[#allocation2 + $0x590] sm:$0xff] }
 0xd86   :  { %6796 = vmatprep.subr.mxu1 %v8688_v10  ;;  %6783 = vmatprep.subr.mxu0 %v1916_v9 }
 0xd87   :  { %6797 = vmatpush3.msra.mxu1 %v8688_v10  ;;  %6784 = vmatpush3.msra.mxu0 %v1916_v9  ;;  %v1915_v10 = vld [vmem:[#allocation2 + $0x588] sm:$0xff] }
 0xd88   :  { %6798 = vmatprep.subr.mxu1 %v8692_v11  ;;  %6785 = vmatprep.subr.mxu0 %v1915_v10 }
 0xd89   :  { %6799 = vmatpush3.msra.mxu1 %v8692_v11  ;;  %v1914_v11 = vld [vmem:[#allocation2 + $0x580] sm:$0xff]  ;;  %6786 = vmatpush3.msra.mxu0 %v1915_v10 }
 0xd8a   :  { %6800 = vmatprep.subr.mxu1 %v8696_v39  ;;  %6787 = vmatprep.subr.mxu0 %v1914_v11 }
 0xd8b   :  { %6801 = vmatpush3.msra.mxu1 %v8696_v39  ;;  %6788 = vmatpush3.msra.mxu0 %v1914_v11  ;;  %v8976_v39 = vld [vmem:[%s9920_s5 + $0xe] ss:$0 sm:$0xff] }
 0xd8c   :  { %6802 = vmatprep.subr.mxu1 %v8700_v47  ;;  %6827 = vmatprep.subr.mxu0 %v8767_v1 }
 0xd8d   :  { %6803 = vmatpush3.msra.mxu1 %v8700_v47 }
 0xd8e   :  { %6804 = vmatprep.subr.mxu1 %v8704_v54 }
 0xd8f   :  { %6805 = vmatpush3.msra.mxu1 %v8704_v54 }
 0xd90   :  { %6806 = vmatprep.subr.mxu1 %v8708_v48 }
 0xd91   :  { %6807 = vmatpush3.msra.mxu1 %v8708_v48 }
 0xd92   :  { %6808 = vmatprep.subr.mxu1 %v8710_v55 }
 0xd93   :  { %6809 = vmatpush3.msra.mxu1 %v8710_v55 }
 0xd94   :  { %6810 = vmatprep.subr.mxu1 %v8714_v46 }
 0xd95   :  { %6811 = vmatpush3.msra.mxu1 %v8714_v46 }
 0xd96   :  { %6812 = vmatprep.subr.mxu1 %v8720_v58 }
 0xd97   :  { %6813 = vmatpush3.msra.mxu1 %v8720_v58 }
 0xd98   :  { %6814 = vmatprep.subr.mxu1 %v8724_v15 }
 0xd99   :  { %6815 = vmatpush3.msra.mxu1 %v8724_v15 }
 0xd9a   :  { %6816 = vmatprep.subr.mxu1 %v8728_v23 }
 0xd9b   :  { %6817 = vmatpush3.msra.mxu1 %v8728_v23 }
 0xd9c   :  { %6818 = vmatprep.subr.mxu1 %v8732_v24 }
 0xd9d   :  { %6819 = vmatpush3.msra.mxu1 %v8732_v24 }
 0xd9e   :  { %6820 = vmatprep.subr.mxu1 %v8736_v12 }
 0xd9f   :  { %6821 = vmatpush3.msra.mxu1 %v8736_v12 }
 0xda0   :  { %6822 = vmatprep.subr.mxu1 %v8740_v44 }
 0xda1   :  { %6823 = vmatpush3.msra.mxu1 %v8740_v44 }
 0xda2   :  { %6825 = vmatmul.mubr.f32.vlgmr.msra.gmra.mxu1 %v8755_v35  ;;  %6862 = vmatprep.subr.mxu1 %v8843_v33 }
 0xda3   :  { %6863 = vmatpush3.msra.mxu1 %v8843_v33 }
 0xda4   :  { %6864 = vmatprep.subr.mxu1 %v8845_v36 }
 0xda5   :  { %6865 = vmatpush3.msra.mxu1 %v8845_v36 }
 0xda6   :  { %6866 = vmatprep.subr.mxu1 %v8849_v42 }
 0xda7   :  { %6867 = vmatpush3.msra.mxu1 %v8849_v42 }
 0xda8   :  { %6868 = vmatprep.subr.mxu1 %v8853_v32 }
 0xda9   :  { %6869 = vmatpush3.msra.mxu1 %v8853_v32 }
 0xdaa   :  { %6870 = vmatprep.subr.mxu1 %v8857_v18 }
 0xdab   :  { %6871 = vmatpush3.msra.mxu1 %v8857_v18 }
 0xdac   :  { %6872 = vmatprep.subr.mxu1 %v8861_v19 }
 0xdad   :  { %6873 = vmatpush3.msra.mxu1 %v8861_v19 }
 0xdae   :  { %6874 = vmatprep.subr.mxu1 %v8865_v22 }
 0xdaf   :  { %6875 = vmatpush3.msra.mxu1 %v8865_v22 }
 0xdb0   :  { %6876 = vmatprep.subr.mxu1 %v8869_v20 }
 0xdb1   :  { %6877 = vmatpush3.msra.mxu1 %v8869_v20 }
 0xdb2   :  { %6878 = vmatprep.subr.mxu1 %v8873_v60 }
 0xdb3   :  { %6879 = vmatpush3.msra.mxu1 %v8873_v60 }
 0xdb4   :  { %6880 = vmatprep.subr.mxu1 %v8877_v61 }
 0xdb5   :  { %6881 = vmatpush3.msra.mxu1 %v8877_v61 }
 0xdb6   :  { %6882 = vmatprep.subr.mxu1 %v8881_v45 }
 0xdb7   :  { %6883 = vmatpush3.msra.mxu1 %v8881_v45 }
 0xdb8   :  { %6884 = vmatprep.subr.mxu1 %v8885_v62 }
 0xdb9   :  { %6885 = vmatpush3.msra.mxu1 %v8885_v62 }
 0xdba   :  { %6886 = vmatprep.subr.mxu1 %v1917_v8 }
 0xdbb   :  { %6887 = vmatpush3.msra.mxu1 %v1917_v8  ;;  %v9065_v8 = vld [vmem:[%s9921_s6 + $0x68] sm:$0xff] }
 0xdbc   :  { %6888 = vmatprep.subr.mxu1 %v1916_v9 }
 0xdbd   :  { %6889 = vmatpush3.msra.mxu1 %v1916_v9 }
 0xdbe   :  { %6890 = vmatprep.subr.mxu1 %v1915_v10 }
 0xdbf   :  { %6891 = vmatpush3.msra.mxu1 %v1915_v10  ;;  %v9072_v10 = vld [vmem:[%s9921_s6 + $0x60] sm:$0xff] }
 0xdc0   :  { %6892 = vmatprep.subr.mxu1 %v1914_v11 }
 0xdc1   :  { %6893 = vmatpush3.msra.mxu1 %v1914_v11  ;;  %v9081_v11 = vld [vmem:[%s9921_s6 + $0x58] sm:$0xff] }
 0xe42   :  { %v6756_v47 = vpop.f32.mrf.mxu1 }
 0xe43   :  { %v2963_v54 = vadd.f32 %v6756_v47, %v8976_v39  ;;  %v9088_v47 = vld [vmem:[%s9921_s6 + $0x50] sm:$0xff] }
 0xe44   :  { %v2957_v48 = vpop.f32.mrf.mxu1 }
 0xe45   :  { %v2958_v55 = vadd.f32 %v8976_v39, %v2957_v48  ;;  %v2967_v58 = vmax.f32 %v2963_v54, 0.0  ;;  %v9095_v54 = vld [vmem:[%s9921_s6 + $0x48] sm:$0xff]  ;;  %v9100_v48 = vld [vmem:[%s9921_s6 + $0x40] sm:$0xff] }
 0xe47   :  { %v2966_v46 = vmax.f32 %v2958_v55, 0.0  ;;  %v9107_v55 = vld [vmem:[%s9921_s6 + $0x38] sm:$0xff] }
 0xe49   :  { %6789 = vmatprep.mubr.f32.mxu0 %v2966_v46  ;;  %v9114_v46 = vld [vmem:[%s9921_s6 + $0x30] sm:$0xff] }
 0xe4a   :  { %6790 = vmatmul.mubr.f32.vlgmr.msra.gmra.mxu0 %v2967_v58  ;;  %v9121_v58 = vld [vmem:[%s9921_s6 + $0x28] sm:$0xff] }
 0xe4b   :  { %6828 = vmatpush3.msra.mxu0 %v8767_v1 }
 0xe4c   :  { %6829 = vmatprep.subr.mxu0 %v8769_v2 }
 0xe4d   :  { %6830 = vmatpush3.msra.mxu0 %v8769_v2 }
 0xe4e   :  { %6831 = vmatprep.subr.mxu0 %v8773_v0 }
 0xe4f   :  { %6832 = vmatpush3.msra.mxu0 %v8773_v0 }
 0xe50   :  { %6833 = vmatprep.subr.mxu0 %v8777_v3 }
 0xe51   :  { %6834 = vmatpush3.msra.mxu0 %v8777_v3 }
 0xe52   :  { %6835 = vmatprep.subr.mxu0 %v8794_v25 }
 0xe53   :  { %6836 = vmatpush3.msra.mxu0 %v8794_v25 }
 0xe54   :  { %6837 = vmatprep.subr.mxu0 %v8798_v26 }
 0xe55   :  { %6838 = vmatpush3.msra.mxu0 %v8798_v26 }
 0xe56   :  { %6839 = vmatprep.subr.mxu0 %v8802_v29 }
 0xe57   :  { %6840 = vmatpush3.msra.mxu0 %v8802_v29 }
 0xe58   :  { %6841 = vmatprep.subr.mxu0 %v8805_v27 }
 0xe59   :  { %6842 = vmatpush3.msra.mxu0 %v8805_v27  ;;  %v9022_v27 = vld [vmem:[%s9920_s5 + $0xf] ss:$0 sm:$0xff] }
 0xe5a   :  { %6843 = vmatprep.subr.mxu0 %v8808_v41 }
 0xe5b   :  { %6844 = vmatpush3.msra.mxu0 %v8808_v41 }
 0xe5c   :  { %6845 = vmatprep.subr.mxu0 %v8812_v52 }
 0xe5d   :  { %6846 = vmatpush3.msra.mxu0 %v8812_v52 }
 0xe5e   :  { %6847 = vmatprep.subr.mxu0 %v8816_v53 }
 0xe5f   :  { %6848 = vmatpush3.msra.mxu0 %v8816_v53 }
 0xe60   :  { %6849 = vmatprep.subr.mxu0 %v8820_v56 }
 0xe61   :  { %6850 = vmatpush3.msra.mxu0 %v8820_v56 }
 0xe62   :  { %v6826_v15 = vpop.f32.mrf.mxu1  ;;  %6851 = vmatprep.subr.mxu0 %v8824_v14 }
 0xe63   :  { %v3191_v23 = vadd.f32 %v6826_v15, %v8760_v17  ;;  %6852 = vmatpush3.msra.mxu0 %v8824_v14  ;;  %v9128_v15 = vld [vmem:[%s9921_s6 + $0x20] sm:$0xff] }
 0xe64   :  { %v3185_v24 = vpop.f32.mrf.mxu1  ;;  %6853 = vmatprep.subr.mxu0 %v8828_v57 }
 0xe65   :  { %v3186_v12 = vadd.f32 %v8760_v17, %v3185_v24  ;;  %v3195_v44 = vadd.f32 %v3191_v23, %v8503_v51  ;;  %6854 = vmatpush3.msra.mxu0 %v8828_v57  ;;  %v9135_v23 = vld [vmem:[%s9921_s6 + $0x18] sm:$0xff]  ;;  %v9142_v24 = vld [vmem:[%s9921_s6 + $0x10] sm:$0xff] }
 0xe66   :  { %6855 = vmatprep.subr.mxu0 %v8832_v50 }
 0xe67   :  { %v3198_v43 = vsel %vm1262_vm0, %v3195_v44, 0.0  ;;  %v3194_v35 = vadd.f32 %v3186_v12, %v8497_v21  ;;  %6856 = vmatpush3.msra.mxu0 %v8832_v50  ;;  %v9149_v12 = vld [vmem:[%s9921_s6 + $0x8] sm:$0xff] }
 0xe68   :  { %3199 = vadd.xlane.f32.xlu1 %v3198_v43  ;;  %6857 = vmatprep.subr.mxu0 %v8836_v59  ;;  %v9165_v43 = vld [vmem:[%s9921_s6 + $0x178] sm:$0xff] }
 0xe69   :  { %3196 = vadd.xlane.f32.xlu0 %v3194_v35  ;;  %6858 = vmatpush3.msra.mxu0 %v8836_v59  ;;  %v9032_v59 = vld [vmem:[%s9921_s6 + $0x78] sm:$0xff] }
 0xe6a   :  { %6897 = vmatprep.subr.mxu0 %v9032_v59 }
 0xef1   :  { %v3200_v1 = vpop.xlane.xlu1 %3199 }
 0xef2   :  { %v3202_v17 = vmul.f32 0.1, %v3200_v1  ;;  %v3197_v2 = vpop.xlane.xlu0 %3196 }
 0xef3   :  { %v3201_v51 = vmul.f32 0.1, %v3197_v2 }
 0xef4   :  { %v3204_v0 = vsub.f32 %v3195_v44, %v3202_v17  ;;  %v9156_v44 = vld [vmem:[%s9921_s6] sm:$0xff] }
 0xef5   :  { %v3203_v3 = vsub.f32 %v3194_v35, %v3201_v51  ;;  %v9171_v35 = vld [vmem:[%s9921_s6 + $0xf8] sm:$0xff] }
 0xef6   :  { %v3206_v37 = vmul.f32 %v9996_v31, %v3204_v0  ;;  %6932 = vmatprep.subr.mxu1 %v9171_v35 }
 0xef7   :  { %v3205_v25 = vmul.f32 %v9996_v31, %v3203_v3 }
 0xef8   :  { %v3208_v26 = vmul.f32 %v3206_v37, %v3206_v37 }
 0xef9   :  { %v3207_v21 = vmul.f32 %v3205_v25, %v3205_v25 }
 0xefa   :  { %v3211_v29 = vsel %vm1262_vm0, %v3208_v26, 0.0 }
 0xefb   :  { %3212 = vadd.xlane.f32.xlu1 %v3211_v29  ;;  %3209 = vadd.xlane.f32.xlu0 %v3207_v21  ;;  %v9183_v29 = vld [vmem:[%s9920_s5 + $0x13] ss:$0 sm:$0xff] }
 0xf0a   :  { %v6791_v41 = vpop.f32.mrf.mxu0 }
 0xf0b   :  { %v3046_v52 = vadd.f32 %v6791_v41, %v9022_v27 }
 0xf0c   :  { %v3040_v53 = vpop.f32.mrf.mxu0 }
 0xf0d   :  { %v3041_v56 = vadd.f32 %v9022_v27, %v3040_v53  ;;  %v3050_v14 = vadd.f32 %v3046_v52, %v8908_v6 }
 0xf0f   :  { %v3053_v57 = vsel %vm1262_vm0, %v3050_v14, 0.0  ;;  %v3049_v50 = vadd.f32 %v3041_v56, %v8911_v7  ;;  %v9050_v7 = vld [vmem:[%s9921_s6 + $0x70] sm:$0xff] }
 0xf10   :  { %3054 = vadd.xlane.f32.xlu1 %v3053_v57  ;;  %v9195_v57 = vld [vmem:[%s9921_s6 + $0x170] sm:$0xff] }
 0xf11   :  { %3051 = vadd.xlane.f32.xlu0 %v3049_v50 }
 0xf84   :  { %v3213_v33 = vpop.xlane.xlu1 %3212  ;;  %v3210_v36 = vpop.xlane.xlu0 %3209 }
 0xf85   :  { %v3215_v42 = vmul.f32 0.1, %v3213_v33  ;;  %v3214_v32 = vmul.f32 0.1, %v3210_v36  ;;  %v9209_v33 = vld [vmem:[%s9921_s6 + $0x160] sm:$0xff]  ;;  %v9216_v36 = vld [vmem:[%s9921_s6 + $0x158] sm:$0xff] }
 0xf87   :  { %v3217_v18 = vadd.f32 1e-05, %v3215_v42  ;;  %v3216_v19 = vadd.f32 1e-05, %v3214_v32  ;;  %v9223_v42 = vld [vmem:[%s9921_s6 + $0x150] sm:$0xff]  ;;  %v9230_v32 = vld [vmem:[%s9921_s6 + $0x148] sm:$0xff] }
 0xf89   :  { %7365 = vrsqrt.f32 %v3217_v18  ;;  %v9237_v18 = vld [vmem:[%s9921_s6 + $0x140] sm:$0xff] }
 0xf8a   :  { %7367 = vrsqrt.f32 %v3216_v19  ;;  %v9244_v19 = vld [vmem:[%s9921_s6 + $0x138] sm:$0xff] }
 0xf96   :  { %v7366_v22 = vpop.eup %7365 }
 0xf97   :  { %v7368_v20 = vpop.eup %7367  ;;  %v3221_v60 = vmul.f32 %v7366_v22, %v3206_v37  ;;  %v9251_v22 = vld [vmem:[%s9921_s6 + $0x130] sm:$0xff] }
 0xf98   :  { %v3220_v61 = vmul.f32 %v7368_v20, %v3205_v25  ;;  %v9177_v25 = vld [vmem:[%s9920_s5 + $0x12] ss:$0 sm:$0xff]  ;;  %v9258_v20 = vld [vmem:[%s9921_s6 + $0x128] sm:$0xff] }
 0xf99   :  { %v3055_v45 = vpop.xlane.xlu1 %3054  ;;  %v3223_v62 = vmul.f32 %v8896_v40, %v3221_v60  ;;  %v9265_v60 = vld [vmem:[%s9921_s6 + $0x120] sm:$0xff] }
 0xf9a   :  { %v3057_v28 = vmul.f32 0.1, %v3055_v45  ;;  %v3052_v30 = vpop.xlane.xlu0 %3051  ;;  %v3222_v38 = vmul.f32 %v8896_v40, %v3220_v61  ;;  %v9272_v61 = vld [vmem:[%s9921_s6 + $0x118] sm:$0xff]  ;;  %v9279_v45 = vld [vmem:[%s9921_s6 + $0x110] sm:$0xff] }
 0xf9b   :  { %v3056_v49 = vmul.f32 0.1, %v3052_v30  ;;  %v9038_v4 = vadd.f32 %v8902_v63, %v3223_v62 }
 0xf9c   :  { %v3059_v16 = vsub.f32 %v3050_v14, %v3057_v28  ;;  %v9041_v13 = vadd.f32 %v8902_v63, %v3222_v38  ;;  %v9286_v28 = vld [vmem:[%s9921_s6 + $0x108] sm:$0xff] }
 0xf9d   :  { %v3058_v5 = vsub.f32 %v3049_v50, %v3056_v49  ;;  %v9202_v50 = vld [vmem:[%s9921_s6 + $0x168] sm:$0xff] }
 0xf9e   :  { %6859 = vmatprep.mubr.f32.mxu0 %v9041_v13  ;;  %v9045_v6 = vmul.f32 %v9996_v31, %v3059_v16  ;;  %v9295_v16 = vld [vmem:[%s9921_s6 + $0x100] sm:$0xff] }
 0xf9f   :  { %6860 = vmatmul.mubr.f32.vlgmr.msra.gmra.mxu0 %v9038_v4  ;;  %v9054_v40 = vmul.f32 %v9996_v31, %v3058_v5 }
 0xfa0   :  { %v3063_v63 = vmul.f32 %v9045_v6, %v9045_v6  ;;  %6898 = vmatpush3.msra.mxu0 %v9032_v59 }
 0xfa1   :  { %v3062_v34 = vmul.f32 %v9054_v40, %v9054_v40  ;;  %6899 = vmatprep.subr.mxu0 %v9050_v7 }
 0xfa2   :  { %v3066_v9 = vsel %vm1262_vm0, %v3063_v63, 0.0  ;;  %6900 = vmatpush3.msra.mxu0 %v9050_v7  ;;  %v9999_v63 = vmov 0.0  }
 0xfa3   :  { %3067 = vadd.xlane.f32.xlu1 %v3066_v9  ;;  %3064 = vadd.xlane.f32.xlu0 %v3062_v34  ;;  %v9319_v34 = vld [vmem:[%s9921_s6 + $0xe0] sm:$0xff]  ;;  %v9326_v9 = vld [vmem:[%s9921_s6 + $0xd8] sm:$0xff] }
 0xfa4   :  { %6901 = vmatprep.subr.mxu0 %v9065_v8  ;;  %10000 = vst [vmem:[#allocation8_spill] sm:$0xff] %v9319_v34  ;;  %10001 = vst [vmem:[#allocation11_spill] sm:$0xff] %v9326_v9 }
 0xfa5   :  { %6902 = vmatpush3.msra.mxu0 %v9065_v8 }
 0xfa6   :  { %6903 = vmatprep.subr.mxu0 %v9072_v10 }
 0xfa7   :  { %6904 = vmatpush3.msra.mxu0 %v9072_v10 }
 0xfa8   :  { %6905 = vmatprep.subr.mxu0 %v9081_v11 }
 0xfa9   :  { %6906 = vmatpush3.msra.mxu0 %v9081_v11 }
 0xfaa   :  { %6907 = vmatprep.subr.mxu0 %v9088_v47 }
 0xfab   :  { %6908 = vmatpush3.msra.mxu0 %v9088_v47 }
 0xfac   :  { %6909 = vmatprep.subr.mxu0 %v9095_v54 }
 0xfad   :  { %6910 = vmatpush3.msra.mxu0 %v9095_v54 }
 0xfae   :  { %6911 = vmatprep.subr.mxu0 %v9100_v48 }
 0xfaf   :  { %6912 = vmatpush3.msra.mxu0 %v9100_v48 }
 0xfb0   :  { %6913 = vmatprep.subr.mxu0 %v9107_v55 }
 0xfb1   :  { %6914 = vmatpush3.msra.mxu0 %v9107_v55 }
 0xfb2   :  { %6915 = vmatprep.subr.mxu0 %v9114_v46 }
 0xfb3   :  { %6916 = vmatpush3.msra.mxu0 %v9114_v46 }
 0xfb4   :  { %6917 = vmatprep.subr.mxu0 %v9121_v58 }
 0xfb5   :  { %6918 = vmatpush3.msra.mxu0 %v9121_v58 }
 0xfb6   :  { %6919 = vmatprep.subr.mxu0 %v9128_v15 }
 0xfb7   :  { %6920 = vmatpush3.msra.mxu0 %v9128_v15 }
 0xfb8   :  { %6921 = vmatprep.subr.mxu0 %v9135_v23 }
 0xfb9   :  { %6922 = vmatpush3.msra.mxu0 %v9135_v23 }
 0xfba   :  { %6923 = vmatprep.subr.mxu0 %v9142_v24 }
 0xfbb   :  { %6924 = vmatpush3.msra.mxu0 %v9142_v24 }
 0xfbc   :  { %6925 = vmatprep.subr.mxu0 %v9149_v12 }
 0xfbd   :  { %6926 = vmatpush3.msra.mxu0 %v9149_v12 }
 0xfbe   :  { %6927 = vmatprep.subr.mxu0 %v9156_v44 }
 0xfbf   :  { %6928 = vmatpush3.msra.mxu0 %v9156_v44 }
 0xfc0   :  { %6967 = vmatprep.subr.mxu0 %v9165_v43 }
0x102c   :  { %v3068_v1 = vpop.xlane.xlu1 %3067  ;;  %v3065_v17 = vpop.xlane.xlu0 %3064 }
0x102d   :  { %v3070_v2 = vmul.f32 0.1, %v3068_v1  ;;  %v3069_v51 = vmul.f32 0.1, %v3065_v17  ;;  %v9333_v1 = vld [vmem:[%s9921_s6 + $0xd0] sm:$0xff]  ;;  %v9340_v17 = vld [vmem:[%s9921_s6 + $0xc8] sm:$0xff] }
0x102e   :  { %10002 = vst [vmem:[#allocation12_spill] sm:$0xff] %v9333_v1  ;;  %10003 = vst [vmem:[#allocation13_spill] sm:$0xff] %v9340_v17 }
0x102f   :  { %v3072_v0 = vadd.f32 1e-05, %v3070_v2  ;;  %v3071_v3 = vadd.f32 1e-05, %v3069_v51  ;;  %v9347_v2 = vld [vmem:[%s9921_s6 + $0xc0] sm:$0xff]  ;;  %v9354_v51 = vld [vmem:[%s9921_s6 + $0xb8] sm:$0xff] }
0x1030   :  { %10004 = vst [vmem:[#allocation14_spill] sm:$0xff] %v9347_v2  ;;  %10005 = vst [vmem:[#allocation15_spill] sm:$0xff] %v9354_v51 }
0x1031   :  { %7369 = vrsqrt.f32 %v3072_v0  ;;  %v9361_v0 = vld [vmem:[%s9921_s6 + $0xb0] sm:$0xff] }
0x1032   :  { %7371 = vrsqrt.f32 %v3071_v3  ;;  %10006 = vst [vmem:[#allocation16_spill] sm:$0xff] %v9361_v0  ;;  %v9368_v3 = vld [vmem:[%s9921_s6 + $0xa8] sm:$0xff] }
0x1033   :  { %10007 = vst [vmem:[#allocation17_spill] sm:$0xff] %v9368_v3 }
0x103e   :  { %v7370_v37 = vpop.eup %7369 }
0x103f   :  { %v7372_v26 = vpop.eup %7371  ;;  %v3076_v21 = vmul.f32 %v7370_v37, %v9045_v6  ;;  %v9375_v37 = vld [vmem:[%s9921_s6 + $0xa0] sm:$0xff] }
0x1040   :  { %v3075_v41 = vmul.f32 %v7372_v26, %v9054_v40  ;;  %v9311_v40 = vld [vmem:[%s9921_s6 + $0xe8] sm:$0xff]  ;;  %10008 = vst [vmem:[#allocation18_spill] sm:$0xff] %v9375_v37  ;;  %v9382_v26 = vld [vmem:[%s9921_s6 + $0x98] sm:$0xff] }
0x1041   :  { %v3084_v52 = vmul.f32 %v9177_v25, %v3076_v21  ;;  %9998 = vst [vmem:[#allocation9_spill] sm:$0xff] %v9311_v40  ;;  %10009 = vst [vmem:[#allocation19_spill] sm:$0xff] %v9382_v26  ;;  %v9389_v21 = vld [vmem:[%s9921_s6 + $0x90] sm:$0xff] }
0x1042   :  { %v3083_v53 = vmul.f32 %v9177_v25, %v3075_v41  ;;  %10010 = vst [vmem:[#allocation20_spill] sm:$0xff] %v9389_v21  ;;  %v9396_v41 = vld [vmem:[%s9921_s6 + $0x88] sm:$0xff] }
0x1043   :  { %v9189_v56 = vadd.f32 %v9183_v29, %v3084_v52  ;;  %10011 = vst [vmem:[#allocation21_spill] sm:$0xff] %v9396_v41  ;;  %v9403_v52 = vld [vmem:[%s9921_s6 + $0x80] sm:$0xff] }
0x1044   :  { %v3091_v14 = vadd.f32 %v9183_v29, %v3083_v53  ;;  %10012 = vst [vmem:[#allocation22_spill] sm:$0xff] %v9403_v52 }
0x1046   :  { %6929 = vmatprep.mubr.f32.mxu0 %v3091_v14 }
0x1047   :  { %6930 = vmatmul.mubr.f32.vlgmr.msra.gmra.mxu0 %v9189_v56 }
0x1048   :  { %6968 = vmatpush3.msra.mxu0 %v9165_v43  ;;  %6999 = vmatprep.mubr.f32.mxu0 %v3091_v14 }
0x1049   :  { %6969 = vmatprep.subr.mxu0 %v9195_v57 }
0x104a   :  { %6970 = vmatpush3.msra.mxu0 %v9195_v57 }
0x104b   :  { %6971 = vmatprep.subr.mxu0 %v9202_v50 }
0x104c   :  { %6972 = vmatpush3.msra.mxu0 %v9202_v50 }
0x104d   :  { %6973 = vmatprep.subr.mxu0 %v9209_v33 }
0x104e   :  { %6974 = vmatpush3.msra.mxu0 %v9209_v33 }
0x104f   :  { %6975 = vmatprep.subr.mxu0 %v9216_v36 }
0x1050   :  { %6976 = vmatpush3.msra.mxu0 %v9216_v36 }
0x1051   :  { %6977 = vmatprep.subr.mxu0 %v9223_v42 }
0x1052   :  { %6978 = vmatpush3.msra.mxu0 %v9223_v42 }
0x1053   :  { %6979 = vmatprep.subr.mxu0 %v9230_v32 }
0x1054   :  { %6980 = vmatpush3.msra.mxu0 %v9230_v32 }
0x1055   :  { %6981 = vmatprep.subr.mxu0 %v9237_v18 }
0x1056   :  { %6982 = vmatpush3.msra.mxu0 %v9237_v18 }
0x1057   :  { %6983 = vmatprep.subr.mxu0 %v9244_v19 }
0x1058   :  { %6984 = vmatpush3.msra.mxu0 %v9244_v19 }
0x1059   :  { %6985 = vmatprep.subr.mxu0 %v9251_v22 }
0x105a   :  { %6986 = vmatpush3.msra.mxu0 %v9251_v22 }
0x105b   :  { %6987 = vmatprep.subr.mxu0 %v9258_v20 }
0x105c   :  { %6988 = vmatpush3.msra.mxu0 %v9258_v20 }
0x105d   :  { %6989 = vmatprep.subr.mxu0 %v9265_v60 }
0x105e   :  { %6990 = vmatpush3.msra.mxu0 %v9265_v60 }
0x105f   :  { %v6861_v62 = vpop.f32.mrf.mxu0  ;;  %6991 = vmatprep.subr.mxu0 %v9272_v61 }
0x1060   :  { %6992 = vmatpush3.msra.mxu0 %v9272_v61  ;;  %v3298_v30 = vadd.f32 %v6861_v62, %v8976_v39 }
0x1061   :  { %v3292_v38 = vpop.f32.mrf.mxu0  ;;  %6993 = vmatprep.subr.mxu0 %v9279_v45 }
0x1062   :  { %v3293_v49 = vadd.f32 %v8976_v39, %v3292_v38  ;;  %6994 = vmatpush3.msra.mxu0 %v9279_v45  ;;  %v3302_v6 = vmax.f32 %v3298_v30, 0.0  ;;  %v9304_v39 = vld [vmem:[%s9921_s6 + $0xf0] sm:$0xff] }
0x1063   :  { %6995 = vmatprep.subr.mxu0 %v9286_v28  ;;  %9997 = vst [vmem:[#allocation10_spill] sm:$0xff] %v9304_v39 }
0x1064   :  { %v3301_v5 = vmax.f32 %v3293_v49, 0.0  ;;  %6996 = vmatpush3.msra.mxu0 %v9286_v28 }
0x1065   :  { %6997 = vmatprep.subr.mxu0 %v9295_v16 }
0x1066   :  { %6894 = vmatprep.mubr.f32.mxu1 %v3301_v5  ;;  %6998 = vmatpush3.msra.mxu0 %v9295_v16  ;;  %v9419_v5 = vld [vmem:[%s9922_s7 + $0x1] ss:$0 sm:$0xff] }
0x1067   :  { %6895 = vmatmul.mubr.f32.vlgmr.msra.gmra.mxu1 %v3302_v6  ;;  %7000 = vmatmul.mubr.f32.vlgmr.msra.gmra.mxu0 %v9189_v56  ;;  %10014 = vst [vmem:[#allocation24_spill] sm:$0xff] %v9419_v5 }
0x1068   :  { %6933 = vmatpush3.msra.mxu1 %v9171_v35  ;;  %6964 = vmatprep.mubr.f32.mxu1 %v3091_v14  ;;  %v9413_v14 = vld [vmem:[%s9922_s7] ss:$0 sm:$0xff] }
0x1069   :  { %6934 = vmatprep.subr.mxu1 %v9304_v39  ;;  %7058 = vmatprep.subr.mxu0 %v9999_v63  ;;  %10013 = vst [vmem:[#allocation23_spill] sm:$0xff] %v9413_v14 }
0x106a   :  { %6935 = vmatpush3.msra.mxu1 %v9304_v39  ;;  %7090 = vmatprep.mubr.msk.f32.mxu0 %vm7457_vm4, %v9999_v63 }
0x106b   :  { %6936 = vmatprep.subr.mxu1 %v9311_v40 }
0x106c   :  { %6937 = vmatpush3.msra.mxu1 %v9311_v40 }
0x106d   :  { %6938 = vmatprep.subr.mxu1 %v9319_v34 }
0x106e   :  { %6939 = vmatpush3.msra.mxu1 %v9319_v34 }
0x106f   :  { %6940 = vmatprep.subr.mxu1 %v9326_v9 }
0x1070   :  { %6941 = vmatpush3.msra.mxu1 %v9326_v9 }
0x1071   :  { %6942 = vmatprep.subr.mxu1 %v9333_v1 }
0x1072   :  { %6943 = vmatpush3.msra.mxu1 %v9333_v1 }
0x1073   :  { %6944 = vmatprep.subr.mxu1 %v9340_v17 }
0x1074   :  { %6945 = vmatpush3.msra.mxu1 %v9340_v17 }
0x1075   :  { %6946 = vmatprep.subr.mxu1 %v9347_v2 }
0x1076   :  { %6947 = vmatpush3.msra.mxu1 %v9347_v2 }
0x1077   :  { %6948 = vmatprep.subr.mxu1 %v9354_v51 }
0x1078   :  { %6949 = vmatpush3.msra.mxu1 %v9354_v51 }
0x1079   :  { %6950 = vmatprep.subr.mxu1 %v9361_v0 }
0x107a   :  { %6951 = vmatpush3.msra.mxu1 %v9361_v0 }
0x107b   :  { %6952 = vmatprep.subr.mxu1 %v9368_v3 }
0x107c   :  { %6953 = vmatpush3.msra.mxu1 %v9368_v3 }
0x107d   :  { %6954 = vmatprep.subr.mxu1 %v9375_v37 }
0x107e   :  { %6955 = vmatpush3.msra.mxu1 %v9375_v37 }
0x107f   :  { %6956 = vmatprep.subr.mxu1 %v9382_v26 }
0x1080   :  { %6957 = vmatpush3.msra.mxu1 %v9382_v26 }
0x1081   :  { %6958 = vmatprep.subr.mxu1 %v9389_v21 }
0x1082   :  { %6959 = vmatpush3.msra.mxu1 %v9389_v21 }
0x1083   :  { %6960 = vmatprep.subr.mxu1 %v9396_v41 }
0x1084   :  { %6961 = vmatpush3.msra.mxu1 %v9396_v41 }
0x1085   :  { %6962 = vmatprep.subr.mxu1 %v9403_v52 }
0x1086   :  { %6963 = vmatpush3.msra.mxu1 %v9403_v52 }
0x1087   :  { %6965 = vmatmul.mubr.f32.vlgmr.msra.gmra.mxu1 %v9189_v56 }
0x1107   :  { %v6931_v53 = vpop.f32.mrf.mxu0 }
0x1109   :  { %v3575_v62 = vpop.f32.mrf.mxu0 }
0x110a   :  { %v3576_v30 = vadd.f32 %v9413_v14, %v3575_v62  ;;  %v9426_v62 = vld [vmem:[%s9923_s8 + $0x8] sm:$0x3] }
0x110b   :  { %10015 = vst [vmem:[#allocation25_spill] sm:$0xff] %v9426_v62 }
0x110c   :  { %7006 = vmatprep.mubr.f32.mxu1 %v3576_v30  ;;  %v3581_v30 = vadd.f32 %v6931_v53, %v9413_v14 }
0x1127   :  { %v6896_v38 = vpop.f32.mrf.mxu1  ;;  %v7001_v21 = vpop.f32.mrf.mxu0 }
0x1128   :  { %v3375_v51 = vadd.f32 %v6896_v38, %v9022_v27 }
0x1129   :  { %v3369_v49 = vpop.f32.mrf.mxu1 }
0x1147   :  { %v6966_v6 = vpop.f32.mrf.mxu1 }
0x1148   :  { %v3662_v56 = vadd.f32 %v6966_v6, %v9419_v5  ;;  %v9434_v6 = vld [vmem:[%s9922_s7 + $0x2] ss:$0 sm:$0xff] }
0x1149   :  { %v3656_v52 = vpop.f32.mrf.mxu1  ;;  %10016 = vst [vmem:[#allocation26_spill] sm:$0xff] %v9434_v6 }
0x114a   :  { %v3657_v41 = vadd.f32 %v9419_v5, %v3656_v52  ;;  %7002 = vmatprep.subr.mxu1 %v3662_v56  ;;  %v9439_v52 = vld [vmem:[%s9923_s8] sm:$0xff] }
0x114b   :  { %7003 = vmatpush3.xpose.msra.mxu1 %v3662_v56  ;;  %10017 = vst [vmem:[#allocation27_spill] sm:$0xff] %v9439_v52 }
0x114c   :  { %7004 = vmatprep.subr.mxu1 %v3657_v41 }
0x114f   :  { %7005 = vmatpush3.xpose.msra.mxu1 %v3657_v41  ;;  %v3743_v41 = vadd.f32 %v7001_v21, %v9434_v6 }
0x1150   :  { %7009 = vmatprep.subr.msk.mxu1 %vm1262_vm0, %v9426_v62 }
0x1152   :  { %7007 = vmatmul.mubr.f32.vlgmr.msra.gmra.mxu1 %v3581_v30 }
0x1153   :  { %7010 = vmatpush3.msk.msra.mxu1 %vm1262_vm0, %v9426_v62 }
0x1154   :  { %7011 = vmatprep.subr.mxu1 %v9439_v52 }
0x1155   :  { %7012 = vmatpush3.msra.mxu1 %v9439_v52 }
0x1156   :  { %7016 = vmatprep.subr.msk.mxu1 %vm1262_vm0, %v3743_v41 }
0x1212   :  { %v7008_v53 = vpop.f32.mrf.mxu1 }
0x1213   :  { %v3822_v56 = vmul.f32 0.31622776, %v7008_v53 }
0x1214   :  { %v3812_v5 = vpop.f32.mrf.mxu1 }
0x1215   :  { %v3821_v14 = vmul.f32 0.31622776, %v3812_v5  ;;  %v3828_v26 = vsel %vm3827_vm2, %v3822_v56, -inf  ;;  %v3379_v5 = vadd.f32 %v3375_v51, %v9038_v4 }
0x1216   :  { %3829 = vmax.xlane.f32.xlu1 %v3828_v26  ;;  %v3370_v26 = vadd.f32 %v9022_v27, %v3369_v49 }
0x1217   :  { %v3824_v30 = vsel %vm3823_vm3, %v3821_v14, -inf }
0x1218   :  { %3825 = vmax.xlane.f32.xlu0 %v3824_v30 }
0x129f   :  { %v3830_v62 = vpop.xlane.xlu1 %3829 }
0x12a0   :  { %v3832_v21 = vsub.f32 %v3822_v56, %v3830_v62  ;;  %v3382_v62 = vsel %vm1262_vm0, %v3379_v5, 0.0 }
0x12a1   :  { %v3826_v37 = vpop.xlane.xlu0 %3825 }
0x12a2   :  { %v3835_v3 = vmul.f32 1.442695, %v3832_v21  ;;  %v3831_v0 = vsub.f32 %v3821_v14, %v3826_v37 }
0x12a4   :  { %7373 = vpow2.f32 %v3835_v3  ;;  %v3833_v52 = vmul.f32 1.442695, %v3831_v0  ;;  %v3378_v0 = vadd.f32 %v3370_v26, %v9041_v13 }
0x12a6   :  { %7375 = vpow2.f32 %v3833_v52 }
0x12b1   :  { %v7374_v53 = vpop.eup %7373 }
0x12b2   :  { %v3840_v2 = vsel %vm3827_vm2, %v7374_v53, 0.0 }
0x12b3   :  { %v7376_v17 = vpop.eup %7375  ;;  %3841 = vadd.xlane.f32.xlu1 %v3840_v2 }
0x12b4   :  { %v3837_v30 = vsel %vm3823_vm3, %v7376_v17, 0.0 }
0x12b5   :  { %3838 = vadd.xlane.f32.xlu0 %v3837_v30  ;;  %v3737_v30 = vpop.f32.mrf.mxu0 }
0x12b7   :  { %3383 = vadd.xlane.f32.xlu1 %v3382_v62 }
0x12b9   :  { %3380 = vadd.xlane.f32.xlu0 %v3378_v0 }
0x133c   :  { %v3842_v3 = vpop.xlane.xlu1 %3841 }
0x133d   :  { %7377 = vrcp.f32 %v3842_v3  ;;  %v3738_v3 = vadd.f32 %v9434_v6, %v3737_v30  ;;  %v9573_v30 = vld [vmem:[%s9924_s9 + $0x8] sm:$0xff] }
0x133e   :  { %v3839_v37 = vpop.xlane.xlu0 %3838  ;;  %10032 = vst [vmem:[#allocation42_spill] sm:$0xff] %v9573_v30 }
0x133f   :  { %7379 = vrcp.f32 %v3839_v37 }
0x1340   :  { %v3384_v14 = vpop.xlane.xlu1 %3383 }
0x1341   :  { %v3386_v38 = vmul.f32 0.1, %v3384_v14  ;;  %v9475_v14 = vld [vmem:[%s9924_s9 + $0x78] sm:$0xff] }
0x1342   :  { %v3381_v4 = vpop.xlane.xlu0 %3380  ;;  %10018 = vst [vmem:[#allocation28_spill] sm:$0xff] %v9475_v14 }
0x1343   :  { %v3388_v51 = vsub.f32 %v3379_v5, %v3386_v38  ;;  %v3385_v52 = vmul.f32 0.1, %v3381_v4  ;;  %v9503_v38 = vld [vmem:[%s9924_s9 + $0x58] sm:$0xff]  ;;  %v9510_v4 = vld [vmem:[%s9924_s9 + $0x50] sm:$0xff] }
0x1344   :  { %10022 = vst [vmem:[#allocation32_spill] sm:$0xff] %v9503_v38  ;;  %10023 = vst [vmem:[#allocation33_spill] sm:$0xff] %v9510_v4 }
0x1345   :  { %v3387_v27 = vsub.f32 %v3378_v0, %v3385_v52  ;;  %v9457_v2 = vmul.f32 %v9996_v31, %v3388_v51  ;;  %v9517_v51 = vld [vmem:[%s9924_s9 + $0x48] sm:$0xff]  ;;  %v9524_v52 = vld [vmem:[%s9924_s9 + $0x40] sm:$0xff] }
0x1346   :  { %10024 = vst [vmem:[#allocation34_spill] sm:$0xff] %v9517_v51  ;;  %10025 = vst [vmem:[#allocation35_spill] sm:$0xff] %v9524_v52 }
0x1347   :  { %v3392_v49 = vmul.f32 %v9457_v2, %v9457_v2  ;;  %v9462_v56 = vmul.f32 %v9996_v31, %v3387_v27  ;;  %v9531_v27 = vld [vmem:[%s9924_s9 + $0x38] sm:$0xff] }
0x1348   :  { %10026 = vst [vmem:[#allocation36_spill] sm:$0xff] %v9531_v27 }
0x1349   :  { %v3395_v13 = vsel %vm1262_vm0, %v3392_v49, 0.0  ;;  %v3391_v21 = vmul.f32 %v9462_v56, %v9462_v56  ;;  %v9538_v49 = vld [vmem:[%s9924_s9 + $0x30] sm:$0xff] }
0x134a   :  { %3396 = vadd.xlane.f32.xlu1 %v3395_v13  ;;  %v7378_v26 = vpop.eup %7377  ;;  %10027 = vst [vmem:[#allocation37_spill] sm:$0xff] %v9538_v49  ;;  %v9545_v13 = vld [vmem:[%s9924_s9 + $0x28] sm:$0xff] }
0x134b   :  { %3393 = vadd.xlane.f32.xlu0 %v3391_v21  ;;  %v3846_v0 = vmul.f32 %v7378_v26, %v7374_v53  ;;  %v9496_v53 = vld [vmem:[%s9924_s9 + $0x60] sm:$0xff]  ;;  %10028 = vst [vmem:[#allocation38_spill] sm:$0xff] %v9545_v13  ;;  %v9559_v26 = vld [vmem:[%s9924_s9 + $0x18] sm:$0xff] }
0x134c   :  { %v7380_v5 = vpop.eup %7379  ;;  %10021 = vst [vmem:[#allocation31_spill] sm:$0xff] %v9496_v53  ;;  %v9552_v21 = vld [vmem:[%s9924_s9 + $0x20] sm:$0xff]  ;;  %10030 = vst [vmem:[#allocation40_spill] sm:$0xff] %v9559_v26 }
0x134d   :  { %v3845_v62 = vmul.f32 %v7380_v5, %v7376_v17  ;;  %v9482_v17 = vld [vmem:[%s9924_s9 + $0x70] sm:$0xff]  ;;  %10029 = vst [vmem:[#allocation39_spill] sm:$0xff] %v9552_v21 }
0x134e   :  { %10019 = vst [vmem:[#allocation29_spill] sm:$0xff] %v9482_v17  ;;  %v9566_v5 = vld [vmem:[%s9924_s9 + $0x10] sm:$0xff] }
0x134f   :  { %7013 = vmatprep.mubr.msk.f32.mxu1 %vm3823_vm3, %v3845_v62  ;;  %10031 = vst [vmem:[#allocation41_spill] sm:$0xff] %v9566_v5  ;;  %v9582_v62 = vld [vmem:[%s9924_s9] sm:$0xff] }
0x1350   :  { %7014 = vmatmul.mubr.msk.f32.vlgmr.msra.gmra.mxu1 %vm3823_vm3, %v3846_v0  ;;  %10033 = vst [vmem:[#allocation43_spill] sm:$0xff] %v9582_v62  ;;  %v9593_v0 = vld [vmem:[%s9925_s10 + $0x78] sm:$0xff] }
0x1351   :  { %7017 = vmatpush3.msk.msra.mxu1 %vm1262_vm0, %v3743_v41  ;;  %v9489_v41 = vld [vmem:[%s9924_s9 + $0x68] sm:$0xff]  ;;  %7059 = vmatpush3.msra.mxu0 %v9593_v0 }
0x1352   :  { %7018 = vmatprep.subr.mxu1 %v3738_v3  ;;  %10020 = vst [vmem:[#allocation30_spill] sm:$0xff] %v9489_v41  ;;  %7060 = vmatprep.subr.mxu0 %v9999_v63 }
0x1353   :  { %7019 = vmatpush3.msra.mxu1 %v3738_v3  ;;  %v9598_v3 = vld [vmem:[%s9925_s10 + $0x70] sm:$0xff] }
0x1354   :  { %7023 = vmatprep.subr.mxu1 %v9999_v63  ;;  %7061 = vmatpush3.msra.mxu0 %v9598_v3 }
0x1355   :  { %7062 = vmatprep.subr.mxu0 %v9999_v63 }
0x13d3   :  { %v3397_v6 = vpop.xlane.xlu1 %3396 }
0x13d4   :  { %v3399_v34 = vmul.f32 0.1, %v3397_v6  ;;  %v10052_v6 = vld [vmem:[#allocation26_spill] sm:$0xff] }
0x1410   :  { %v7015_v31 = vpop.f32.mrf.mxu1 }
0x1412   :  { %v3922_v37 = vpop.f32.mrf.mxu1 }
0x1413   :  { %7020 = vmatprep.mubr.msk.f32.mxu1 %vm3823_vm3, %v3922_v37  ;;  %v9612_v37 = vld [vmem:[%s9925_s10 + $0x60] sm:$0xff] }
0x1414   :  { %7021 = vmatmul.mubr.msk.f32.vlgmr.msra.gmra.mxu1 %vm3823_vm3, %v7015_v31  ;;  %v9605_v31 = vld [vmem:[%s9925_s10 + $0x68] sm:$0xff] }
0x1415   :  { %7024 = vmatpush3.msra.mxu1 %v9475_v14  ;;  %7055 = vmatprep.mubr.msk.f32.mxu1 %vm7457_vm4, %v9999_v63 }
0x1416   :  { %7025 = vmatprep.subr.mxu1 %v9999_v63  ;;  %7063 = vmatpush3.msra.mxu0 %v9605_v31 }
0x1417   :  { %7026 = vmatpush3.msra.mxu1 %v9482_v17  ;;  %7064 = vmatprep.subr.mxu0 %v9999_v63 }
0x1418   :  { %7027 = vmatprep.subr.mxu1 %v9999_v63  ;;  %7065 = vmatpush3.msra.mxu0 %v9612_v37 }
0x1419   :  { %7028 = vmatpush3.msra.mxu1 %v9489_v41  ;;  %7066 = vmatprep.subr.mxu0 %v9999_v63 }
0x141a   :  { %7029 = vmatprep.subr.mxu1 %v9999_v63 }
0x141b   :  { %7030 = vmatpush3.msra.mxu1 %v9496_v53 }
0x141c   :  { %7031 = vmatprep.subr.mxu1 %v9999_v63 }
0x141d   :  { %7032 = vmatpush3.msra.mxu1 %v9503_v38  ;;  %v3394_v38 = vpop.xlane.xlu0 %3393 }
0x141e   :  { %7033 = vmatprep.subr.mxu1 %v9999_v63  ;;  %v3398_v53 = vmul.f32 0.1, %v3394_v38  ;;  %v3401_v38 = vadd.f32 1e-05, %v3399_v34 }
0x141f   :  { %7034 = vmatpush3.msra.mxu1 %v9510_v4  ;;  %v9689_v4 = vld [vmem:[%s9925_s10 + $0x8] sm:$0xff] }
0x1420   :  { %7035 = vmatprep.subr.mxu1 %v9999_v63  ;;  %v3400_v41 = vadd.f32 1e-05, %v3398_v53 }
0x1421   :  { %7036 = vmatpush3.msra.mxu1 %v9517_v51  ;;  %v9682_v51 = vld [vmem:[%s9925_s10 + $0x10] sm:$0xff] }
0x1422   :  { %7037 = vmatprep.subr.mxu1 %v9999_v63  ;;  %7381 = vrsqrt.f32 %v3400_v41 }
0x1423   :  { %7038 = vmatpush3.msra.mxu1 %v9524_v52  ;;  %v9675_v52 = vld [vmem:[%s9925_s10 + $0x18] sm:$0xff]  ;;  %7383 = vrsqrt.f32 %v3401_v38 }
0x1424   :  { %7039 = vmatprep.subr.mxu1 %v9999_v63 }
0x1425   :  { %7040 = vmatpush3.msra.mxu1 %v9531_v27  ;;  %v9668_v27 = vld [vmem:[%s9925_s10 + $0x20] sm:$0xff] }
0x1426   :  { %7041 = vmatprep.subr.mxu1 %v9999_v63 }
0x1427   :  { %7042 = vmatpush3.msra.mxu1 %v9538_v49  ;;  %v9661_v49 = vld [vmem:[%s9925_s10 + $0x28] sm:$0xff] }
0x1428   :  { %7043 = vmatprep.subr.mxu1 %v9999_v63 }
0x1429   :  { %7044 = vmatpush3.msra.mxu1 %v9545_v13  ;;  %v9654_v13 = vld [vmem:[%s9925_s10 + $0x30] sm:$0xff] }
0x142a   :  { %7045 = vmatprep.subr.mxu1 %v9999_v63 }
0x142b   :  { %7046 = vmatpush3.msra.mxu1 %v9552_v21  ;;  %v9647_v21 = vld [vmem:[%s9925_s10 + $0x38] sm:$0xff] }
0x142c   :  { %7047 = vmatprep.subr.mxu1 %v9999_v63 }
0x142d   :  { %7048 = vmatpush3.msra.mxu1 %v9559_v26  ;;  %v9640_v26 = vld [vmem:[%s9925_s10 + $0x40] sm:$0xff] }
0x142e   :  { %7049 = vmatprep.subr.mxu1 %v9999_v63 }
0x142f   :  { %7050 = vmatpush3.msra.mxu1 %v9566_v5  ;;  %v9633_v5 = vld [vmem:[%s9925_s10 + $0x48] sm:$0xff]  ;;  %v7382_v17 = vpop.eup %7381 }
0x1430   :  { %7051 = vmatprep.subr.mxu1 %v9999_v63  ;;  %v3404_v14 = vmul.f32 %v7382_v17, %v9462_v56  ;;  %v10053_v56 = vld [vmem:[#allocation27_spill] sm:$0xff] }
0x1431   :  { %7052 = vmatpush3.msra.mxu1 %v9573_v30  ;;  %v9626_v30 = vld [vmem:[%s9925_s10 + $0x50] sm:$0xff] }
0x1432   :  { %7053 = vmatprep.subr.mxu1 %v9999_v63  ;;  %v3406_v1 = vmul.f32 %v9177_v25, %v3404_v14 }
0x1433   :  { %7054 = vmatpush3.msra.mxu1 %v9582_v62  ;;  %v9619_v62 = vld [vmem:[%s9925_s10 + $0x58] sm:$0xff] }
0x1434   :  { %7093 = vmatprep.subr.mxu1 %v9032_v59  ;;  %7067 = vmatpush3.msra.mxu0 %v9619_v62  ;;  %v9698_v39 = vadd.f32 %v9183_v29, %v3406_v1 }
0x1435   :  { %7068 = vmatprep.subr.mxu0 %v9999_v63 }
0x1436   :  { %7069 = vmatpush3.msra.mxu0 %v9626_v30 }
0x1437   :  { %7070 = vmatprep.subr.mxu0 %v9999_v63 }
0x1438   :  { %7071 = vmatpush3.msra.mxu0 %v9633_v5 }
0x1439   :  { %7072 = vmatprep.subr.mxu0 %v9999_v63 }
0x143a   :  { %7073 = vmatpush3.msra.mxu0 %v9640_v26 }
0x143b   :  { %7074 = vmatprep.subr.mxu0 %v9999_v63 }
0x143c   :  { %7075 = vmatpush3.msra.mxu0 %v9647_v21 }
0x143d   :  { %7076 = vmatprep.subr.mxu0 %v9999_v63 }
0x143e   :  { %7077 = vmatpush3.msra.mxu0 %v9654_v13 }
0x143f   :  { %7078 = vmatprep.subr.mxu0 %v9999_v63 }
0x1440   :  { %7079 = vmatpush3.msra.mxu0 %v9661_v49 }
0x1441   :  { %7080 = vmatprep.subr.mxu0 %v9999_v63 }
0x1442   :  { %7081 = vmatpush3.msra.mxu0 %v9668_v27 }
0x1443   :  { %7082 = vmatprep.subr.mxu0 %v9999_v63 }
0x1444   :  { %7083 = vmatpush3.msra.mxu0 %v9675_v52 }
0x1445   :  { %7084 = vmatprep.subr.mxu0 %v9999_v63 }
0x1446   :  { %7085 = vmatpush3.msra.mxu0 %v9682_v51 }
0x1447   :  { %7086 = vmatprep.subr.mxu0 %v9999_v63 }
0x1448   :  { %7087 = vmatpush3.msra.mxu0 %v9689_v4 }
0x1449   :  { %7088 = vmatprep.subr.mxu0 %v9999_v63 }
0x14d4   :  { %v7022_v9 = vpop.f32.mrf.mxu1 }
0x14d5   :  { %v10051_v9 = vld [vmem:[#allocation25_spill] sm:$0xff] }
0x14d6   :  { %v4006_v40 = vpop.f32.mrf.mxu1 }
0x14d7   :  { %7056 = vmatmul.mubr.f32.vlgmr.msra.gmra.mxu1 %v4006_v40 }
0x14d8   :  { %7094 = vmatpush3.msra.mxu1 %v9032_v59  ;;  %7125 = vmatprep.mubr.f32.mxu1 %v9698_v39  ;;  %v7384_v59 = vpop.eup %7383 }
0x14d9   :  { %7095 = vmatprep.subr.mxu1 %v9050_v7 }
0x14da   :  { %7096 = vmatpush3.msra.mxu1 %v9050_v7  ;;  %v3405_v7 = vmul.f32 %v7384_v59, %v9457_v2 }
0x14db   :  { %7097 = vmatprep.subr.mxu1 %v9065_v8 }
0x14dc   :  { %7098 = vmatpush3.msra.mxu1 %v9065_v8  ;;  %v3407_v8 = vmul.f32 %v9177_v25, %v3405_v7  ;;  %v10043_v25 = vld [vmem:[#allocation17_spill] sm:$0xff] }
0x14dd   :  { %7099 = vmatprep.subr.mxu1 %v9072_v10 }
0x14de   :  { %7100 = vmatpush3.msra.mxu1 %v9072_v10  ;;  %v9734_v10 = vadd.f32 %v9183_v29, %v3407_v8  ;;  %v10044_v29 = vld [vmem:[#allocation18_spill] sm:$0xff] }
0x14df   :  { %7101 = vmatprep.subr.mxu1 %v9081_v11 }
0x14e0   :  { %7102 = vmatpush3.msra.mxu1 %v9081_v11  ;;  %v3487_v11 = vld [vmem:[%s9925_s10] sm:$0xff] }
0x14e1   :  { %7103 = vmatprep.subr.mxu1 %v9088_v47  ;;  %7089 = vmatpush3.msra.mxu0 %v3487_v11 }
0x14e2   :  { %7104 = vmatpush3.msra.mxu1 %v9088_v47  ;;  %7128 = vmatprep.subr.mxu0 %v9171_v35  ;;  %v9812_v47 = vld [vmem:[%s9922_s7 + $0x3] sm:$0x1] }
0x14e3   :  { %7105 = vmatprep.subr.mxu1 %v9095_v54 }
0x14e4   :  { %7106 = vmatpush3.msra.mxu1 %v9095_v54 }
0x14e5   :  { %7107 = vmatprep.subr.mxu1 %v9100_v48 }
0x14e6   :  { %7108 = vmatpush3.msra.mxu1 %v9100_v48 }
0x14e7   :  { %7109 = vmatprep.subr.mxu1 %v9107_v55 }
0x14e8   :  { %7110 = vmatpush3.msra.mxu1 %v9107_v55 }
0x14e9   :  { %7111 = vmatprep.subr.mxu1 %v9114_v46 }
0x14ea   :  { %7112 = vmatpush3.msra.mxu1 %v9114_v46  ;;  %v10034_v46 = vld [vmem:[#allocation10_spill] sm:$0xff] }
0x14eb   :  { %7113 = vmatprep.subr.mxu1 %v9121_v58 }
0x14ec   :  { %7114 = vmatpush3.msra.mxu1 %v9121_v58  ;;  %v10035_v58 = vld [vmem:[#allocation9_spill] sm:$0xff] }
0x14ed   :  { %7115 = vmatprep.subr.mxu1 %v9128_v15 }
0x14ee   :  { %7116 = vmatpush3.msra.mxu1 %v9128_v15  ;;  %v10036_v15 = vld [vmem:[#allocation8_spill] sm:$0xff] }
0x14ef   :  { %7117 = vmatprep.subr.mxu1 %v9135_v23 }
0x14f0   :  { %7118 = vmatpush3.msra.mxu1 %v9135_v23  ;;  %v10037_v23 = vld [vmem:[#allocation11_spill] sm:$0xff] }
0x14f1   :  { %7119 = vmatprep.subr.mxu1 %v9142_v24 }
0x14f2   :  { %7120 = vmatpush3.msra.mxu1 %v9142_v24  ;;  %v10038_v24 = vld [vmem:[#allocation12_spill] sm:$0xff] }
0x14f3   :  { %7121 = vmatprep.subr.mxu1 %v9149_v12 }
0x14f4   :  { %7122 = vmatpush3.msra.mxu1 %v9149_v12  ;;  %v10039_v12 = vld [vmem:[#allocation13_spill] sm:$0xff] }
0x14f5   :  { %7123 = vmatprep.subr.mxu1 %v9156_v44 }
0x14f6   :  { %7124 = vmatpush3.msra.mxu1 %v9156_v44  ;;  %v10040_v44 = vld [vmem:[#allocation14_spill] sm:$0xff] }
0x14f7   :  { %7126 = vmatmul.mubr.f32.vlgmr.msra.gmra.mxu1 %v9734_v10  ;;  %7163 = vmatprep.subr.mxu1 %v9165_v43 }
0x14f8   :  { %7164 = vmatpush3.msra.mxu1 %v9165_v43  ;;  %7195 = vmatprep.mubr.f32.mxu1 %v9698_v39  ;;  %v10041_v43 = vld [vmem:[#allocation15_spill] sm:$0xff] }
0x14f9   :  { %7165 = vmatprep.subr.mxu1 %v9195_v57 }
0x14fa   :  { %7166 = vmatpush3.msra.mxu1 %v9195_v57  ;;  %v10045_v57 = vld [vmem:[#allocation19_spill] sm:$0xff] }
0x14fb   :  { %7167 = vmatprep.subr.mxu1 %v9202_v50 }
0x14fc   :  { %7168 = vmatpush3.msra.mxu1 %v9202_v50  ;;  %v10046_v50 = vld [vmem:[#allocation20_spill] sm:$0xff] }
0x14fd   :  { %7169 = vmatprep.subr.mxu1 %v9209_v33 }
0x14fe   :  { %7170 = vmatpush3.msra.mxu1 %v9209_v33  ;;  %v10047_v33 = vld [vmem:[#allocation21_spill] sm:$0xff] }
0x14ff   :  { %7171 = vmatprep.subr.mxu1 %v9216_v36 }
0x1500   :  { %7172 = vmatpush3.msra.mxu1 %v9216_v36 }
0x1501   :  { %7173 = vmatprep.subr.mxu1 %v9223_v42 }
0x1502   :  { %7174 = vmatpush3.msra.mxu1 %v9223_v42  ;;  %v10048_v42 = vld [vmem:[#allocation22_spill] sm:$0xff] }
0x1503   :  { %7175 = vmatprep.subr.mxu1 %v9230_v32 }
0x1504   :  { %7176 = vmatpush3.msra.mxu1 %v9230_v32 }
0x1505   :  { %7177 = vmatprep.subr.mxu1 %v9237_v18 }
0x1506   :  { %7178 = vmatpush3.msra.mxu1 %v9237_v18  ;;  %v10049_v18 = vld [vmem:[#allocation23_spill] sm:$0xff] }
0x1507   :  { %7179 = vmatprep.subr.mxu1 %v9244_v19 }
0x1508   :  { %7180 = vmatpush3.msra.mxu1 %v9244_v19 }
0x1509   :  { %7181 = vmatprep.subr.mxu1 %v9251_v22 }
0x150a   :  { %7182 = vmatpush3.msra.mxu1 %v9251_v22  ;;  %v9852_v22 = vld [vmem:[%s9922_s7 + $0x4] sm:$0x1]  ;;  %s7458_s7 = smov [#allocation5]  }
0x150b   :  { %7183 = vmatprep.subr.mxu1 %v9258_v20  ;;  %s4790_s27 = sshll.u32 %s7458_s7, 4  ;;  %s4791_s27 = int_to_ptr.vmem [resolvable:$true] %s4790_s27 }
0x150c   :  { %7184 = vmatpush3.msra.mxu1 %v9258_v20  ;;  %s7429_s28 = scalar_lea.vmem %s4791_s27, 32  ;;  %p7434_p6 = scmp.lt.s32.totalorder %s4791_s27, %s4791_s27 }
0x150d   :  { %7185 = vmatprep.subr.mxu1 %v9265_v60  ;;  %p7430_p5 = scmp.ne.s32.totalorder %s4791_s27, %s7429_s28  ;;  %p7435_p7 = scmp.lt.s32.totalorder %s7429_s28, %s7429_s28 }
0x150e   :  { %7186 = vmatpush3.msra.mxu1 %v9265_v60 }
0x150f   :  { %7187 = vmatprep.subr.mxu1 %v9272_v61  ;;  %p7436_p8 = por %p7435_p7, %p7434_p6 }
0x1510   :  { %7188 = vmatpush3.msra.mxu1 %v9272_v61 }
0x1511   :  { %7189 = vmatprep.subr.mxu1 %v9279_v45  ;;  %p7437_p9 = pnand %p7436_p8, %p7430_p5 }
0x1512   :  { %7190 = vmatpush3.msra.mxu1 %v9279_v45 }
0x1513   :  { %7191 = vmatprep.subr.mxu1 %v9286_v28 }
0x1514   :  { %7192 = vmatpush3.msra.mxu1 %v9286_v28  ;;  %v10050_v28 = vld [vmem:[#allocation24_spill] sm:$0xff] }
0x1515   :  { %7193 = vmatprep.subr.mxu1 %v9295_v16 }
0x1516   :  { %7194 = vmatpush3.msra.mxu1 %v9295_v16 }
0x1517   :  { %7196 = vmatmul.mubr.f32.vlgmr.msra.gmra.mxu1 %v9734_v10  ;;  %7254 = vmatprep.subr.mxu1 %v9999_v63 }
0x1518   :  { %7255 = vmatpush3.msra.mxu1 %v9593_v0  ;;  %7286 = vmatprep.mubr.msk.f32.mxu1 %vm7457_vm4, %v9999_v63 }
0x1519   :  { %7256 = vmatprep.subr.mxu1 %v9999_v63 }
0x151a   :  { %7257 = vmatpush3.msra.mxu1 %v9598_v3 }
0x151b   :  { %7258 = vmatprep.subr.mxu1 %v9999_v63 }
0x151c   :  { %7259 = vmatpush3.msra.mxu1 %v9605_v31 }
0x151d   :  { %7260 = vmatprep.subr.mxu1 %v9999_v63 }
0x151e   :  { %7261 = vmatpush3.msra.mxu1 %v9612_v37 }
0x151f   :  { %7262 = vmatprep.subr.mxu1 %v9999_v63 }
0x1520   :  { %7263 = vmatpush3.msra.mxu1 %v9619_v62 }
0x1521   :  { %7264 = vmatprep.subr.mxu1 %v9999_v63 }
0x1522   :  { %7265 = vmatpush3.msra.mxu1 %v9626_v30 }
0x1523   :  { %7266 = vmatprep.subr.mxu1 %v9999_v63 }
0x1524   :  { %7267 = vmatpush3.msra.mxu1 %v9633_v5 }
0x1525   :  { %7268 = vmatprep.subr.mxu1 %v9999_v63 }
0x1526   :  { %7269 = vmatpush3.msra.mxu1 %v9640_v26 }
0x1527   :  { %7270 = vmatprep.subr.mxu1 %v9999_v63 }
0x1528   :  { %7271 = vmatpush3.msra.mxu1 %v9647_v21 }
0x1529   :  { %7272 = vmatprep.subr.mxu1 %v9999_v63 }
0x152a   :  { %7273 = vmatpush3.msra.mxu1 %v9654_v13 }
0x152b   :  { %7274 = vmatprep.subr.mxu1 %v9999_v63 }
0x152c   :  { %7275 = vmatpush3.msra.mxu1 %v9661_v49 }
0x152d   :  { %7276 = vmatprep.subr.mxu1 %v9999_v63 }
0x152e   :  { %7277 = vmatpush3.msra.mxu1 %v9668_v27 }
0x152f   :  { %7278 = vmatprep.subr.mxu1 %v9999_v63 }
0x1530   :  { %7279 = vmatpush3.msra.mxu1 %v9675_v52 }
0x1531   :  { %7280 = vmatprep.subr.mxu1 %v9999_v63 }
0x1532   :  { %7281 = vmatpush3.msra.mxu1 %v9682_v51 }
0x1533   :  { %7282 = vmatprep.subr.mxu1 %v9999_v63 }
0x1534   :  { %7283 = vmatpush3.msra.mxu1 %v9689_v4 }
0x1535   :  { %7284 = vmatprep.subr.mxu1 %v9999_v63 }
0x1536   :  { %7285 = vmatpush3.msra.mxu1 %v3487_v11 }
0x1597   :  { %v4080_v54 = vpop.f32.mrf.mxu1 }
0x1598   :  { %v4081_v48 = vadd.f32 %v9812_v47, %v4080_v54 }
0x1599   :  { %v7057_v55 = vpop.f32.mrf.mxu1 }
0x159a   :  { %7091 = vmatmul.mubr.f32.vlgmr.msra.gmra.mxu0 %v4081_v48  ;;  %v10054_v48 = vld [vmem:[#allocation28_spill] sm:$0xff]  ;;  %v10055_v55 = vld [vmem:[#allocation29_spill] sm:$0xff] }
0x159b   :  { %7129 = vmatpush3.msra.mxu0 %v9171_v35  ;;  %7160 = vmatprep.mubr.f32.mxu0 %v9698_v39  ;;  %v10042_v35 = vld [vmem:[#allocation16_spill] sm:$0xff] }
0x159c   :  { %7130 = vmatprep.subr.mxu0 %v10034_v46 }
0x159d   :  { %7131 = vmatpush3.msra.mxu0 %v10034_v46  ;;  %v10056_v46 = vld [vmem:[#allocation30_spill] sm:$0xff] }
0x159e   :  { %7132 = vmatprep.subr.mxu0 %v10035_v58 }
0x159f   :  { %7133 = vmatpush3.msra.mxu0 %v10035_v58  ;;  %v10057_v58 = vld [vmem:[#allocation31_spill] sm:$0xff] }
0x15a0   :  { %7134 = vmatprep.subr.mxu0 %v10036_v15 }
0x15a1   :  { %7135 = vmatpush3.msra.mxu0 %v10036_v15  ;;  %v10058_v15 = vld [vmem:[#allocation32_spill] sm:$0xff] }
0x15a2   :  { %7136 = vmatprep.subr.mxu0 %v10037_v23 }
0x15a3   :  { %7137 = vmatpush3.msra.mxu0 %v10037_v23  ;;  %v10059_v23 = vld [vmem:[#allocation33_spill] sm:$0xff] }
0x15a4   :  { %7138 = vmatprep.subr.mxu0 %v10038_v24 }
0x15a5   :  { %7139 = vmatpush3.msra.mxu0 %v10038_v24  ;;  %v10060_v24 = vld [vmem:[#allocation34_spill] sm:$0xff] }
0x15a6   :  { %7140 = vmatprep.subr.mxu0 %v10039_v12 }
0x15a7   :  { %7141 = vmatpush3.msra.mxu0 %v10039_v12  ;;  %v10061_v12 = vld [vmem:[#allocation35_spill] sm:$0xff] }
0x15a8   :  { %7142 = vmatprep.subr.mxu0 %v10040_v44 }
0x15a9   :  { %7143 = vmatpush3.msra.mxu0 %v10040_v44  ;;  %v10062_v44 = vld [vmem:[#allocation36_spill] sm:$0xff] }
0x15aa   :  { %7144 = vmatprep.subr.mxu0 %v10041_v43 }
0x15ab   :  { %7145 = vmatpush3.msra.mxu0 %v10041_v43  ;;  %v10063_v43 = vld [vmem:[#allocation37_spill] sm:$0xff] }
0x15ac   :  { %7146 = vmatprep.subr.mxu0 %v10042_v35 }
0x15ad   :  { %7147 = vmatpush3.msra.mxu0 %v10042_v35  ;;  %v10064_v35 = vld [vmem:[#allocation38_spill] sm:$0xff] }
0x15ae   :  { %7148 = vmatprep.subr.mxu0 %v10043_v25 }
0x15af   :  { %7149 = vmatpush3.msra.mxu0 %v10043_v25  ;;  %v10065_v25 = vld [vmem:[#allocation39_spill] sm:$0xff] }
0x15b0   :  { %7150 = vmatprep.subr.mxu0 %v10044_v29 }
0x15b1   :  { %7151 = vmatpush3.msra.mxu0 %v10044_v29  ;;  %v10066_v29 = vld [vmem:[#allocation40_spill] sm:$0xff] }
0x15b2   :  { %7152 = vmatprep.subr.mxu0 %v10045_v57 }
0x15b3   :  { %7153 = vmatpush3.msra.mxu0 %v10045_v57  ;;  %v10067_v57 = vld [vmem:[#allocation41_spill] sm:$0xff] }
0x15b4   :  { %7154 = vmatprep.subr.mxu0 %v10046_v50 }
0x15b5   :  { %7155 = vmatpush3.msra.mxu0 %v10046_v50  ;;  %v10068_v50 = vld [vmem:[#allocation42_spill] sm:$0xff] }
0x15b6   :  { %7156 = vmatprep.subr.mxu0 %v10047_v33 }
0x15b7   :  { %v7127_v36 = vpop.f32.mrf.mxu1  ;;  %7157 = vmatpush3.msra.mxu0 %v10047_v33  ;;  %v10069_v33 = vld [vmem:[#allocation43_spill] sm:$0xff] }
0x15b8   :  { %7158 = vmatprep.subr.mxu0 %v10048_v42  ;;  %v4227_v34 = vadd.f32 %v7127_v36, %v10049_v18 }
0x15b9   :  { %v4221_v32 = vpop.f32.mrf.mxu1  ;;  %7159 = vmatpush3.msra.mxu0 %v10048_v42 }
0x15ba   :  { %v4222_v19 = vadd.f32 %v10049_v18, %v4221_v32  ;;  %7161 = vmatmul.mubr.f32.vlgmr.msra.gmra.mxu0 %v9734_v10 }
0x15bc   :  { %7202 = vmatprep.mubr.f32.mxu0 %v4222_v19 }
0x15d7   :  { %v7197_v1 = vpop.f32.mrf.mxu1 }
0x15d8   :  { %v4377_v2 = vadd.f32 %v7197_v1, %v10052_v6 }
0x15d9   :  { %v4371_v59 = vpop.f32.mrf.mxu1 }
0x15da   :  { %v4372_v10 = vadd.f32 %v10052_v6, %v4371_v59 }
0x165a   :  { %v4150_v20 = vpop.f32.mrf.mxu0 }
0x165b   :  { %v4151_v60 = vadd.f32 %v9852_v22, %v4150_v20 }
0x165c   :  { %v7092_v61 = vpop.f32.mrf.mxu0 }
0x165d   :  { %4154 = vst [vmem:[#allocation5] sm:$0x1] %v4151_v60 }
0x167a   :  { %v7162_v45 = vpop.f32.mrf.mxu0 }
0x167b   :  { %v4302_v16 = vadd.f32 %v7162_v45, %v10050_v28 }
0x167c   :  { %v4296_v39 = vpop.f32.mrf.mxu0 }
0x167d   :  { %v4297_v40 = vadd.f32 %v10050_v28, %v4296_v39  ;;  %7198 = vmatprep.subr.mxu0 %v4302_v16 }
0x167e   :  { %7199 = vmatpush3.xpose.msra.mxu0 %v4302_v16 }
0x167f   :  { %7200 = vmatprep.subr.mxu0 %v4297_v40 }
0x1682   :  { %7201 = vmatpush3.xpose.msra.mxu0 %v4297_v40 }
0x1683   :  { %7205 = vmatprep.subr.msk.mxu0 %vm1262_vm0, %v10051_v9 }
0x1685   :  { %7203 = vmatmul.mubr.f32.vlgmr.msra.gmra.mxu0 %v4227_v34 }
0x1686   :  { %7206 = vmatpush3.msk.msra.mxu0 %vm1262_vm0, %v10051_v9 }
0x1687   :  { %7207 = vmatprep.subr.mxu0 %v10053_v56 }
0x1688   :  { %7208 = vmatpush3.msra.mxu0 %v10053_v56 }
0x1689   :  { %7212 = vmatprep.subr.msk.mxu0 %vm1262_vm0, %v4377_v2 }
0x1745   :  { %v7204_v14 = vpop.f32.mrf.mxu0 }
0x1746   :  { %v4456_v17 = vmul.f32 0.31622776, %v7204_v14 }
0x1747   :  { %v4446_v41 = vpop.f32.mrf.mxu0 }
0x1748   :  { %v4455_v53 = vmul.f32 0.31622776, %v4446_v41  ;;  %v4460_v4 = vsel %vm3827_vm2, %v4456_v17, -inf }
0x1749   :  { %4461 = vmax.xlane.f32.xlu1 %v4460_v4 }
0x174a   :  { %v4457_v51 = vsel %vm3823_vm3, %v4455_v53, -inf }
0x174b   :  { %4458 = vmax.xlane.f32.xlu0 %v4457_v51 }
0x17d2   :  { %v4462_v52 = vpop.xlane.xlu1 %4461 }
0x17d3   :  { %v4464_v27 = vsub.f32 %v4456_v17, %v4462_v52 }
0x17d4   :  { %v4459_v49 = vpop.xlane.xlu0 %4458 }
0x17d5   :  { %v4467_v13 = vmul.f32 1.442695, %v4464_v27  ;;  %v4463_v21 = vsub.f32 %v4455_v53, %v4459_v49 }
0x17d7   :  { %7385 = vpow2.f32 %v4467_v13  ;;  %v4465_v26 = vmul.f32 1.442695, %v4463_v21 }
0x17d9   :  { %7387 = vpow2.f32 %v4465_v26 }
0x17e4   :  { %v7386_v5 = vpop.eup %7385 }
0x17e5   :  { %v4472_v30 = vsel %vm3827_vm2, %v7386_v5, 0.0 }
0x17e6   :  { %v7388_v62 = vpop.eup %7387  ;;  %4473 = vadd.xlane.f32.xlu1 %v4472_v30 }
0x17e7   :  { %v4469_v0 = vsel %vm3823_vm3, %v7388_v62, 0.0 }
0x17e8   :  { %4470 = vadd.xlane.f32.xlu0 %v4469_v0 }
0x186f   :  { %v4474_v3 = vpop.xlane.xlu1 %4473 }
0x1870   :  { %7389 = vrcp.f32 %v4474_v3 }
0x1871   :  { %v4471_v31 = vpop.xlane.xlu0 %4470 }
0x1872   :  { %7391 = vrcp.f32 %v4471_v31 }
0x187d   :  { %v7390_v37 = vpop.eup %7389 }
0x187e   :  { %v4478_v8 = vmul.f32 %v7390_v37, %v7386_v5 }
0x187f   :  { %v7392_v38 = vpop.eup %7391 }
0x1880   :  { %v4477_v7 = vmul.f32 %v7392_v38, %v7388_v62 }
0x1882   :  { %7209 = vmatprep.mubr.msk.f32.mxu0 %vm3823_vm3, %v4477_v7 }
0x1883   :  { %7210 = vmatmul.mubr.msk.f32.vlgmr.msra.gmra.mxu0 %vm3823_vm3, %v4478_v8 }
0x1884   :  { %7213 = vmatpush3.msk.msra.mxu0 %vm1262_vm0, %v4377_v2 }
0x1885   :  { %7214 = vmatprep.subr.mxu0 %v4372_v10 }
0x1886   :  { %7215 = vmatpush3.msra.mxu0 %v4372_v10 }
0x1887   :  { %7219 = vmatprep.subr.mxu0 %v9999_v63 }
0x1943   :  { %v7211_v11 = vpop.f32.mrf.mxu0 }
0x1945   :  { %v4551_v54 = vpop.f32.mrf.mxu0 }
0x1946   :  { %7216 = vmatprep.mubr.msk.f32.mxu0 %vm3823_vm3, %v4551_v54 }
0x1947   :  { %7217 = vmatmul.mubr.msk.f32.vlgmr.msra.gmra.mxu0 %vm3823_vm3, %v7211_v11 }
0x1948   :  { %7220 = vmatpush3.msra.mxu0 %v10054_v48  ;;  %7251 = vmatprep.mubr.msk.f32.mxu0 %vm7457_vm4, %v9999_v63 }
0x1949   :  { %7221 = vmatprep.subr.mxu0 %v9999_v63 }
0x194a   :  { %7222 = vmatpush3.msra.mxu0 %v10055_v55 }
0x194b   :  { %7223 = vmatprep.subr.mxu0 %v9999_v63 }
0x194c   :  { %7224 = vmatpush3.msra.mxu0 %v10056_v46 }
0x194d   :  { %7225 = vmatprep.subr.mxu0 %v9999_v63 }
0x194e   :  { %7226 = vmatpush3.msra.mxu0 %v10057_v58 }
0x194f   :  { %7227 = vmatprep.subr.mxu0 %v9999_v63 }
0x1950   :  { %7228 = vmatpush3.msra.mxu0 %v10058_v15 }
0x1951   :  { %7229 = vmatprep.subr.mxu0 %v9999_v63 }
0x1952   :  { %7230 = vmatpush3.msra.mxu0 %v10059_v23 }
0x1953   :  { %7231 = vmatprep.subr.mxu0 %v9999_v63 }
0x1954   :  { %7232 = vmatpush3.msra.mxu0 %v10060_v24 }
0x1955   :  { %7233 = vmatprep.subr.mxu0 %v9999_v63 }
0x1956   :  { %7234 = vmatpush3.msra.mxu0 %v10061_v12 }
0x1957   :  { %7235 = vmatprep.subr.mxu0 %v9999_v63 }
0x1958   :  { %7236 = vmatpush3.msra.mxu0 %v10062_v44 }
0x1959   :  { %7237 = vmatprep.subr.mxu0 %v9999_v63 }
0x195a   :  { %7238 = vmatpush3.msra.mxu0 %v10063_v43 }
0x195b   :  { %7239 = vmatprep.subr.mxu0 %v9999_v63 }
0x195c   :  { %7240 = vmatpush3.msra.mxu0 %v10064_v35 }
0x195d   :  { %7241 = vmatprep.subr.mxu0 %v9999_v63 }
0x195e   :  { %7242 = vmatpush3.msra.mxu0 %v10065_v25 }
0x195f   :  { %7243 = vmatprep.subr.mxu0 %v9999_v63 }
0x1960   :  { %7244 = vmatpush3.msra.mxu0 %v10066_v29 }
0x1961   :  { %7245 = vmatprep.subr.mxu0 %v9999_v63 }
0x1962   :  { %7246 = vmatpush3.msra.mxu0 %v10067_v57 }
0x1963   :  { %7247 = vmatprep.subr.mxu0 %v9999_v63 }
0x1964   :  { %7248 = vmatpush3.msra.mxu0 %v10068_v50 }
0x1965   :  { %7249 = vmatprep.subr.mxu0 %v9999_v63 }
0x1966   :  { %7250 = vmatpush3.msra.mxu0 %v10069_v33 }
0x1a07   :  { %v7218_v36 = vpop.f32.mrf.mxu0 }
0x1a09   :  { %v4635_v42 = vpop.f32.mrf.mxu0 }
0x1a0a   :  { %7252 = vmatmul.mubr.f32.vlgmr.msra.gmra.mxu0 %v4635_v42 }
0x1aca   :  { %v4709_v32 = vpop.f32.mrf.mxu0 }
0x1acb   :  { %v4710_v18 = vadd.f32 %v9812_v47, %v4709_v32 }
0x1acc   :  { %v7253_v19 = vpop.f32.mrf.mxu0 }
0x1acd   :  { %7287 = vmatmul.mubr.f32.vlgmr.msra.gmra.mxu1 %v4710_v18 }
0x1b8d   :  { %v4779_v20 = vpop.f32.mrf.mxu1 }
0x1b8e   :  { %v4780_v60 = vadd.f32 %v9852_v22, %v4779_v20 }
0x1b8f   :  { %v7288_v61 = vpop.f32.mrf.mxu1 }
0x1b90   :  { %4784 = vst [vmem:[#allocation5 + $0x1] sm:$0x1] %v4780_v60 }
0x1b91   :  { %7440 = shalt.err (!%p7437_p9)
}
0x1b92   :  { %s7459_s29 = smov 16   ;;  %s7460_s4 = smov 1  }
0x1b93   :  { %4796 = dma.vmem_to_hbm [thread:$0]  %s4791_s27, 32, %s9926_s11, [#allocation4], %s7459_s29, %s7459_s29, %s7460_s4  }
0x1b94   :  { %7451 = dma.done.wait [#allocation4], 32  }
0x1b95   :  { %7452 = vsyncadd [#allocation4], 4294967264 }
0x1b96   :  { %4800 = vsyncpa [#allocation3], 1 }
0x1b97   :  { %4801 = vsyncpa [#allocation4], 1 }

</bundles_post_ra>
